<compile_context>
chip_gen: v7x
topology: tpu7x:2x2x1
jax: 0.10.0
libtpu: 0.0.40
codegen_flags: <defaults>
</compile_context>

<pallas_src>
import functools

import numpy as np
import jax
import jax.numpy as jnp
from jax import lax
from jax.experimental import pallas as pl
from jax.experimental.pallas import tpu as pltpu

C_MID = 128      # channels after the 1x1 conv
C_OUT = 768      # channels after the 2x2 conv
BN_EPS = 1e-5
POOL_K = 5       # AvgPool2d(5, stride=2, padding=0)
POOL_S = 2


def _round_up(a, b):
    return (a + b - 1) // b * b


def aux_head_kernel(x_ref, w1_ref, sc_ref, sh_ref, w2_ref, wc_ref, bc_ref,
                    o_ref, h1_ref, *, width):
    """One batch tile of the auxiliary head (everything transposed: lanes = batch).

    x_ref : (H*W*Cp, TN) bf16, rows ordered (spatial w, channel c), cols = batch
    w1_ref: (128, Cp)    bf16  1x1-conv weight
    sc_ref, sh_ref: (128, 1) f32  folded BatchNorm scale / shift (eval mode)
    w2_ref: (768, 512)   bf16  2x2-conv weight, columns ordered (tap p, channel m)
    wc_ref: (ncls_pad, 768) bf16  classifier weight
    bc_ref: (ncls_pad, 1) f32     classifier bias
    o_ref : (ncls_pad, TN) f32    logits (transposed)
    h1_ref: (512, TN) bf16 scratch holding the 4 BN+ReLU'd taps, tap-major rows
    """
    cp = w1_ref.shape[1]
    tn = x_ref.shape[1]
    inv_area = jnp.float32(1.0 / (POOL_K * POOL_K))

    # ReLU -> AvgPool(5, s2) -> 1x1 conv -> BN -> ReLU, one pooled tap (oh, ow) at a time.
    for oh in range(2):
        for ow in range(2):
            p = oh * 2 + ow
            acc = jnp.zeros((cp, tn), jnp.float32)
            for kh in range(POOL_K):
                for kw in range(POOL_K):
                    w = (POOL_S * oh + kh) * width + (POOL_S * ow + kw)
                    slab = x_ref[w * cp:(w + 1) * cp, :]           # aligned static view
                    acc = acc + jnp.maximum(slab, 0).astype(jnp.float32)
            pooled = (acc * inv_area).astype(jnp.bfloat16)          # (Cp, TN)
            h1 = jnp.dot(w1_ref[...], pooled,
                         preferred_element_type=jnp.float32)        # (128, TN) on MXU
            h1 = jnp.maximum(h1 * sc_ref[...] + sh_ref[...], 0.0)   # BN + ReLU (VPU, f32)
            h1_ref[p * C_MID:(p + 1) * C_MID, :] = h1.astype(jnp.bfloat16)

    # 2x2 conv on the 2x2 pooled map == one fused K=512 MXU matmul, then ReLU.
    h2 = jnp.dot(w2_ref[...], h1_ref[...], preferred_element_type=jnp.float32)
    h2 = jnp.maximum(h2, 0.0).astype(jnp.bfloat16)                  # (768, TN)

    # Linear classifier (class rows padded to a multiple of 8).
    o_ref[...] = jnp.dot(wc_ref[...], h2,
                         preferred_element_type=jnp.float32) + bc_ref[...]


def aux_head_forward(x_nchw, params, *, block_n=128):
    """Pallas implementation of AuxiliaryHeadImageNet.forward (eval-mode BN, bf16 MXU)."""
    assert block_n % 128 == 0, "batch tile must keep the lane dim 128-aligned"
    N, C, H, W = x_nchw.shape
    assert (H - POOL_K) // POOL_S + 1 == 2 and (W - POOL_K) // POOL_S + 1 == 2, \
        "spatial must pool to 2x2 (7x7 input)"
    HW = H * W

    w1, gamma, beta, rmean, rvar = (params[k] for k in ("w1", "gamma", "beta", "rmean", "rvar"))
    w2, wcls, bcls = params["w2"], params["wcls"], params["bcls"]
    num_classes = wcls.shape[0]

    cp = _round_up(C, 16)                 # bf16 sublane packing: keep x slabs 16-row aligned
    ncls_pad = _round_up(num_classes, 8)

    # Batch tiling: the lane dim of every in-kernel tensor is the batch tile.
    if N <= block_n:
        tn, n_pad = N, N                  # single tile == full dim (no 128-divisibility needed)
    else:
        tn = block_n
        n_pad = _round_up(N, tn)

    # x: NCHW -> rows (w, c) / cols n, zero-padded channels & batch, bf16.
    # TODO(synk): accept NHWC / pre-flattened activations to avoid this wrapper transpose.
    xt = jnp.transpose(x_nchw, (2, 3, 1, 0))                        # (H, W, C, N)
    xt = jnp.pad(xt, ((0, 0), (0, 0), (0, cp - C), (0, n_pad - N)))
    x2 = xt.reshape(HW * cp, n_pad).astype(jnp.bfloat16)

    # Fold BatchNorm (eval mode) into per-channel scale/shift (kept in f32).
    scale = (gamma / jnp.sqrt(rvar + BN_EPS)).astype(jnp.float32)
    shift = (beta - rmean * scale).astype(jnp.float32)

    w1m = jnp.pad(w1[:, :, 0, 0], ((0, 0), (0, cp - C))).astype(jnp.bfloat16)     # (128, Cp)
    # (O, I, kh, kw) -> (O, kh, kw, I) -> (768, 512); columns tap-major, channel-minor,
    # matching the tap order (p = oh*2 + ow) of the rows written into the h1 scratch.
    w2t = jnp.transpose(w2, (0, 2, 3, 1)).reshape(C_OUT, 4 * C_MID).astype(jnp.bfloat16)
    wcm = jnp.pad(wcls, ((0, ncls_pad - num_classes), (0, 0))).astype(jnp.bfloat16)
    bcm = jnp.pad(bcls, (0, ncls_pad - num_classes)).reshape(ncls_pad, 1).astype(jnp.float32)

    # Explicit VMEM budget (v7x: 64 MiB physical, 32 MiB default scoped limit).
    lane = max(tn, 128)
    est = (2 * HW * cp * lane * 2                                   # x tile, double-buffered, bf16
           + 2 * ncls_pad * lane * 4                                # out tile, double-buffered, f32
           + 2 * 2 * (C_MID * cp + C_OUT * 4 * C_MID + ncls_pad * C_OUT)   # bf16 weights (2 bufs)
           + 2 * 4 * 128 * (2 * C_MID + ncls_pad)                   # scale/shift/bias (lane padded)
           + 2 * 4 * C_MID * lane                                   # h1 scratch (bf16)
           + 4 * lane * (cp + C_OUT + ncls_pad))                    # f32 temporaries
    vmem_limit = int(min(max(est * 3 // 2, 32 * 2 ** 20), 48 * 2 ** 20))

    grid = (n_pad // tn,)
    kernel = functools.partial(aux_head_kernel, width=W)

    out_t = pl.pallas_call(
        kernel,
        out_shape=jax.ShapeDtypeStruct((ncls_pad, n_pad), jnp.float32),
        grid=grid,
        in_specs=[
            pl.BlockSpec((HW * cp, tn), lambda i: (0, i)),          # x: tiled over batch
            pl.BlockSpec((C_MID, cp), lambda i: (0, 0)),            # weights: constant blocks
            pl.BlockSpec((C_MID, 1), lambda i: (0, 0)),
            pl.BlockSpec((C_MID, 1), lambda i: (0, 0)),
            pl.BlockSpec((C_OUT, 4 * C_MID), lambda i: (0, 0)),
            pl.BlockSpec((ncls_pad, C_OUT), lambda i: (0, 0)),
            pl.BlockSpec((ncls_pad, 1), lambda i: (0, 0)),
        ],
        out_specs=pl.BlockSpec((ncls_pad, tn), lambda i: (0, i)),
        scratch_shapes=[pltpu.VMEM((4 * C_MID, tn), jnp.bfloat16)],
        compiler_params=pltpu.CompilerParams(
            dimension_semantics=("parallel",),       # shard batch tiles across TCs (v7x)
            vmem_limit_bytes=vmem_limit),
    )(x2, w1m, scale.reshape(C_MID, 1), shift.reshape(C_MID, 1), w2t, wcm, bcm)

    # (ncls_pad, n_pad) -> (N, num_classes)
    return jnp.transpose(out_t)[:N, :num_classes]


def aux_head_reference(x, params):
    """Pure-JAX reference mirroring the PyTorch forward (eval-mode BN, f32 math)."""
    w1, gamma, beta, rmean, rvar = (params[k] for k in ("w1", "gamma", "beta", "rmean", "rvar"))
    w2, wcls, bcls = params["w2"], params["wcls"], params["bcls"]
    h = jnp.maximum(x, 0.0)
    h = lax.reduce_window(h, 0.0, lax.add, (1, 1, POOL_K, POOL_K),
                          (1, 1, POOL_S, POOL_S), "VALID") / (POOL_K * POOL_K)
    h = lax.conv_general_dilated(h, w1, (1, 1), "VALID",
                                 dimension_numbers=("NCHW", "OIHW", "NCHW"))
    scale = gamma / jnp.sqrt(rvar + BN_EPS)
    shift = beta - rmean * scale
    h = jnp.maximum(h * scale[None, :, None, None] + shift[None, :, None, None], 0.0)
    h = lax.conv_general_dilated(h, w2, (1, 1), "VALID",
                                 dimension_numbers=("NCHW", "OIHW", "NCHW"))
    h = jnp.maximum(h, 0.0)
    h = h.reshape(h.shape[0], -1)
    return h @ wcls.T + bcls


if __name__ == "__main__":
    N, C, H, W = 2, 8, 7, 7
    num_classes = 10

    key = jax.random.PRNGKey(0)
    kx, k1, k2, k3, k4, k5, k6, k7, k8 = jax.random.split(key, 9)

    params = dict(
        w1=jax.random.normal(k1, (C_MID, C, 1, 1), jnp.float32) * 0.1,
        gamma=jax.random.uniform(k2, (C_MID,), jnp.float32, 0.5, 1.5),
        beta=jax.random.normal(k3, (C_MID,), jnp.float32) * 0.1,
        rmean=jax.random.normal(k4, (C_MID,), jnp.float32) * 0.1,
        rvar=jax.random.uniform(k5, (C_MID,), jnp.float32, 0.5, 1.5),
        w2=jax.random.normal(k6, (C_OUT, C_MID, 2, 2), jnp.float32) * 0.05,
        wcls=jax.random.normal(k7, (num_classes, C_OUT), jnp.float32) * 0.05,
        bcls=jax.random.normal(k8, (num_classes,), jnp.float32) * 0.1,
    )
    x = jax.random.normal(kx, (N, C, H, W), jnp.float32)

    out = jax.block_until_ready(aux_head_forward(x, params))

    # Compare against an f32 reference run on the same bf16-rounded MXU inputs the kernel
    # sees (accumulation in the kernel is f32), so the check isolates kernel math from
    # the intentional bf16 quantization.
    q = lambda a: a.astype(jnp.bfloat16).astype(jnp.float32)
    params_q = {k: (q(v) if k in ("w1", "w2", "wcls") else v) for k, v in params.items()}
    ref = jax.block_until_ready(aux_head_reference(q(x), params_q))

    assert out.shape == (N, num_classes), out.shape
    if not np.allclose(np.asarray(out), np.asarray(ref), rtol=1e-2, atol=1e-2):
        raise AssertionError(
            f"mismatch: max abs err {np.max(np.abs(np.asarray(out) - np.asarray(ref)))}")

    print("KERNEL_OK")
</pallas_src>

<mosaic_0001>
module attributes {stable_mosaic.version = 11 : i64} {
  func.func @aux_head_kernel(%arg0: i32, %arg1: memref<784x2xbf16, #tpu.memory_space<vmem>>, %arg2: memref<128x16xbf16, #tpu.memory_space<vmem>>, %arg3: memref<128x1xf32, #tpu.memory_space<vmem>>, %arg4: memref<128x1xf32, #tpu.memory_space<vmem>>, %arg5: memref<768x512xbf16, #tpu.memory_space<vmem>>, %arg6: memref<16x768xbf16, #tpu.memory_space<vmem>>, %arg7: memref<16x1xf32, #tpu.memory_space<vmem>>, %arg8: memref<16x2xf32, #tpu.memory_space<vmem>>, %arg9: memref<512x2xbf16, #tpu.memory_space<vmem>>) attributes {dimension_semantics = [#tpu.dimension_semantics<parallel>], iteration_bounds = array<i64: 1>, scalar_prefetch = 0 : i64, scratch_operands = 1 : i64, tpu.core_type = #tpu.core_type<tc>, window_params = [{transform_indices = @transform_0, window_bounds = array<i64: 784, 2>}, {pipeline_mode = #tpu.pipeline_mode<synchronous>, transform_indices = @transform_1, window_bounds = array<i64: 128, 16>}, {pipeline_mode = #tpu.pipeline_mode<synchronous>, transform_indices = @transform_2, window_bounds = array<i64: 128, 1>}, {pipeline_mode = #tpu.pipeline_mode<synchronous>, transform_indices = @transform_3, window_bounds = array<i64: 128, 1>}, {pipeline_mode = #tpu.pipeline_mode<synchronous>, transform_indices = @transform_4, window_bounds = array<i64: 768, 512>}, {pipeline_mode = #tpu.pipeline_mode<synchronous>, transform_indices = @transform_5, window_bounds = array<i64: 16, 768>}, {pipeline_mode = #tpu.pipeline_mode<synchronous>, transform_indices = @transform_6, window_bounds = array<i64: 16, 1>}, {transform_indices = @transform_7, window_bounds = array<i64: 16, 2>}]} {
    %cst = arith.constant 0.000000e+00 : f32
    %0 = vector.broadcast %cst : f32 to vector<16x2xf32>
    %c0 = arith.constant 0 : index
    %c0_0 = arith.constant 0 : index
    %1 = vector.load %arg1[%c0, %c0_0] : memref<784x2xbf16, #tpu.memory_space<vmem>>, vector<16x2xbf16>
    %cst_1 = arith.constant 0.000000e+00 : bf16
    %2 = vector.broadcast %cst_1 : bf16 to vector<16x2xbf16>
    %3 = arith.maximumf %1, %2 : vector<16x2xbf16>
    %4 = arith.extf %3 : vector<16x2xbf16> to vector<16x2xf32>
    %5 = arith.addf %0, %4 : vector<16x2xf32>
    %c16 = arith.constant 16 : index
    %c0_2 = arith.constant 0 : index
    %6 = vector.load %arg1[%c16, %c0_2] : memref<784x2xbf16, #tpu.memory_space<vmem>>, vector<16x2xbf16>
    %cst_3 = arith.constant 0.000000e+00 : bf16
    %7 = vector.broadcast %cst_3 : bf16 to vector<16x2xbf16>
    %8 = arith.maximumf %6, %7 : vector<16x2xbf16>
    %9 = arith.extf %8 : vector<16x2xbf16> to vector<16x2xf32>
    %10 = arith.addf %5, %9 : vector<16x2xf32>
    %c32 = arith.constant 32 : index
    %c0_4 = arith.constant 0 : index
    %11 = vector.load %arg1[%c32, %c0_4] : memref<784x2xbf16, #tpu.memory_space<vmem>>, vector<16x2xbf16>
    %cst_5 = arith.constant 0.000000e+00 : bf16
    %12 = vector.broadcast %cst_5 : bf16 to vector<16x2xbf16>
    %13 = arith.maximumf %11, %12 : vector<16x2xbf16>
    %14 = arith.extf %13 : vector<16x2xbf16> to vector<16x2xf32>
    %15 = arith.addf %10, %14 : vector<16x2xf32>
    %c48 = arith.constant 48 : index
    %c0_6 = arith.constant 0 : index
    %16 = vector.load %arg1[%c48, %c0_6] : memref<784x2xbf16, #tpu.memory_space<vmem>>, vector<16x2xbf16>
    %cst_7 = arith.constant 0.000000e+00 : bf16
    %17 = vector.broadcast %cst_7 : bf16 to vector<16x2xbf16>
    %18 = arith.maximumf %16, %17 : vector<16x2xbf16>
    %19 = arith.extf %18 : vector<16x2xbf16> to vector<16x2xf32>
    %20 = arith.addf %15, %19 : vector<16x2xf32>
    %c64 = arith.constant 64 : index
    %c0_8 = arith.constant 0 : index
    %21 = vector.load %arg1[%c64, %c0_8] : memref<784x2xbf16, #tpu.memory_space<vmem>>, vector<16x2xbf16>
    %cst_9 = arith.constant 0.000000e+00 : bf16
    %22 = vector.broadcast %cst_9 : bf16 to vector<16x2xbf16>
    %23 = arith.maximumf %21, %22 : vector<16x2xbf16>
    %24 = arith.extf %23 : vector<16x2xbf16> to vector<16x2xf32>
    %25 = arith.addf %20, %24 : vector<16x2xf32>
    %c112 = arith.constant 112 : index
    %c0_10 = arith.constant 0 : index
    %26 = vector.load %arg1[%c112, %c0_10] : memref<784x2xbf16, #tpu.memory_space<vmem>>, vector<16x2xbf16>
    %cst_11 = arith.constant 0.000000e+00 : bf16
    %27 = vector.broadcast %cst_11 : bf16 to vector<16x2xbf16>
    %28 = arith.maximumf %26, %27 : vector<16x2xbf16>
    %29 = arith.extf %28 : vector<16x2xbf16> to vector<16x2xf32>
    %30 = arith.addf %25, %29 : vector<16x2xf32>
    %c128 = arith.constant 128 : index
    %c0_12 = arith.constant 0 : index
    %31 = vector.load %arg1[%c128, %c0_12] : memref<784x2xbf16, #tpu.memory_space<vmem>>, vector<16x2xbf16>
    %cst_13 = arith.constant 0.000000e+00 : bf16
    %32 = vector.broadcast %cst_13 : bf16 to vector<16x2xbf16>
    %33 = arith.maximumf %31, %32 : vector<16x2xbf16>
    %34 = arith.extf %33 : vector<16x2xbf16> to vector<16x2xf32>
    %35 = arith.addf %30, %34 : vector<16x2xf32>
    %c144 = arith.constant 144 : index
    %c0_14 = arith.constant 0 : index
    %36 = vector.load %arg1[%c144, %c0_14] : memref<784x2xbf16, #tpu.memory_space<vmem>>, vector<16x2xbf16>
    %cst_15 = arith.constant 0.000000e+00 : bf16
    %37 = vector.broadcast %cst_15 : bf16 to vector<16x2xbf16>
    %38 = arith.maximumf %36, %37 : vector<16x2xbf16>
    %39 = arith.extf %38 : vector<16x2xbf16> to vector<16x2xf32>
    %40 = arith.addf %35, %39 : vector<16x2xf32>
    %c160 = arith.constant 160 : index
    %c0_16 = arith.constant 0 : index
    %41 = vector.load %arg1[%c160, %c0_16] : memref<784x2xbf16, #tpu.memory_space<vmem>>, vector<16x2xbf16>
    %cst_17 = arith.constant 0.000000e+00 : bf16
    %42 = vector.broadcast %cst_17 : bf16 to vector<16x2xbf16>
    %43 = arith.maximumf %41, %42 : vector<16x2xbf16>
    %44 = arith.extf %43 : vector<16x2xbf16> to vector<16x2xf32>
    %45 = arith.addf %40, %44 : vector<16x2xf32>
    %c176 = arith.constant 176 : index
    %c0_18 = arith.constant 0 : index
    %46 = vector.load %arg1[%c176, %c0_18] : memref<784x2xbf16, #tpu.memory_space<vmem>>, vector<16x2xbf16>
    %cst_19 = arith.constant 0.000000e+00 : bf16
    %47 = vector.broadcast %cst_19 : bf16 to vector<16x2xbf16>
    %48 = arith.maximumf %46, %47 : vector<16x2xbf16>
    %49 = arith.extf %48 : vector<16x2xbf16> to vector<16x2xf32>
    %50 = arith.addf %45, %49 : vector<16x2xf32>
    %c224 = arith.constant 224 : index
    %c0_20 = arith.constant 0 : index
    %51 = vector.load %arg1[%c224, %c0_20] : memref<784x2xbf16, #tpu.memory_space<vmem>>, vector<16x2xbf16>
    %cst_21 = arith.constant 0.000000e+00 : bf16
    %52 = vector.broadcast %cst_21 : bf16 to vector<16x2xbf16>
    %53 = arith.maximumf %51, %52 : vector<16x2xbf16>
    %54 = arith.extf %53 : vector<16x2xbf16> to vector<16x2xf32>
    %55 = arith.addf %50, %54 : vector<16x2xf32>
    %c240 = arith.constant 240 : index
    %c0_22 = arith.constant 0 : index
    %56 = vector.load %arg1[%c240, %c0_22] : memref<784x2xbf16, #tpu.memory_space<vmem>>, vector<16x2xbf16>
    %cst_23 = arith.constant 0.000000e+00 : bf16
    %57 = vector.broadcast %cst_23 : bf16 to vector<16x2xbf16>
    %58 = arith.maximumf %56, %57 : vector<16x2xbf16>
    %59 = arith.extf %58 : vector<16x2xbf16> to vector<16x2xf32>
    %60 = arith.addf %55, %59 : vector<16x2xf32>
    %c256 = arith.constant 256 : index
    %c0_24 = arith.constant 0 : index
    %61 = vector.load %arg1[%c256, %c0_24] : memref<784x2xbf16, #tpu.memory_space<vmem>>, vector<16x2xbf16>
    %cst_25 = arith.constant 0.000000e+00 : bf16
    %62 = vector.broadcast %cst_25 : bf16 to vector<16x2xbf16>
    %63 = arith.maximumf %61, %62 : vector<16x2xbf16>
    %64 = arith.extf %63 : vector<16x2xbf16> to vector<16x2xf32>
    %65 = arith.addf %60, %64 : vector<16x2xf32>
    %c272 = arith.constant 272 : index
    %c0_26 = arith.constant 0 : index
    %66 = vector.load %arg1[%c272, %c0_26] : memref<784x2xbf16, #tpu.memory_space<vmem>>, vector<16x2xbf16>
    %cst_27 = arith.constant 0.000000e+00 : bf16
    %67 = vector.broadcast %cst_27 : bf16 to vector<16x2xbf16>
    %68 = arith.maximumf %66, %67 : vector<16x2xbf16>
    %69 = arith.extf %68 : vector<16x2xbf16> to vector<16x2xf32>
    %70 = arith.addf %65, %69 : vector<16x2xf32>
    %c288 = arith.constant 288 : index
    %c0_28 = arith.constant 0 : index
    %71 = vector.load %arg1[%c288, %c0_28] : memref<784x2xbf16, #tpu.memory_space<vmem>>, vector<16x2xbf16>
    %cst_29 = arith.constant 0.000000e+00 : bf16
    %72 = vector.broadcast %cst_29 : bf16 to vector<16x2xbf16>
    %73 = arith.maximumf %71, %72 : vector<16x2xbf16>
    %74 = arith.extf %73 : vector<16x2xbf16> to vector<16x2xf32>
    %75 = arith.addf %70, %74 : vector<16x2xf32>
    %c336 = arith.constant 336 : index
    %c0_30 = arith.constant 0 : index
    %76 = vector.load %arg1[%c336, %c0_30] : memref<784x2xbf16, #tpu.memory_space<vmem>>, vector<16x2xbf16>
    %cst_31 = arith.constant 0.000000e+00 : bf16
    %77 = vector.broadcast %cst_31 : bf16 to vector<16x2xbf16>
    %78 = arith.maximumf %76, %77 : vector<16x2xbf16>
    %79 = arith.extf %78 : vector<16x2xbf16> to vector<16x2xf32>
    %80 = arith.addf %75, %79 : vector<16x2xf32>
    %c352 = arith.constant 352 : index
    %c0_32 = arith.constant 0 : index
    %81 = vector.load %arg1[%c352, %c0_32] : memref<784x2xbf16, #tpu.memory_space<vmem>>, vector<16x2xbf16>
    %cst_33 = arith.constant 0.000000e+00 : bf16
    %82 = vector.broadcast %cst_33 : bf16 to vector<16x2xbf16>
    %83 = arith.maximumf %81, %82 : vector<16x2xbf16>
    %84 = arith.extf %83 : vector<16x2xbf16> to vector<16x2xf32>
    %85 = arith.addf %80, %84 : vector<16x2xf32>
    %c368 = arith.constant 368 : index
    %c0_34 = arith.constant 0 : index
    %86 = vector.load %arg1[%c368, %c0_34] : memref<784x2xbf16, #tpu.memory_space<vmem>>, vector<16x2xbf16>
    %cst_35 = arith.constant 0.000000e+00 : bf16
    %87 = vector.broadcast %cst_35 : bf16 to vector<16x2xbf16>
    %88 = arith.maximumf %86, %87 : vector<16x2xbf16>
    %89 = arith.extf %88 : vector<16x2xbf16> to vector<16x2xf32>
    %90 = arith.addf %85, %89 : vector<16x2xf32>
    %c384 = arith.constant 384 : index
    %c0_36 = arith.constant 0 : index
    %91 = vector.load %arg1[%c384, %c0_36] : memref<784x2xbf16, #tpu.memory_space<vmem>>, vector<16x2xbf16>
    %cst_37 = arith.constant 0.000000e+00 : bf16
    %92 = vector.broadcast %cst_37 : bf16 to vector<16x2xbf16>
    %93 = arith.maximumf %91, %92 : vector<16x2xbf16>
    %94 = arith.extf %93 : vector<16x2xbf16> to vector<16x2xf32>
    %95 = arith.addf %90, %94 : vector<16x2xf32>
    %c400 = arith.constant 400 : index
    %c0_38 = arith.constant 0 : index
    %96 = vector.load %arg1[%c400, %c0_38] : memref<784x2xbf16, #tpu.memory_space<vmem>>, vector<16x2xbf16>
    %cst_39 = arith.constant 0.000000e+00 : bf16
    %97 = vector.broadcast %cst_39 : bf16 to vector<16x2xbf16>
    %98 = arith.maximumf %96, %97 : vector<16x2xbf16>
    %99 = arith.extf %98 : vector<16x2xbf16> to vector<16x2xf32>
    %100 = arith.addf %95, %99 : vector<16x2xf32>
    %c448 = arith.constant 448 : index
    %c0_40 = arith.constant 0 : index
    %101 = vector.load %arg1[%c448, %c0_40] : memref<784x2xbf16, #tpu.memory_space<vmem>>, vector<16x2xbf16>
    %cst_41 = arith.constant 0.000000e+00 : bf16
    %102 = vector.broadcast %cst_41 : bf16 to vector<16x2xbf16>
    %103 = arith.maximumf %101, %102 : vector<16x2xbf16>
    %104 = arith.extf %103 : vector<16x2xbf16> to vector<16x2xf32>
    %105 = arith.addf %100, %104 : vector<16x2xf32>
    %c464 = arith.constant 464 : index
    %c0_42 = arith.constant 0 : index
    %106 = vector.load %arg1[%c464, %c0_42] : memref<784x2xbf16, #tpu.memory_space<vmem>>, vector<16x2xbf16>
    %cst_43 = arith.constant 0.000000e+00 : bf16
    %107 = vector.broadcast %cst_43 : bf16 to vector<16x2xbf16>
    %108 = arith.maximumf %106, %107 : vector<16x2xbf16>
    %109 = arith.extf %108 : vector<16x2xbf16> to vector<16x2xf32>
    %110 = arith.addf %105, %109 : vector<16x2xf32>
    %c480 = arith.constant 480 : index
    %c0_44 = arith.constant 0 : index
    %111 = vector.load %arg1[%c480, %c0_44] : memref<784x2xbf16, #tpu.memory_space<vmem>>, vector<16x2xbf16>
    %cst_45 = arith.constant 0.000000e+00 : bf16
    %112 = vector.broadcast %cst_45 : bf16 to vector<16x2xbf16>
    %113 = arith.maximumf %111, %112 : vector<16x2xbf16>
    %114 = arith.extf %113 : vector<16x2xbf16> to vector<16x2xf32>
    %115 = arith.addf %110, %114 : vector<16x2xf32>
    %c496 = arith.constant 496 : index
    %c0_46 = arith.constant 0 : index
    %116 = vector.load %arg1[%c496, %c0_46] : memref<784x2xbf16, #tpu.memory_space<vmem>>, vector<16x2xbf16>
    %cst_47 = arith.constant 0.000000e+00 : bf16
    %117 = vector.broadcast %cst_47 : bf16 to vector<16x2xbf16>
    %118 = arith.maximumf %116, %117 : vector<16x2xbf16>
    %119 = arith.extf %118 : vector<16x2xbf16> to vector<16x2xf32>
    %120 = arith.addf %115, %119 : vector<16x2xf32>
    %c512 = arith.constant 512 : index
    %c0_48 = arith.constant 0 : index
    %121 = vector.load %arg1[%c512, %c0_48] : memref<784x2xbf16, #tpu.memory_space<vmem>>, vector<16x2xbf16>
    %cst_49 = arith.constant 0.000000e+00 : bf16
    %122 = vector.broadcast %cst_49 : bf16 to vector<16x2xbf16>
    %123 = arith.maximumf %121, %122 : vector<16x2xbf16>
    %124 = arith.extf %123 : vector<16x2xbf16> to vector<16x2xf32>
    %125 = arith.addf %120, %124 : vector<16x2xf32>
    %cst_50 = arith.constant 4.000000e-02 : f32
    %126 = vector.broadcast %cst_50 : f32 to vector<16x2xf32>
    %127 = arith.mulf %125, %126 : vector<16x2xf32>
    %128 = arith.truncf %127 : vector<16x2xf32> to vector<16x2xbf16>
    %c0_51 = arith.constant 0 : index
    %c0_52 = arith.constant 0 : index
    %129 = vector.load %arg2[%c0_51, %c0_52] : memref<128x16xbf16, #tpu.memory_space<vmem>>, vector<128x16xbf16>
    %cst_53 = arith.constant dense<0.000000e+00> : vector<128x2xf32>
    %130 = tpu.matmul %129, %128, %cst_53 {dimension_numbers = #tpu.dot_dimension_numbers<[1], [0], [0], [1], [0, 0, 1, 1], [], []>} : vector<128x16xbf16>, vector<16x2xbf16>, vector<128x2xf32> -> vector<128x2xf32>
    %c0_54 = arith.constant 0 : index
    %c0_55 = arith.constant 0 : index
    %131 = vector.load %arg3[%c0_54, %c0_55] : memref<128x1xf32, #tpu.memory_space<vmem>>, vector<128x1xf32>
    %132 = vector.broadcast %131 : vector<128x1xf32> to vector<128x2xf32>
    %133 = arith.mulf %130, %132 : vector<128x2xf32>
    %c0_56 = arith.constant 0 : index
    %c0_57 = arith.constant 0 : index
    %134 = vector.load %arg4[%c0_56, %c0_57] : memref<128x1xf32, #tpu.memory_space<vmem>>, vector<128x1xf32>
    %135 = vector.broadcast %134 : vector<128x1xf32> to vector<128x2xf32>
    %136 = arith.addf %133, %135 : vector<128x2xf32>
    %cst_58 = arith.constant 0.000000e+00 : f32
    %137 = vector.broadcast %cst_58 : f32 to vector<128x2xf32>
    %138 = arith.maximumf %136, %137 : vector<128x2xf32>
    %139 = arith.truncf %138 : vector<128x2xf32> to vector<128x2xbf16>
    %c0_59 = arith.constant 0 : index
    %c0_60 = arith.constant 0 : index
    %140 = vector.load %arg9[%c0_59, %c0_60] : memref<512x2xbf16, #tpu.memory_space<vmem>>, vector<128x2xbf16>
    tpu.vector_store %arg9[%c0_59, %c0_60], %139 {strides = array<i32>} : memref<512x2xbf16, #tpu.memory_space<vmem>>, vector<128x2xbf16>,
    %cst_61 = arith.constant 0.000000e+00 : f32
    %141 = vector.broadcast %cst_61 : f32 to vector<16x2xf32>
    %c32_62 = arith.constant 32 : index
    %c0_63 = arith.constant 0 : index
    %142 = vector.load %arg1[%c32_62, %c0_63] : memref<784x2xbf16, #tpu.memory_space<vmem>>, vector<16x2xbf16>
    %cst_64 = arith.constant 0.000000e+00 : bf16
    %143 = vector.broadcast %cst_64 : bf16 to vector<16x2xbf16>
    %144 = arith.maximumf %142, %143 : vector<16x2xbf16>
    %145 = arith.extf %144 : vector<16x2xbf16> to vector<16x2xf32>
    %146 = arith.addf %141, %145 : vector<16x2xf32>
    %c48_65 = arith.constant 48 : index
    %c0_66 = arith.constant 0 : index
    %147 = vector.load %arg1[%c48_65, %c0_66] : memref<784x2xbf16, #tpu.memory_space<vmem>>, vector<16x2xbf16>
    %cst_67 = arith.constant 0.000000e+00 : bf16
    %148 = vector.broadcast %cst_67 : bf16 to vector<16x2xbf16>
    %149 = arith.maximumf %147, %148 : vector<16x2xbf16>
    %150 = arith.extf %149 : vector<16x2xbf16> to vector<16x2xf32>
    %151 = arith.addf %146, %150 : vector<16x2xf32>
    %c64_68 = arith.constant 64 : index
    %c0_69 = arith.constant 0 : index
    %152 = vector.load %arg1[%c64_68, %c0_69] : memref<784x2xbf16, #tpu.memory_space<vmem>>, vector<16x2xbf16>
    %cst_70 = arith.constant 0.000000e+00 : bf16
    %153 = vector.broadcast %cst_70 : bf16 to vector<16x2xbf16>
    %154 = arith.maximumf %152, %153 : vector<16x2xbf16>
    %155 = arith.extf %154 : vector<16x2xbf16> to vector<16x2xf32>
    %156 = arith.addf %151, %155 : vector<16x2xf32>
    %c80 = arith.constant 80 : index
    %c0_71 = arith.constant 0 : index
    %157 = vector.load %arg1[%c80, %c0_71] : memref<784x2xbf16, #tpu.memory_space<vmem>>, vector<16x2xbf16>
    %cst_72 = arith.constant 0.000000e+00 : bf16
    %158 = vector.broadcast %cst_72 : bf16 to vector<16x2xbf16>
    %159 = arith.maximumf %157, %158 : vector<16x2xbf16>
    %160 = arith.extf %159 : vector<16x2xbf16> to vector<16x2xf32>
    %161 = arith.addf %156, %160 : vector<16x2xf32>
    %c96 = arith.constant 96 : index
    %c0_73 = arith.constant 0 : index
    %162 = vector.load %arg1[%c96, %c0_73] : memref<784x2xbf16, #tpu.memory_space<vmem>>, vector<16x2xbf16>
    %cst_74 = arith.constant 0.000000e+00 : bf16
    %163 = vector.broadcast %cst_74 : bf16 to vector<16x2xbf16>
    %164 = arith.maximumf %162, %163 : vector<16x2xbf16>
    %165 = arith.extf %164 : vector<16x2xbf16> to vector<16x2xf32>
    %166 = arith.addf %161, %165 : vector<16x2xf32>
    %c144_75 = arith.constant 144 : index
    %c0_76 = arith.constant 0 : index
    %167 = vector.load %arg1[%c144_75, %c0_76] : memref<784x2xbf16, #tpu.memory_space<vmem>>, vector<16x2xbf16>
    %cst_77 = arith.constant 0.000000e+00 : bf16
    %168 = vector.broadcast %cst_77 : bf16 to vector<16x2xbf16>
    %169 = arith.maximumf %167, %168 : vector<16x2xbf16>
    %170 = arith.extf %169 : vector<16x2xbf16> to vector<16x2xf32>
    %171 = arith.addf %166, %170 : vector<16x2xf32>
    %c160_78 = arith.constant 160 : index
    %c0_79 = arith.constant 0 : index
    %172 = vector.load %arg1[%c160_78, %c0_79] : memref<784x2xbf16, #tpu.memory_space<vmem>>, vector<16x2xbf16>
    %cst_80 = arith.constant 0.000000e+00 : bf16
    %173 = vector.broadcast %cst_80 : bf16 to vector<16x2xbf16>
    %174 = arith.maximumf %172, %173 : vector<16x2xbf16>
    %175 = arith.extf %174 : vector<16x2xbf16> to vector<16x2xf32>
    %176 = arith.addf %171, %175 : vector<16x2xf32>
    %c176_81 = arith.constant 176 : index
    %c0_82 = arith.constant 0 : index
    %177 = vector.load %arg1[%c176_81, %c0_82] : memref<784x2xbf16, #tpu.memory_space<vmem>>, vector<16x2xbf16>
    %cst_83 = arith.constant 0.000000e+00 : bf16
    %178 = vector.broadcast %cst_83 : bf16 to vector<16x2xbf16>
    %179 = arith.maximumf %177, %178 : vector<16x2xbf16>
    %180 = arith.extf %179 : vector<16x2xbf16> to vector<16x2xf32>
    %181 = arith.addf %176, %180 : vector<16x2xf32>
    %c192 = arith.constant 192 : index
    %c0_84 = arith.constant 0 : index
    %182 = vector.load %arg1[%c192, %c0_84] : memref<784x2xbf16, #tpu.memory_space<vmem>>, vector<16x2xbf16>
    %cst_85 = arith.constant 0.000000e+00 : bf16
    %183 = vector.broadcast %cst_85 : bf16 to vector<16x2xbf16>
    %184 = arith.maximumf %182, %183 : vector<16x2xbf16>
    %185 = arith.extf %184 : vector<16x2xbf16> to vector<16x2xf32>
    %186 = arith.addf %181, %185 : vector<16x2xf32>
    %c208 = arith.constant 208 : index
    %c0_86 = arith.constant 0 : index
    %187 = vector.load %arg1[%c208, %c0_86] : memref<784x2xbf16, #tpu.memory_space<vmem>>, vector<16x2xbf16>
    %cst_87 = arith.constant 0.000000e+00 : bf16
    %188 = vector.broadcast %cst_87 : bf16 to vector<16x2xbf16>
    %189 = arith.maximumf %187, %188 : vector<16x2xbf16>
    %190 = arith.extf %189 : vector<16x2xbf16> to vector<16x2xf32>
    %191 = arith.addf %186, %190 : vector<16x2xf32>
    %c256_88 = arith.constant 256 : index
    %c0_89 = arith.constant 0 : index
    %192 = vector.load %arg1[%c256_88, %c0_89] : memref<784x2xbf16, #tpu.memory_space<vmem>>, vector<16x2xbf16>
    %cst_90 = arith.constant 0.000000e+00 : bf16
    %193 = vector.broadcast %cst_90 : bf16 to vector<16x2xbf16>
    %194 = arith.maximumf %192, %193 : vector<16x2xbf16>
    %195 = arith.extf %194 : vector<16x2xbf16> to vector<16x2xf32>
    %196 = arith.addf %191, %195 : vector<16x2xf32>
    %c272_91 = arith.constant 272 : index
    %c0_92 = arith.constant 0 : index
    %197 = vector.load %arg1[%c272_91, %c0_92] : memref<784x2xbf16, #tpu.memory_space<vmem>>, vector<16x2xbf16>
    %cst_93 = arith.constant 0.000000e+00 : bf16
    %198 = vector.broadcast %cst_93 : bf16 to vector<16x2xbf16>
    %199 = arith.maximumf %197, %198 : vector<16x2xbf16>
    %200 = arith.extf %199 : vector<16x2xbf16> to vector<16x2xf32>
    %201 = arith.addf %196, %200 : vector<16x2xf32>
    %c288_94 = arith.constant 288 : index
    %c0_95 = arith.constant 0 : index
    %202 = vector.load %arg1[%c288_94, %c0_95] : memref<784x2xbf16, #tpu.memory_space<vmem>>, vector<16x2xbf16>
    %cst_96 = arith.constant 0.000000e+00 : bf16
    %203 = vector.broadcast %cst_96 : bf16 to vector<16x2xbf16>
    %204 = arith.maximumf %202, %203 : vector<16x2xbf16>
    %205 = arith.extf %204 : vector<16x2xbf16> to vector<16x2xf32>
    %206 = arith.addf %201, %205 : vector<16x2xf32>
    %c304 = arith.constant 304 : index
    %c0_97 = arith.constant 0 : index
    %207 = vector.load %arg1[%c304, %c0_97] : memref<784x2xbf16, #tpu.memory_space<vmem>>, vector<16x2xbf16>
    %cst_98 = arith.constant 0.000000e+00 : bf16
    %208 = vector.broadcast %cst_98 : bf16 to vector<16x2xbf16>
    %209 = arith.maximumf %207, %208 : vector<16x2xbf16>
    %210 = arith.extf %209 : vector<16x2xbf16> to vector<16x2xf32>
    %211 = arith.addf %206, %210 : vector<16x2xf32>
    %c320 = arith.constant 320 : index
    %c0_99 = arith.constant 0 : index
    %212 = vector.load %arg1[%c320, %c0_99] : memref<784x2xbf16, #tpu.memory_space<vmem>>, vector<16x2xbf16>
    %cst_100 = arith.constant 0.000000e+00 : bf16
    %213 = vector.broadcast %cst_100 : bf16 to vector<16x2xbf16>
    %214 = arith.maximumf %212, %213 : vector<16x2xbf16>
    %215 = arith.extf %214 : vector<16x2xbf16> to vector<16x2xf32>
    %216 = arith.addf %211, %215 : vector<16x2xf32>
    %c368_101 = arith.constant 368 : index
    %c0_102 = arith.constant 0 : index
    %217 = vector.load %arg1[%c368_101, %c0_102] : memref<784x2xbf16, #tpu.memory_space<vmem>>, vector<16x2xbf16>
    %cst_103 = arith.constant 0.000000e+00 : bf16
    %218 = vector.broadcast %cst_103 : bf16 to vector<16x2xbf16>
    %219 = arith.maximumf %217, %218 : vector<16x2xbf16>
    %220 = arith.extf %219 : vector<16x2xbf16> to vector<16x2xf32>
    %221 = arith.addf %216, %220 : vector<16x2xf32>
    %c384_104 = arith.constant 384 : index
    %c0_105 = arith.constant 0 : index
    %222 = vector.load %arg1[%c384_104, %c0_105] : memref<784x2xbf16, #tpu.memory_space<vmem>>, vector<16x2xbf16>
    %cst_106 = arith.constant 0.000000e+00 : bf16
    %223 = vector.broadcast %cst_106 : bf16 to vector<16x2xbf16>
    %224 = arith.maximumf %222, %223 : vector<16x2xbf16>
    %225 = arith.extf %224 : vector<16x2xbf16> to vector<16x2xf32>
    %226 = arith.addf %221, %225 : vector<16x2xf32>
    %c400_107 = arith.constant 400 : index
    %c0_108 = arith.constant 0 : index
    %227 = vector.load %arg1[%c400_107, %c0_108] : memref<784x2xbf16, #tpu.memory_space<vmem>>, vector<16x2xbf16>
    %cst_109 = arith.constant 0.000000e+00 : bf16
    %228 = vector.broadcast %cst_109 : bf16 to vector<16x2xbf16>
    %229 = arith.maximumf %227, %228 : vector<16x2xbf16>
    %230 = arith.extf %229 : vector<16x2xbf16> to vector<16x2xf32>
    %231 = arith.addf %226, %230 : vector<16x2xf32>
    %c416 = arith.constant 416 : index
    %c0_110 = arith.constant 0 : index
    %232 = vector.load %arg1[%c416, %c0_110] : memref<784x2xbf16, #tpu.memory_space<vmem>>, vector<16x2xbf16>
    %cst_111 = arith.constant 0.000000e+00 : bf16
    %233 = vector.broadcast %cst_111 : bf16 to vector<16x2xbf16>
    %234 = arith.maximumf %232, %233 : vector<16x2xbf16>
    %235 = arith.extf %234 : vector<16x2xbf16> to vector<16x2xf32>
    %236 = arith.addf %231, %235 : vector<16x2xf32>
    %c432 = arith.constant 432 : index
    %c0_112 = arith.constant 0 : index
    %237 = vector.load %arg1[%c432, %c0_112] : memref<784x2xbf16, #tpu.memory_space<vmem>>, vector<16x2xbf16>
    %cst_113 = arith.constant 0.000000e+00 : bf16
    %238 = vector.broadcast %cst_113 : bf16 to vector<16x2xbf16>
    %239 = arith.maximumf %237, %238 : vector<16x2xbf16>
    %240 = arith.extf %239 : vector<16x2xbf16> to vector<16x2xf32>
    %241 = arith.addf %236, %240 : vector<16x2xf32>
    %c480_114 = arith.constant 480 : index
    %c0_115 = arith.constant 0 : index
    %242 = vector.load %arg1[%c480_114, %c0_115] : memref<784x2xbf16, #tpu.memory_space<vmem>>, vector<16x2xbf16>
    %cst_116 = arith.constant 0.000000e+00 : bf16
    %243 = vector.broadcast %cst_116 : bf16 to vector<16x2xbf16>
    %244 = arith.maximumf %242, %243 : vector<16x2xbf16>
    %245 = arith.extf %244 : vector<16x2xbf16> to vector<16x2xf32>
    %246 = arith.addf %241, %245 : vector<16x2xf32>
    %c496_117 = arith.constant 496 : index
    %c0_118 = arith.constant 0 : index
    %247 = vector.load %arg1[%c496_117, %c0_118] : memref<784x2xbf16, #tpu.memory_space<vmem>>, vector<16x2xbf16>
    %cst_119 = arith.constant 0.000000e+00 : bf16
    %248 = vector.broadcast %cst_119 : bf16 to vector<16x2xbf16>
    %249 = arith.maximumf %247, %248 : vector<16x2xbf16>
    %250 = arith.extf %249 : vector<16x2xbf16> to vector<16x2xf32>
    %251 = arith.addf %246, %250 : vector<16x2xf32>
    %c512_120 = arith.constant 512 : index
    %c0_121 = arith.constant 0 : index
    %252 = vector.load %arg1[%c512_120, %c0_121] : memref<784x2xbf16, #tpu.memory_space<vmem>>, vector<16x2xbf16>
    %cst_122 = arith.constant 0.000000e+00 : bf16
    %253 = vector.broadcast %cst_122 : bf16 to vector<16x2xbf16>
    %254 = arith.maximumf %252, %253 : vector<16x2xbf16>
    %255 = arith.extf %254 : vector<16x2xbf16> to vector<16x2xf32>
    %256 = arith.addf %251, %255 : vector<16x2xf32>
    %c528 = arith.constant 528 : index
    %c0_123 = arith.constant 0 : index
    %257 = vector.load %arg1[%c528, %c0_123] : memref<784x2xbf16, #tpu.memory_space<vmem>>, vector<16x2xbf16>
    %cst_124 = arith.constant 0.000000e+00 : bf16
    %258 = vector.broadcast %cst_124 : bf16 to vector<16x2xbf16>
    %259 = arith.maximumf %257, %258 : vector<16x2xbf16>
    %260 = arith.extf %259 : vector<16x2xbf16> to vector<16x2xf32>
    %261 = arith.addf %256, %260 : vector<16x2xf32>
    %c544 = arith.constant 544 : index
    %c0_125 = arith.constant 0 : index
    %262 = vector.load %arg1[%c544, %c0_125] : memref<784x2xbf16, #tpu.memory_space<vmem>>, vector<16x2xbf16>
    %cst_126 = arith.constant 0.000000e+00 : bf16
    %263 = vector.broadcast %cst_126 : bf16 to vector<16x2xbf16>
    %264 = arith.maximumf %262, %263 : vector<16x2xbf16>
    %265 = arith.extf %264 : vector<16x2xbf16> to vector<16x2xf32>
    %266 = arith.addf %261, %265 : vector<16x2xf32>
    %cst_127 = arith.constant 4.000000e-02 : f32
    %267 = vector.broadcast %cst_127 : f32 to vector<16x2xf32>
    %268 = arith.mulf %266, %267 : vector<16x2xf32>
    %269 = arith.truncf %268 : vector<16x2xf32> to vector<16x2xbf16>
    %c0_128 = arith.constant 0 : index
    %c0_129 = arith.constant 0 : index
    %270 = vector.load %arg2[%c0_128, %c0_129] : memref<128x16xbf16, #tpu.memory_space<vmem>>, vector<128x16xbf16>
    %cst_130 = arith.constant dense<0.000000e+00> : vector<128x2xf32>
    %271 = tpu.matmul %270, %269, %cst_130 {dimension_numbers = #tpu.dot_dimension_numbers<[1], [0], [0], [1], [0, 0, 1, 1], [], []>} : vector<128x16xbf16>, vector<16x2xbf16>, vector<128x2xf32> -> vector<128x2xf32>
    %c0_131 = arith.constant 0 : index
    %c0_132 = arith.constant 0 : index
    %272 = vector.load %arg3[%c0_131, %c0_132] : memref<128x1xf32, #tpu.memory_space<vmem>>, vector<128x1xf32>
    %273 = vector.broadcast %272 : vector<128x1xf32> to vector<128x2xf32>
    %274 = arith.mulf %271, %273 : vector<128x2xf32>
    %c0_133 = arith.constant 0 : index
    %c0_134 = arith.constant 0 : index
    %275 = vector.load %arg4[%c0_133, %c0_134] : memref<128x1xf32, #tpu.memory_space<vmem>>, vector<128x1xf32>
    %276 = vector.broadcast %275 : vector<128x1xf32> to vector<128x2xf32>
    %277 = arith.addf %274, %276 : vector<128x2xf32>
    %cst_135 = arith.constant 0.000000e+00 : f32
    %278 = vector.broadcast %cst_135 : f32 to vector<128x2xf32>
    %279 = arith.maximumf %277, %278 : vector<128x2xf32>
    %280 = arith.truncf %279 : vector<128x2xf32> to vector<128x2xbf16>
    %c128_136 = arith.constant 128 : index
    %c0_137 = arith.constant 0 : index
    %281 = vector.load %arg9[%c128_136, %c0_137] : memref<512x2xbf16, #tpu.memory_space<vmem>>, vector<128x2xbf16>
    tpu.vector_store %arg9[%c128_136, %c0_137], %280 {strides = array<i32>} : memref<512x2xbf16, #tpu.memory_space<vmem>>, vector<128x2xbf16>,
    %cst_138 = arith.constant 0.000000e+00 : f32
    %282 = vector.broadcast %cst_138 : f32 to vector<16x2xf32>
    %c224_139 = arith.constant 224 : index
    %c0_140 = arith.constant 0 : index
    %283 = vector.load %arg1[%c224_139, %c0_140] : memref<784x2xbf16, #tpu.memory_space<vmem>>, vector<16x2xbf16>
    %cst_141 = arith.constant 0.000000e+00 : bf16
    %284 = vector.broadcast %cst_141 : bf16 to vector<16x2xbf16>
    %285 = arith.maximumf %283, %284 : vector<16x2xbf16>
    %286 = arith.extf %285 : vector<16x2xbf16> to vector<16x2xf32>
    %287 = arith.addf %282, %286 : vector<16x2xf32>
    %c240_142 = arith.constant 240 : index
    %c0_143 = arith.constant 0 : index
    %288 = vector.load %arg1[%c240_142, %c0_143] : memref<784x2xbf16, #tpu.memory_space<vmem>>, vector<16x2xbf16>
    %cst_144 = arith.constant 0.000000e+00 : bf16
    %289 = vector.broadcast %cst_144 : bf16 to vector<16x2xbf16>
    %290 = arith.maximumf %288, %289 : vector<16x2xbf16>
    %291 = arith.extf %290 : vector<16x2xbf16> to vector<16x2xf32>
    %292 = arith.addf %287, %291 : vector<16x2xf32>
    %c256_145 = arith.constant 256 : index
    %c0_146 = arith.constant 0 : index
    %293 = vector.load %arg1[%c256_145, %c0_146] : memref<784x2xbf16, #tpu.memory_space<vmem>>, vector<16x2xbf16>
    %cst_147 = arith.constant 0.000000e+00 : bf16
    %294 = vector.broadcast %cst_147 : bf16 to vector<16x2xbf16>
    %295 = arith.maximumf %293, %294 : vector<16x2xbf16>
    %296 = arith.extf %295 : vector<16x2xbf16> to vector<16x2xf32>
    %297 = arith.addf %292, %296 : vector<16x2xf32>
    %c272_148 = arith.constant 272 : index
    %c0_149 = arith.constant 0 : index
    %298 = vector.load %arg1[%c272_148, %c0_149] : memref<784x2xbf16, #tpu.memory_space<vmem>>, vector<16x2xbf16>
    %cst_150 = arith.constant 0.000000e+00 : bf16
    %299 = vector.broadcast %cst_150 : bf16 to vector<16x2xbf16>
    %300 = arith.maximumf %298, %299 : vector<16x2xbf16>
    %301 = arith.extf %300 : vector<16x2xbf16> to vector<16x2xf32>
    %302 = arith.addf %297, %301 : vector<16x2xf32>
    %c288_151 = arith.constant 288 : index
    %c0_152 = arith.constant 0 : index
    %303 = vector.load %arg1[%c288_151, %c0_152] : memref<784x2xbf16, #tpu.memory_space<vmem>>, vector<16x2xbf16>
    %cst_153 = arith.constant 0.000000e+00 : bf16
    %304 = vector.broadcast %cst_153 : bf16 to vector<16x2xbf16>
    %305 = arith.maximumf %303, %304 : vector<16x2xbf16>
    %306 = arith.extf %305 : vector<16x2xbf16> to vector<16x2xf32>
    %307 = arith.addf %302, %306 : vector<16x2xf32>
    %c336_154 = arith.constant 336 : index
    %c0_155 = arith.constant 0 : index
    %308 = vector.load %arg1[%c336_154, %c0_155] : memref<784x2xbf16, #tpu.memory_space<vmem>>, vector<16x2xbf16>
    %cst_156 = arith.constant 0.000000e+00 : bf16
    %309 = vector.broadcast %cst_156 : bf16 to vector<16x2xbf16>
    %310 = arith.maximumf %308, %309 : vector<16x2xbf16>
    %311 = arith.extf %310 : vector<16x2xbf16> to vector<16x2xf32>
    %312 = arith.addf %307, %311 : vector<16x2xf32>
    %c352_157 = arith.constant 352 : index
    %c0_158 = arith.constant 0 : index
    %313 = vector.load %arg1[%c352_157, %c0_158] : memref<784x2xbf16, #tpu.memory_space<vmem>>, vector<16x2xbf16>
    %cst_159 = arith.constant 0.000000e+00 : bf16
    %314 = vector.broadcast %cst_159 : bf16 to vector<16x2xbf16>
    %315 = arith.maximumf %313, %314 : vector<16x2xbf16>
    %316 = arith.extf %315 : vector<16x2xbf16> to vector<16x2xf32>
    %317 = arith.addf %312, %316 : vector<16x2xf32>
    %c368_160 = arith.constant 368 : index
    %c0_161 = arith.constant 0 : index
    %318 = vector.load %arg1[%c368_160, %c0_161] : memref<784x2xbf16, #tpu.memory_space<vmem>>, vector<16x2xbf16>
    %cst_162 = arith.constant 0.000000e+00 : bf16
    %319 = vector.broadcast %cst_162 : bf16 to vector<16x2xbf16>
    %320 = arith.maximumf %318, %319 : vector<16x2xbf16>
    %321 = arith.extf %320 : vector<16x2xbf16> to vector<16x2xf32>
    %322 = arith.addf %317, %321 : vector<16x2xf32>
    %c384_163 = arith.constant 384 : index
    %c0_164 = arith.constant 0 : index
    %323 = vector.load %arg1[%c384_163, %c0_164] : memref<784x2xbf16, #tpu.memory_space<vmem>>, vector<16x2xbf16>
    %cst_165 = arith.constant 0.000000e+00 : bf16
    %324 = vector.broadcast %cst_165 : bf16 to vector<16x2xbf16>
    %325 = arith.maximumf %323, %324 : vector<16x2xbf16>
    %326 = arith.extf %325 : vector<16x2xbf16> to vector<16x2xf32>
    %327 = arith.addf %322, %326 : vector<16x2xf32>
    %c400_166 = arith.constant 400 : index
    %c0_167 = arith.constant 0 : index
    %328 = vector.load %arg1[%c400_166, %c0_167] : memref<784x2xbf16, #tpu.memory_space<vmem>>, vector<16x2xbf16>
    %cst_168 = arith.constant 0.000000e+00 : bf16
    %329 = vector.broadcast %cst_168 : bf16 to vector<16x2xbf16>
    %330 = arith.maximumf %328, %329 : vector<16x2xbf16>
    %331 = arith.extf %330 : vector<16x2xbf16> to vector<16x2xf32>
    %332 = arith.addf %327, %331 : vector<16x2xf32>
    %c448_169 = arith.constant 448 : index
    %c0_170 = arith.constant 0 : index
    %333 = vector.load %arg1[%c448_169, %c0_170] : memref<784x2xbf16, #tpu.memory_space<vmem>>, vector<16x2xbf16>
    %cst_171 = arith.constant 0.000000e+00 : bf16
    %334 = vector.broadcast %cst_171 : bf16 to vector<16x2xbf16>
    %335 = arith.maximumf %333, %334 : vector<16x2xbf16>
    %336 = arith.extf %335 : vector<16x2xbf16> to vector<16x2xf32>
    %337 = arith.addf %332, %336 : vector<16x2xf32>
    %c464_172 = arith.constant 464 : index
    %c0_173 = arith.constant 0 : index
    %338 = vector.load %arg1[%c464_172, %c0_173] : memref<784x2xbf16, #tpu.memory_space<vmem>>, vector<16x2xbf16>
    %cst_174 = arith.constant 0.000000e+00 : bf16
    %339 = vector.broadcast %cst_174 : bf16 to vector<16x2xbf16>
    %340 = arith.maximumf %338, %339 : vector<16x2xbf16>
    %341 = arith.extf %340 : vector<16x2xbf16> to vector<16x2xf32>
    %342 = arith.addf %337, %341 : vector<16x2xf32>
    %c480_175 = arith.constant 480 : index
    %c0_176 = arith.constant 0 : index
    %343 = vector.load %arg1[%c480_175, %c0_176] : memref<784x2xbf16, #tpu.memory_space<vmem>>, vector<16x2xbf16>
    %cst_177 = arith.constant 0.000000e+00 : bf16
    %344 = vector.broadcast %cst_177 : bf16 to vector<16x2xbf16>
    %345 = arith.maximumf %343, %344 : vector<16x2xbf16>
    %346 = arith.extf %345 : vector<16x2xbf16> to vector<16x2xf32>
    %347 = arith.addf %342, %346 : vector<16x2xf32>
    %c496_178 = arith.constant 496 : index
    %c0_179 = arith.constant 0 : index
    %348 = vector.load %arg1[%c496_178, %c0_179] : memref<784x2xbf16, #tpu.memory_space<vmem>>, vector<16x2xbf16>
    %cst_180 = arith.constant 0.000000e+00 : bf16
    %349 = vector.broadcast %cst_180 : bf16 to vector<16x2xbf16>
    %350 = arith.maximumf %348, %349 : vector<16x2xbf16>
    %351 = arith.extf %350 : vector<16x2xbf16> to vector<16x2xf32>
    %352 = arith.addf %347, %351 : vector<16x2xf32>
    %c512_181 = arith.constant 512 : index
    %c0_182 = arith.constant 0 : index
    %353 = vector.load %arg1[%c512_181, %c0_182] : memref<784x2xbf16, #tpu.memory_space<vmem>>, vector<16x2xbf16>
    %cst_183 = arith.constant 0.000000e+00 : bf16
    %354 = vector.broadcast %cst_183 : bf16 to vector<16x2xbf16>
    %355 = arith.maximumf %353, %354 : vector<16x2xbf16>
    %356 = arith.extf %355 : vector<16x2xbf16> to vector<16x2xf32>
    %357 = arith.addf %352, %356 : vector<16x2xf32>
    %c560 = arith.constant 560 : index
    %c0_184 = arith.constant 0 : index
    %358 = vector.load %arg1[%c560, %c0_184] : memref<784x2xbf16, #tpu.memory_space<vmem>>, vector<16x2xbf16>
    %cst_185 = arith.constant 0.000000e+00 : bf16
    %359 = vector.broadcast %cst_185 : bf16 to vector<16x2xbf16>
    %360 = arith.maximumf %358, %359 : vector<16x2xbf16>
    %361 = arith.extf %360 : vector<16x2xbf16> to vector<16x2xf32>
    %362 = arith.addf %357, %361 : vector<16x2xf32>
    %c576 = arith.constant 576 : index
    %c0_186 = arith.constant 0 : index
    %363 = vector.load %arg1[%c576, %c0_186] : memref<784x2xbf16, #tpu.memory_space<vmem>>, vector<16x2xbf16>
    %cst_187 = arith.constant 0.000000e+00 : bf16
    %364 = vector.broadcast %cst_187 : bf16 to vector<16x2xbf16>
    %365 = arith.maximumf %363, %364 : vector<16x2xbf16>
    %366 = arith.extf %365 : vector<16x2xbf16> to vector<16x2xf32>
    %367 = arith.addf %362, %366 : vector<16x2xf32>
    %c592 = arith.constant 592 : index
    %c0_188 = arith.constant 0 : index
    %368 = vector.load %arg1[%c592, %c0_188] : memref<784x2xbf16, #tpu.memory_space<vmem>>, vector<16x2xbf16>
    %cst_189 = arith.constant 0.000000e+00 : bf16
    %369 = vector.broadcast %cst_189 : bf16 to vector<16x2xbf16>
    %370 = arith.maximumf %368, %369 : vector<16x2xbf16>
    %371 = arith.extf %370 : vector<16x2xbf16> to vector<16x2xf32>
    %372 = arith.addf %367, %371 : vector<16x2xf32>
    %c608 = arith.constant 608 : index
    %c0_190 = arith.constant 0 : index
    %373 = vector.load %arg1[%c608, %c0_190] : memref<784x2xbf16, #tpu.memory_space<vmem>>, vector<16x2xbf16>
    %cst_191 = arith.constant 0.000000e+00 : bf16
    %374 = vector.broadcast %cst_191 : bf16 to vector<16x2xbf16>
    %375 = arith.maximumf %373, %374 : vector<16x2xbf16>
    %376 = arith.extf %375 : vector<16x2xbf16> to vector<16x2xf32>
    %377 = arith.addf %372, %376 : vector<16x2xf32>
    %c624 = arith.constant 624 : index
    %c0_192 = arith.constant 0 : index
    %378 = vector.load %arg1[%c624, %c0_192] : memref<784x2xbf16, #tpu.memory_space<vmem>>, vector<16x2xbf16>
    %cst_193 = arith.constant 0.000000e+00 : bf16
    %379 = vector.broadcast %cst_193 : bf16 to vector<16x2xbf16>
    %380 = arith.maximumf %378, %379 : vector<16x2xbf16>
    %381 = arith.extf %380 : vector<16x2xbf16> to vector<16x2xf32>
    %382 = arith.addf %377, %381 : vector<16x2xf32>
    %c672 = arith.constant 672 : index
    %c0_194 = arith.constant 0 : index
    %383 = vector.load %arg1[%c672, %c0_194] : memref<784x2xbf16, #tpu.memory_space<vmem>>, vector<16x2xbf16>
    %cst_195 = arith.constant 0.000000e+00 : bf16
    %384 = vector.broadcast %cst_195 : bf16 to vector<16x2xbf16>
    %385 = arith.maximumf %383, %384 : vector<16x2xbf16>
    %386 = arith.extf %385 : vector<16x2xbf16> to vector<16x2xf32>
    %387 = arith.addf %382, %386 : vector<16x2xf32>
    %c688 = arith.constant 688 : index
    %c0_196 = arith.constant 0 : index
    %388 = vector.load %arg1[%c688, %c0_196] : memref<784x2xbf16, #tpu.memory_space<vmem>>, vector<16x2xbf16>
    %cst_197 = arith.constant 0.000000e+00 : bf16
    %389 = vector.broadcast %cst_197 : bf16 to vector<16x2xbf16>
    %390 = arith.maximumf %388, %389 : vector<16x2xbf16>
    %391 = arith.extf %390 : vector<16x2xbf16> to vector<16x2xf32>
    %392 = arith.addf %387, %391 : vector<16x2xf32>
    %c704 = arith.constant 704 : index
    %c0_198 = arith.constant 0 : index
    %393 = vector.load %arg1[%c704, %c0_198] : memref<784x2xbf16, #tpu.memory_space<vmem>>, vector<16x2xbf16>
    %cst_199 = arith.constant 0.000000e+00 : bf16
    %394 = vector.broadcast %cst_199 : bf16 to vector<16x2xbf16>
    %395 = arith.maximumf %393, %394 : vector<16x2xbf16>
    %396 = arith.extf %395 : vector<16x2xbf16> to vector<16x2xf32>
    %397 = arith.addf %392, %396 : vector<16x2xf32>
    %c720 = arith.constant 720 : index
    %c0_200 = arith.constant 0 : index
    %398 = vector.load %arg1[%c720, %c0_200] : memref<784x2xbf16, #tpu.memory_space<vmem>>, vector<16x2xbf16>
    %cst_201 = arith.constant 0.000000e+00 : bf16
    %399 = vector.broadcast %cst_201 : bf16 to vector<16x2xbf16>
    %400 = arith.maximumf %398, %399 : vector<16x2xbf16>
    %401 = arith.extf %400 : vector<16x2xbf16> to vector<16x2xf32>
    %402 = arith.addf %397, %401 : vector<16x2xf32>
    %c736 = arith.constant 736 : index
    %c0_202 = arith.constant 0 : index
    %403 = vector.load %arg1[%c736, %c0_202] : memref<784x2xbf16, #tpu.memory_space<vmem>>, vector<16x2xbf16>
    %cst_203 = arith.constant 0.000000e+00 : bf16
    %404 = vector.broadcast %cst_203 : bf16 to vector<16x2xbf16>
    %405 = arith.maximumf %403, %404 : vector<16x2xbf16>
    %406 = arith.extf %405 : vector<16x2xbf16> to vector<16x2xf32>
    %407 = arith.addf %402, %406 : vector<16x2xf32>
    %cst_204 = arith.constant 4.000000e-02 : f32
    %408 = vector.broadcast %cst_204 : f32 to vector<16x2xf32>
    %409 = arith.mulf %407, %408 : vector<16x2xf32>
    %410 = arith.truncf %409 : vector<16x2xf32> to vector<16x2xbf16>
    %c0_205 = arith.constant 0 : index
    %c0_206 = arith.constant 0 : index
    %411 = vector.load %arg2[%c0_205, %c0_206] : memref<128x16xbf16, #tpu.memory_space<vmem>>, vector<128x16xbf16>
    %cst_207 = arith.constant dense<0.000000e+00> : vector<128x2xf32>
    %412 = tpu.matmul %411, %410, %cst_207 {dimension_numbers = #tpu.dot_dimension_numbers<[1], [0], [0], [1], [0, 0, 1, 1], [], []>} : vector<128x16xbf16>, vector<16x2xbf16>, vector<128x2xf32> -> vector<128x2xf32>
    %c0_208 = arith.constant 0 : index
    %c0_209 = arith.constant 0 : index
    %413 = vector.load %arg3[%c0_208, %c0_209] : memref<128x1xf32, #tpu.memory_space<vmem>>, vector<128x1xf32>
    %414 = vector.broadcast %413 : vector<128x1xf32> to vector<128x2xf32>
    %415 = arith.mulf %412, %414 : vector<128x2xf32>
    %c0_210 = arith.constant 0 : index
    %c0_211 = arith.constant 0 : index
    %416 = vector.load %arg4[%c0_210, %c0_211] : memref<128x1xf32, #tpu.memory_space<vmem>>, vector<128x1xf32>
    %417 = vector.broadcast %416 : vector<128x1xf32> to vector<128x2xf32>
    %418 = arith.addf %415, %417 : vector<128x2xf32>
    %cst_212 = arith.constant 0.000000e+00 : f32
    %419 = vector.broadcast %cst_212 : f32 to vector<128x2xf32>
    %420 = arith.maximumf %418, %419 : vector<128x2xf32>
    %421 = arith.truncf %420 : vector<128x2xf32> to vector<128x2xbf16>
    %c256_213 = arith.constant 256 : index
    %c0_214 = arith.constant 0 : index
    %422 = vector.load %arg9[%c256_213, %c0_214] : memref<512x2xbf16, #tpu.memory_space<vmem>>, vector<128x2xbf16>
    tpu.vector_store %arg9[%c256_213, %c0_214], %421 {strides = array<i32>} : memref<512x2xbf16, #tpu.memory_space<vmem>>, vector<128x2xbf16>,
    %cst_215 = arith.constant 0.000000e+00 : f32
    %423 = vector.broadcast %cst_215 : f32 to vector<16x2xf32>
    %c256_216 = arith.constant 256 : index
    %c0_217 = arith.constant 0 : index
    %424 = vector.load %arg1[%c256_216, %c0_217] : memref<784x2xbf16, #tpu.memory_space<vmem>>, vector<16x2xbf16>
    %cst_218 = arith.constant 0.000000e+00 : bf16
    %425 = vector.broadcast %cst_218 : bf16 to vector<16x2xbf16>
    %426 = arith.maximumf %424, %425 : vector<16x2xbf16>
    %427 = arith.extf %426 : vector<16x2xbf16> to vector<16x2xf32>
    %428 = arith.addf %423, %427 : vector<16x2xf32>
    %c272_219 = arith.constant 272 : index
    %c0_220 = arith.constant 0 : index
    %429 = vector.load %arg1[%c272_219, %c0_220] : memref<784x2xbf16, #tpu.memory_space<vmem>>, vector<16x2xbf16>
    %cst_221 = arith.constant 0.000000e+00 : bf16
    %430 = vector.broadcast %cst_221 : bf16 to vector<16x2xbf16>
    %431 = arith.maximumf %429, %430 : vector<16x2xbf16>
    %432 = arith.extf %431 : vector<16x2xbf16> to vector<16x2xf32>
    %433 = arith.addf %428, %432 : vector<16x2xf32>
    %c288_222 = arith.constant 288 : index
    %c0_223 = arith.constant 0 : index
    %434 = vector.load %arg1[%c288_222, %c0_223] : memref<784x2xbf16, #tpu.memory_space<vmem>>, vector<16x2xbf16>
    %cst_224 = arith.constant 0.000000e+00 : bf16
    %435 = vector.broadcast %cst_224 : bf16 to vector<16x2xbf16>
    %436 = arith.maximumf %434, %435 : vector<16x2xbf16>
    %437 = arith.extf %436 : vector<16x2xbf16> to vector<16x2xf32>
    %438 = arith.addf %433, %437 : vector<16x2xf32>
    %c304_225 = arith.constant 304 : index
    %c0_226 = arith.constant 0 : index
    %439 = vector.load %arg1[%c304_225, %c0_226] : memref<784x2xbf16, #tpu.memory_space<vmem>>, vector<16x2xbf16>
    %cst_227 = arith.constant 0.000000e+00 : bf16
    %440 = vector.broadcast %cst_227 : bf16 to vector<16x2xbf16>
    %441 = arith.maximumf %439, %440 : vector<16x2xbf16>
    %442 = arith.extf %441 : vector<16x2xbf16> to vector<16x2xf32>
    %443 = arith.addf %438, %442 : vector<16x2xf32>
    %c320_228 = arith.constant 320 : index
    %c0_229 = arith.constant 0 : index
    %444 = vector.load %arg1[%c320_228, %c0_229] : memref<784x2xbf16, #tpu.memory_space<vmem>>, vector<16x2xbf16>
    %cst_230 = arith.constant 0.000000e+00 : bf16
    %445 = vector.broadcast %cst_230 : bf16 to vector<16x2xbf16>
    %446 = arith.maximumf %444, %445 : vector<16x2xbf16>
    %447 = arith.extf %446 : vector<16x2xbf16> to vector<16x2xf32>
    %448 = arith.addf %443, %447 : vector<16x2xf32>
    %c368_231 = arith.constant 368 : index
    %c0_232 = arith.constant 0 : index
    %449 = vector.load %arg1[%c368_231, %c0_232] : memref<784x2xbf16, #tpu.memory_space<vmem>>, vector<16x2xbf16>
    %cst_233 = arith.constant 0.000000e+00 : bf16
    %450 = vector.broadcast %cst_233 : bf16 to vector<16x2xbf16>
    %451 = arith.maximumf %449, %450 : vector<16x2xbf16>
    %452 = arith.extf %451 : vector<16x2xbf16> to vector<16x2xf32>
    %453 = arith.addf %448, %452 : vector<16x2xf32>
    %c384_234 = arith.constant 384 : index
    %c0_235 = arith.constant 0 : index
    %454 = vector.load %arg1[%c384_234, %c0_235] : memref<784x2xbf16, #tpu.memory_space<vmem>>, vector<16x2xbf16>
    %cst_236 = arith.constant 0.000000e+00 : bf16
    %455 = vector.broadcast %cst_236 : bf16 to vector<16x2xbf16>
    %456 = arith.maximumf %454, %455 : vector<16x2xbf16>
    %457 = arith.extf %456 : vector<16x2xbf16> to vector<16x2xf32>
    %458 = arith.addf %453, %457 : vector<16x2xf32>
    %c400_237 = arith.constant 400 : index
    %c0_238 = arith.constant 0 : index
    %459 = vector.load %arg1[%c400_237, %c0_238] : memref<784x2xbf16, #tpu.memory_space<vmem>>, vector<16x2xbf16>
    %cst_239 = arith.constant 0.000000e+00 : bf16
    %460 = vector.broadcast %cst_239 : bf16 to vector<16x2xbf16>
    %461 = arith.maximumf %459, %460 : vector<16x2xbf16>
    %462 = arith.extf %461 : vector<16x2xbf16> to vector<16x2xf32>
    %463 = arith.addf %458, %462 : vector<16x2xf32>
    %c416_240 = arith.constant 416 : index
    %c0_241 = arith.constant 0 : index
    %464 = vector.load %arg1[%c416_240, %c0_241] : memref<784x2xbf16, #tpu.memory_space<vmem>>, vector<16x2xbf16>
    %cst_242 = arith.constant 0.000000e+00 : bf16
    %465 = vector.broadcast %cst_242 : bf16 to vector<16x2xbf16>
    %466 = arith.maximumf %464, %465 : vector<16x2xbf16>
    %467 = arith.extf %466 : vector<16x2xbf16> to vector<16x2xf32>
    %468 = arith.addf %463, %467 : vector<16x2xf32>
    %c432_243 = arith.constant 432 : index
    %c0_244 = arith.constant 0 : index
    %469 = vector.load %arg1[%c432_243, %c0_244] : memref<784x2xbf16, #tpu.memory_space<vmem>>, vector<16x2xbf16>
    %cst_245 = arith.constant 0.000000e+00 : bf16
    %470 = vector.broadcast %cst_245 : bf16 to vector<16x2xbf16>
    %471 = arith.maximumf %469, %470 : vector<16x2xbf16>
    %472 = arith.extf %471 : vector<16x2xbf16> to vector<16x2xf32>
    %473 = arith.addf %468, %472 : vector<16x2xf32>
    %c480_246 = arith.constant 480 : index
    %c0_247 = arith.constant 0 : index
    %474 = vector.load %arg1[%c480_246, %c0_247] : memref<784x2xbf16, #tpu.memory_space<vmem>>, vector<16x2xbf16>
    %cst_248 = arith.constant 0.000000e+00 : bf16
    %475 = vector.broadcast %cst_248 : bf16 to vector<16x2xbf16>
    %476 = arith.maximumf %474, %475 : vector<16x2xbf16>
    %477 = arith.extf %476 : vector<16x2xbf16> to vector<16x2xf32>
    %478 = arith.addf %473, %477 : vector<16x2xf32>
    %c496_249 = arith.constant 496 : index
    %c0_250 = arith.constant 0 : index
    %479 = vector.load %arg1[%c496_249, %c0_250] : memref<784x2xbf16, #tpu.memory_space<vmem>>, vector<16x2xbf16>
    %cst_251 = arith.constant 0.000000e+00 : bf16
    %480 = vector.broadcast %cst_251 : bf16 to vector<16x2xbf16>
    %481 = arith.maximumf %479, %480 : vector<16x2xbf16>
    %482 = arith.extf %481 : vector<16x2xbf16> to vector<16x2xf32>
    %483 = arith.addf %478, %482 : vector<16x2xf32>
    %c512_252 = arith.constant 512 : index
    %c0_253 = arith.constant 0 : index
    %484 = vector.load %arg1[%c512_252, %c0_253] : memref<784x2xbf16, #tpu.memory_space<vmem>>, vector<16x2xbf16>
    %cst_254 = arith.constant 0.000000e+00 : bf16
    %485 = vector.broadcast %cst_254 : bf16 to vector<16x2xbf16>
    %486 = arith.maximumf %484, %485 : vector<16x2xbf16>
    %487 = arith.extf %486 : vector<16x2xbf16> to vector<16x2xf32>
    %488 = arith.addf %483, %487 : vector<16x2xf32>
    %c528_255 = arith.constant 528 : index
    %c0_256 = arith.constant 0 : index
    %489 = vector.load %arg1[%c528_255, %c0_256] : memref<784x2xbf16, #tpu.memory_space<vmem>>, vector<16x2xbf16>
    %cst_257 = arith.constant 0.000000e+00 : bf16
    %490 = vector.broadcast %cst_257 : bf16 to vector<16x2xbf16>
    %491 = arith.maximumf %489, %490 : vector<16x2xbf16>
    %492 = arith.extf %491 : vector<16x2xbf16> to vector<16x2xf32>
    %493 = arith.addf %488, %492 : vector<16x2xf32>
    %c544_258 = arith.constant 544 : index
    %c0_259 = arith.constant 0 : index
    %494 = vector.load %arg1[%c544_258, %c0_259] : memref<784x2xbf16, #tpu.memory_space<vmem>>, vector<16x2xbf16>
    %cst_260 = arith.constant 0.000000e+00 : bf16
    %495 = vector.broadcast %cst_260 : bf16 to vector<16x2xbf16>
    %496 = arith.maximumf %494, %495 : vector<16x2xbf16>
    %497 = arith.extf %496 : vector<16x2xbf16> to vector<16x2xf32>
    %498 = arith.addf %493, %497 : vector<16x2xf32>
    %c592_261 = arith.constant 592 : index
    %c0_262 = arith.constant 0 : index
    %499 = vector.load %arg1[%c592_261, %c0_262] : memref<784x2xbf16, #tpu.memory_space<vmem>>, vector<16x2xbf16>
    %cst_263 = arith.constant 0.000000e+00 : bf16
    %500 = vector.broadcast %cst_263 : bf16 to vector<16x2xbf16>
    %501 = arith.maximumf %499, %500 : vector<16x2xbf16>
    %502 = arith.extf %501 : vector<16x2xbf16> to vector<16x2xf32>
    %503 = arith.addf %498, %502 : vector<16x2xf32>
    %c608_264 = arith.constant 608 : index
    %c0_265 = arith.constant 0 : index
    %504 = vector.load %arg1[%c608_264, %c0_265] : memref<784x2xbf16, #tpu.memory_space<vmem>>, vector<16x2xbf16>
    %cst_266 = arith.constant 0.000000e+00 : bf16
    %505 = vector.broadcast %cst_266 : bf16 to vector<16x2xbf16>
    %506 = arith.maximumf %504, %505 : vector<16x2xbf16>
    %507 = arith.extf %506 : vector<16x2xbf16> to vector<16x2xf32>
    %508 = arith.addf %503, %507 : vector<16x2xf32>
    %c624_267 = arith.constant 624 : index
    %c0_268 = arith.constant 0 : index
    %509 = vector.load %arg1[%c624_267, %c0_268] : memref<784x2xbf16, #tpu.memory_space<vmem>>, vector<16x2xbf16>
    %cst_269 = arith.constant 0.000000e+00 : bf16
    %510 = vector.broadcast %cst_269 : bf16 to vector<16x2xbf16>
    %511 = arith.maximumf %509, %510 : vector<16x2xbf16>
    %512 = arith.extf %511 : vector<16x2xbf16> to vector<16x2xf32>
    %513 = arith.addf %508, %512 : vector<16x2xf32>
    %c640 = arith.constant 640 : index
    %c0_270 = arith.constant 0 : index
    %514 = vector.load %arg1[%c640, %c0_270] : memref<784x2xbf16, #tpu.memory_space<vmem>>, vector<16x2xbf16>
    %cst_271 = arith.constant 0.000000e+00 : bf16
    %515 = vector.broadcast %cst_271 : bf16 to vector<16x2xbf16>
    %516 = arith.maximumf %514, %515 : vector<16x2xbf16>
    %517 = arith.extf %516 : vector<16x2xbf16> to vector<16x2xf32>
    %518 = arith.addf %513, %517 : vector<16x2xf32>
    %c656 = arith.constant 656 : index
    %c0_272 = arith.constant 0 : index
    %519 = vector.load %arg1[%c656, %c0_272] : memref<784x2xbf16, #tpu.memory_space<vmem>>, vector<16x2xbf16>
    %cst_273 = arith.constant 0.000000e+00 : bf16
    %520 = vector.broadcast %cst_273 : bf16 to vector<16x2xbf16>
    %521 = arith.maximumf %519, %520 : vector<16x2xbf16>
    %522 = arith.extf %521 : vector<16x2xbf16> to vector<16x2xf32>
    %523 = arith.addf %518, %522 : vector<16x2xf32>
    %c704_274 = arith.constant 704 : index
    %c0_275 = arith.constant 0 : index
    %524 = vector.load %arg1[%c704_274, %c0_275] : memref<784x2xbf16, #tpu.memory_space<vmem>>, vector<16x2xbf16>
    %cst_276 = arith.constant 0.000000e+00 : bf16
    %525 = vector.broadcast %cst_276 : bf16 to vector<16x2xbf16>
    %526 = arith.maximumf %524, %525 : vector<16x2xbf16>
    %527 = arith.extf %526 : vector<16x2xbf16> to vector<16x2xf32>
    %528 = arith.addf %523, %527 : vector<16x2xf32>
    %c720_277 = arith.constant 720 : index
    %c0_278 = arith.constant 0 : index
    %529 = vector.load %arg1[%c720_277, %c0_278] : memref<784x2xbf16, #tpu.memory_space<vmem>>, vector<16x2xbf16>
    %cst_279 = arith.constant 0.000000e+00 : bf16
    %530 = vector.broadcast %cst_279 : bf16 to vector<16x2xbf16>
    %531 = arith.maximumf %529, %530 : vector<16x2xbf16>
    %532 = arith.extf %531 : vector<16x2xbf16> to vector<16x2xf32>
    %533 = arith.addf %528, %532 : vector<16x2xf32>
    %c736_280 = arith.constant 736 : index
    %c0_281 = arith.constant 0 : index
    %534 = vector.load %arg1[%c736_280, %c0_281] : memref<784x2xbf16, #tpu.memory_space<vmem>>, vector<16x2xbf16>
    %cst_282 = arith.constant 0.000000e+00 : bf16
    %535 = vector.broadcast %cst_282 : bf16 to vector<16x2xbf16>
    %536 = arith.maximumf %534, %535 : vector<16x2xbf16>
    %537 = arith.extf %536 : vector<16x2xbf16> to vector<16x2xf32>
    %538 = arith.addf %533, %537 : vector<16x2xf32>
    %c752 = arith.constant 752 : index
    %c0_283 = arith.constant 0 : index
    %539 = vector.load %arg1[%c752, %c0_283] : memref<784x2xbf16, #tpu.memory_space<vmem>>, vector<16x2xbf16>
    %cst_284 = arith.constant 0.000000e+00 : bf16
    %540 = vector.broadcast %cst_284 : bf16 to vector<16x2xbf16>
    %541 = arith.maximumf %539, %540 : vector<16x2xbf16>
    %542 = arith.extf %541 : vector<16x2xbf16> to vector<16x2xf32>
    %543 = arith.addf %538, %542 : vector<16x2xf32>
    %c768 = arith.constant 768 : index
    %c0_285 = arith.constant 0 : index
    %544 = vector.load %arg1[%c768, %c0_285] : memref<784x2xbf16, #tpu.memory_space<vmem>>, vector<16x2xbf16>
    %cst_286 = arith.constant 0.000000e+00 : bf16
    %545 = vector.broadcast %cst_286 : bf16 to vector<16x2xbf16>
    %546 = arith.maximumf %544, %545 : vector<16x2xbf16>
    %547 = arith.extf %546 : vector<16x2xbf16> to vector<16x2xf32>
    %548 = arith.addf %543, %547 : vector<16x2xf32>
    %cst_287 = arith.constant 4.000000e-02 : f32
    %549 = vector.broadcast %cst_287 : f32 to vector<16x2xf32>
    %550 = arith.mulf %548, %549 : vector<16x2xf32>
    %551 = arith.truncf %550 : vector<16x2xf32> to vector<16x2xbf16>
    %c0_288 = arith.constant 0 : index
    %c0_289 = arith.constant 0 : index
    %552 = vector.load %arg2[%c0_288, %c0_289] : memref<128x16xbf16, #tpu.memory_space<vmem>>, vector<128x16xbf16>
    %cst_290 = arith.constant dense<0.000000e+00> : vector<128x2xf32>
    %553 = tpu.matmul %552, %551, %cst_290 {dimension_numbers = #tpu.dot_dimension_numbers<[1], [0], [0], [1], [0, 0, 1, 1], [], []>} : vector<128x16xbf16>, vector<16x2xbf16>, vector<128x2xf32> -> vector<128x2xf32>
    %c0_291 = arith.constant 0 : index
    %c0_292 = arith.constant 0 : index
    %554 = vector.load %arg3[%c0_291, %c0_292] : memref<128x1xf32, #tpu.memory_space<vmem>>, vector<128x1xf32>
    %555 = vector.broadcast %554 : vector<128x1xf32> to vector<128x2xf32>
    %556 = arith.mulf %553, %555 : vector<128x2xf32>
    %c0_293 = arith.constant 0 : index
    %c0_294 = arith.constant 0 : index
    %557 = vector.load %arg4[%c0_293, %c0_294] : memref<128x1xf32, #tpu.memory_space<vmem>>, vector<128x1xf32>
    %558 = vector.broadcast %557 : vector<128x1xf32> to vector<128x2xf32>
    %559 = arith.addf %556, %558 : vector<128x2xf32>
    %cst_295 = arith.constant 0.000000e+00 : f32
    %560 = vector.broadcast %cst_295 : f32 to vector<128x2xf32>
    %561 = arith.maximumf %559, %560 : vector<128x2xf32>
    %562 = arith.truncf %561 : vector<128x2xf32> to vector<128x2xbf16>
    %c384_296 = arith.constant 384 : index
    %c0_297 = arith.constant 0 : index
    %563 = vector.load %arg9[%c384_296, %c0_297] : memref<512x2xbf16, #tpu.memory_space<vmem>>, vector<128x2xbf16>
    tpu.vector_store %arg9[%c384_296, %c0_297], %562 {strides = array<i32>} : memref<512x2xbf16, #tpu.memory_space<vmem>>, vector<128x2xbf16>,
    %c0_298 = arith.constant 0 : index
    %c0_299 = arith.constant 0 : index
    %564 = vector.load %arg5[%c0_298, %c0_299] : memref<768x512xbf16, #tpu.memory_space<vmem>>, vector<768x512xbf16>
    %c0_300 = arith.constant 0 : index
    %c0_301 = arith.constant 0 : index
    %565 = vector.load %arg9[%c0_300, %c0_301] : memref<512x2xbf16, #tpu.memory_space<vmem>>, vector<512x2xbf16>
    %cst_302 = arith.constant dense<0.000000e+00> : vector<768x2xf32>
    %566 = tpu.matmul %564, %565, %cst_302 {dimension_numbers = #tpu.dot_dimension_numbers<[1], [0], [0], [1], [0, 0, 1, 1], [], []>} : vector<768x512xbf16>, vector<512x2xbf16>, vector<768x2xf32> -> vector<768x2xf32>
    %cst_303 = arith.constant 0.000000e+00 : f32
    %567 = vector.broadcast %cst_303 : f32 to vector<768x2xf32>
    %568 = arith.maximumf %566, %567 : vector<768x2xf32>
    %569 = arith.truncf %568 : vector<768x2xf32> to vector<768x2xbf16>
    %c0_304 = arith.constant 0 : index
    %c0_305 = arith.constant 0 : index
    %570 = vector.load %arg6[%c0_304, %c0_305] : memref<16x768xbf16, #tpu.memory_space<vmem>>, vector<16x768xbf16>
    %cst_306 = arith.constant dense<0.000000e+00> : vector<16x2xf32>
    %571 = tpu.matmul %570, %569, %cst_306 {dimension_numbers = #tpu.dot_dimension_numbers<[1], [0], [0], [1], [0, 0, 1, 1], [], []>} : vector<16x768xbf16>, vector<768x2xbf16>, vector<16x2xf32> -> vector<16x2xf32>
    %c0_307 = arith.constant 0 : index
    %c0_308 = arith.constant 0 : index
    %572 = vector.load %arg7[%c0_307, %c0_308] : memref<16x1xf32, #tpu.memory_space<vmem>>, vector<16x1xf32>
    %573 = vector.broadcast %572 : vector<16x1xf32> to vector<16x2xf32>
    %574 = arith.addf %571, %573 : vector<16x2xf32>
    %c0_309 = arith.constant 0 : index
    %c0_310 = arith.constant 0 : index
    %575 = vector.load %arg8[%c0_309, %c0_310] : memref<16x2xf32, #tpu.memory_space<vmem>>, vector<16x2xf32>
    tpu.vector_store %arg8[%c0_309, %c0_310], %574 {strides = array<i32>} : memref<16x2xf32, #tpu.memory_space<vmem>>, vector<16x2xf32>,
    return
  }
  func.func @transform_0(%arg0: i32) -> (i32, i32) {
    %c0_i32 = arith.constant 0 : i32
    %c0_i32_0 = arith.constant 0 : i32
    return %c0_i32, %arg0 : i32, i32
  }
  func.func @transform_1(%arg0: i32) -> (i32, i32) {
    %c0_i32 = arith.constant 0 : i32
    %c0_i32_0 = arith.constant 0 : i32
    %c0_i32_1 = arith.constant 0 : i32
    return %c0_i32, %c0_i32_0 : i32, i32
  }
  func.func @transform_2(%arg0: i32) -> (i32, i32) {
    %c0_i32 = arith.constant 0 : i32
    %c0_i32_0 = arith.constant 0 : i32
    %c0_i32_1 = arith.constant 0 : i32
    return %c0_i32, %c0_i32_0 : i32, i32
  }
  func.func @transform_3(%arg0: i32) -> (i32, i32) {
    %c0_i32 = arith.constant 0 : i32
    %c0_i32_0 = arith.constant 0 : i32
    %c0_i32_1 = arith.constant 0 : i32
    return %c0_i32, %c0_i32_0 : i32, i32
  }
  func.func @transform_4(%arg0: i32) -> (i32, i32) {
    %c0_i32 = arith.constant 0 : i32
    %c0_i32_0 = arith.constant 0 : i32
    %c0_i32_1 = arith.constant 0 : i32
    return %c0_i32, %c0_i32_0 : i32, i32
  }
  func.func @transform_5(%arg0: i32) -> (i32, i32) {
    %c0_i32 = arith.constant 0 : i32
    %c0_i32_0 = arith.constant 0 : i32
    %c0_i32_1 = arith.constant 0 : i32
    return %c0_i32, %c0_i32_0 : i32, i32
  }
  func.func @transform_6(%arg0: i32) -> (i32, i32) {
    %c0_i32 = arith.constant 0 : i32
    %c0_i32_0 = arith.constant 0 : i32
    %c0_i32_1 = arith.constant 0 : i32
    return %c0_i32, %c0_i32_0 : i32, i32
  }
  func.func @transform_7(%arg0: i32) -> (i32, i32) {
    %c0_i32 = arith.constant 0 : i32
    %c0_i32_0 = arith.constant 0 : i32
    return %c0_i32, %arg0 : i32, i32
  }
}

</mosaic_0001>

<bundles_post_ra>
// kernel: tpu_custom_call.1
= control target key start
LH: loop header
LB: loop body
LE: loop exit
PB: predicated region body
PF: predicated region fallthrough
CT: control target
= control target key end

     0   :  { %12 = vsyncpa [#allocation4], 0  ;;  %s5878_s24 = smov [#allocation3]   ;;  %s8216_s0 = inlined_call_operand.vmem [shape: bf16[784,2], index: 0, kind: input, shape index: {}]   ;;  %s8217_s1 = inlined_call_operand.vmem [shape: bf16[128,16], index: 1, kind: input, shape index: {}]   ;;  %s8218_s2 = inlined_call_operand.vmem [shape: f32[128,1], index: 2, kind: input, shape index: {}]   ;;  %s8219_s3 = inlined_call_operand.vmem [shape: f32[128,1], index: 3, kind: input, shape index: {}]   ;;  %s8220_s4 = inlined_call_operand.hbm [shape: bf16[768,512], index: 4, kind: input, shape index: {}]   ;;  %s8221_s5 = inlined_call_operand.vmem [shape: bf16[16,768], index: 5, kind: input, shape index: {}]   ;;  %s8222_s6 = inlined_call_operand.vmem [shape: f32[16,1], index: 6, kind: input, shape index: {}]   ;;  %s8223_s7 = inlined_call_operand.vmem [shape: f32[16,2], index: 7, kind: output, shape index: {}]  }
   0x1   :  { %s26_s25 = sshll.u32 %s5878_s24, 4  ;;  %s5854_s28 = scalar_lea.hbm %s8220_s4, 24576  ;;  %s27_s25 = int_to_ptr.vmem [resolvable:$true] %s26_s25 }
   0x2   :  { %p5855_p0 = scmp.ne.s32.totalorder %s8220_s4, %s5854_s28  ;;  %p5858_p1 = scmp.lt.u32.totalorder %s5854_s28, %s8220_s4 }
   0x4   :  { %p5860_p2 = pnand %p5858_p1, %p5855_p0 }
   0x6   :  { %5863 = shalt.err (!%p5860_p2)
}
   0x7   :  { %s5864_s10 = scalar_lea.vmem %s27_s25, 24576  ;;  %p5869_p4 = scmp.lt.s32.totalorder %s27_s25, %s27_s25 }
   0x8   :  { %p5865_p3 = scmp.ne.s32.totalorder %s27_s25, %s5864_s10  ;;  %p5870_p5 = scmp.lt.s32.totalorder %s5864_s10, %s5864_s10 }
   0xa   :  { %p5871_p6 = por %p5870_p5, %p5869_p4 }
   0xc   :  { %p5872_p7 = pnand %p5871_p6, %p5865_p3 }
   0xe   :  { %5875 = shalt.err (!%p5872_p7)
}
   0xf   :  { %s5879_s11 = smov 256   ;;  %s5880_s12 = smov 16  }
  0x10   :  { %32 = dma.hbm_to_vmem [thread:$0]  %s8220_s4, 24576, %s27_s25, [#allocation4], %s5879_s11, %s5879_s11, %s5880_s12  }
  0x11   :  { %5876 = dma.done.wait [#allocation4], 24576  }
  0x12   :  { %5877 = vsyncadd [#allocation4], 4294942720  ;;  %v8224_v0 = vmov 0   ;;  %v5939_v1 = vld [vmem:[%s8219_s3] sm:$0xff]  ;;  %v5951_v3 = vld [vmem:[%s8219_s3 + $0x8] sm:$0xff]  ;;  %vm300_vm0 = vcmask 130048  }
  0x13   :  { %5506 = vset.pattern.permute.xlu1 %v8224_v0  ;;  %5505 = vset.pattern.permute.xlu0 %v8224_v0  ;;  %v5944_v2 = vld [vmem:[%s8218_s2] sm:$0xff]  ;;  %v5956_v4 = vld [vmem:[%s8218_s2 + $0x8] sm:$0xff]  ;;  %v5963_v5 = vld [vmem:[%s8218_s2 + $0x18] sm:$0xff]  ;;  %vm670_vm1 = vcmask 15360  }
  0x14   :  { %552 = vperm.xlu1 %5506, %v5939_v1   ;;  %440 = vperm.xlu0 %5505, %v5944_v2   ;;  %v5968_v6 = vld [vmem:[%s8218_s2 + $0x10] sm:$0xff]  ;;  %v537_v7 = vld [vmem:[%s8219_s3 + $0x18] sm:$0xff]  ;;  %v695_v15 = vld [vmem:[%s8216_s0 + $0x20] sm:$0xf] }
  0x15   :  { %v536_v8 = vld [vmem:[%s8219_s3 + $0x10] sm:$0xff]  ;;  %v687_v13 = vld [vmem:[%s8216_s0 + $0x18] sm:$0xf]  ;;  %v688_v14 = vld [vmem:[%s8216_s0 + $0x1c] sm:$0xf]  ;;  %v697_v19 = vmax.bf16 %v8224_v0, %v695_v15 }
  0x16   :  { %v679_v9 = vld [vmem:[%s8216_s0 + $0x10] sm:$0xf]  ;;  %v680_v10 = vld [vmem:[%s8216_s0 + $0x14] sm:$0xf]  ;;  %v689_v16 = vmax.bf16 %v8224_v0, %v687_v13  ;;  %v690_v17 = vmax.bf16 %v8224_v0, %v688_v14  ;;  %v696_v18 = vld [vmem:[%s8216_s0 + $0x24] sm:$0xf] }
  0x17   :  { %v681_v11 = vmax.bf16 %v8224_v0, %v679_v9  ;;  %v682_v12 = vmax.bf16 %v8224_v0, %v680_v10  ;;  %v703_v20 = vld [vmem:[%s8216_s0 + $0x28] sm:$0xf]  ;;  %v704_v21 = vld [vmem:[%s8216_s0 + $0x2c] sm:$0xf]  ;;  %v698_v24 = vmax.bf16 %v8224_v0, %v696_v18  ;;  %v711_v26 = vld [vmem:[%s8216_s0 + $0x30] sm:$0xf]  ;;  %v699_v31 = vunpack.c.l.bf16 %v697_v19 }
  0x18   :  { %557 = vperm.xlu1 %5506, %v5951_v3   ;;  %445 = vperm.xlu0 %5505, %v5956_v4   ;;  %v705_v25 = vmax.bf16 %v8224_v0, %v703_v20  ;;  %v712_v27 = vld [vmem:[%s8216_s0 + $0x34] sm:$0xf]  ;;  %v719_v28 = vld [vmem:[%s8216_s0 + $0x48] sm:$0xf]  ;;  %v691_v29 = vunpack.c.l.bf16 %v689_v16  ;;  %v692_v30 = vunpack.c.l.bf16 %v690_v17  ;;  %v706_v32 = vmax.bf16 %v8224_v0, %v704_v21  ;;  %v720_v33 = vld [vmem:[%s8216_s0 + $0x4c] sm:$0xf] }
  0x19   :  { %v683_v22 = vunpack.c.l.bf16 %v681_v11  ;;  %v684_v23 = vunpack.c.l.bf16 %v682_v12  ;;  %v727_v34 = vld [vmem:[%s8216_s0 + $0x50] sm:$0xf]  ;;  %v427_v35 = vld [vmem:[%s8218_s2 + $0x28] sm:$0xff]  ;;  %v426_v36 = vld [vmem:[%s8218_s2 + $0x20] sm:$0xff]  ;;  %v700_v37 = vunpack.c.l.bf16 %v698_v24  ;;  %v713_v39 = vmax.bf16 %v8224_v0, %v711_v26 }
  0x1a   :  { %v707_v38 = vunpack.c.l.bf16 %v705_v25  ;;  %v714_v40 = vmax.bf16 %v8224_v0, %v712_v27  ;;  %v728_v41 = vld [vmem:[%s8216_s0 + $0x54] sm:$0xf]  ;;  %v708_v44 = vunpack.c.l.bf16 %v706_v32  ;;  %v721_v45 = vmax.bf16 %v8224_v0, %v719_v28  ;;  %v735_v46 = vld [vmem:[%s8216_s0 + $0x58] sm:$0xf]  ;;  %v736_v47 = vld [vmem:[%s8216_s0 + $0x5c] sm:$0xf] }
  0x1b   :  { %v693_v42 = vadd.f32 %v691_v29, %v683_v22  ;;  %v694_v43 = vadd.f32 %v692_v30, %v684_v23  ;;  %v715_v48 = vunpack.c.l.bf16 %v713_v39  ;;  %v722_v49 = vmax.bf16 %v8224_v0, %v720_v33  ;;  %v743_v51 = vld [vmem:[%s8216_s0 + $0x60] sm:$0xf]  ;;  %v744_v56 = vld [vmem:[%s8216_s0 + $0x64] sm:$0xf]  ;;  %v751_v57 = vld [vmem:[%s8216_s0 + $0x68] sm:$0xf] }
  0x1c   :  { %455 = vperm.xlu1 %5506, %v5963_v5   ;;  %450 = vperm.xlu0 %5505, %v5968_v6   ;;  %v729_v50 = vmax.bf16 %v8224_v0, %v727_v34  ;;  %v716_v54 = vunpack.c.l.bf16 %v714_v40  ;;  %v730_v55 = vmax.bf16 %v8224_v0, %v728_v41  ;;  %v539_v58 = vld [vmem:[%s8219_s3 + $0x28] sm:$0xff]  ;;  %v538_v59 = vld [vmem:[%s8219_s3 + $0x20] sm:$0xff]  ;;  %v723_v60 = vunpack.c.l.bf16 %v721_v45  ;;  %v775_v24 = vld [vmem:[%s8216_s0 + $0x90] sm:$0xf] }
  0x1d   :  { %v701_v52 = vadd.f32 %v699_v31, %v693_v42  ;;  %v702_v53 = vadd.f32 %v700_v37, %v694_v43  ;;  %v724_v61 = vunpack.c.l.bf16 %v722_v49  ;;  %v737_v62 = vmax.bf16 %v8224_v0, %v735_v46  ;;  %v759_v12 = vld [vmem:[%s8216_s0 + $0x80] sm:$0xf]  ;;  %v760_v13 = vld [vmem:[%s8216_s0 + $0x84] sm:$0xf]  ;;  %v767_v18 = vld [vmem:[%s8216_s0 + $0x88] sm:$0xf] }
  0x1e   :  { %v738_v63 = vmax.bf16 %v8224_v0, %v736_v47  ;;  %v731_v10 = vunpack.c.l.bf16 %v729_v50  ;;  %v6067_v11 = vmax.bf16 %v8224_v0, %v743_v51  ;;  %v732_v14 = vunpack.c.l.bf16 %v730_v55  ;;  %v768_v23 = vld [vmem:[%s8216_s0 + $0x8c] sm:$0xf]  ;;  %v429_v25 = vld [vmem:[%s8218_s2 + $0x38] sm:$0xff]  ;;  %v428_v26 = vld [vmem:[%s8218_s2 + $0x30] sm:$0xff] }
  0x1f   :  { %v710_v9 = vadd.f32 %v708_v44, %v702_v53  ;;  %v739_v15 = vunpack.c.l.bf16 %v737_v62  ;;  %v746_v16 = vmax.bf16 %v8224_v0, %v744_v56  ;;  %v6077_v17 = vmax.bf16 %v8224_v0, %v751_v57  ;;  %v776_v31 = vld [vmem:[%s8216_s0 + $0x94] sm:$0xf]  ;;  %v784_v37 = vld [vmem:[%s8216_s0 + $0x9c] sm:$0xf]  ;;  %v791_v42 = vld [vmem:[%s8216_s0 + $0xa0] sm:$0xf] }
  0x20   :  { %567 = vperm.xlu1 %5506, %v537_v7   ;;  %562 = vperm.xlu0 %5505, %v536_v8   ;;  %v752_v7 = vld [vmem:[%s8216_s0 + $0x6c] sm:$0xf]  ;;  %v709_v8 = vadd.f32 %v707_v38, %v701_v52  ;;  %v740_v21 = vunpack.c.l.bf16 %v738_v63  ;;  %v747_v27 = vunpack.c.l.bf16 %v6067_v11  ;;  %v6099_v29 = vmax.bf16 %v8224_v0, %v759_v12  ;;  %v792_v47 = vld [vmem:[%s8216_s0 + $0xa4] sm:$0xf]  ;;  %v541_v49 = vld [vmem:[%s8219_s3 + $0x38] sm:$0xff] }
  0x21   :  { %v718_v20 = vadd.f32 %v716_v54, %v710_v9  ;;  %v6083_v22 = vmax.bf16 %v8224_v0, %v752_v7  ;;  %v748_v28 = vunpack.c.l.bf16 %v746_v16  ;;  %v6102_v30 = vmax.bf16 %v8224_v0, %v760_v13  ;;  %v540_v50 = vld [vmem:[%s8219_s3 + $0x30] sm:$0xff]  ;;  %v800_v55 = vld [vmem:[%s8216_s0 + $0xbc] sm:$0xf]  ;;  %v815_v9 = vld [vmem:[%s8216_s0 + $0xc8] sm:$0xf] }
  0x22   :  { %v717_v19 = vadd.f32 %v715_v48, %v709_v8  ;;  %v755_v34 = vunpack.c.l.bf16 %v6077_v17  ;;  %v763_v39 = vunpack.c.l.bf16 %v6099_v29  ;;  %v6120_v40 = vmax.bf16 %v8224_v0, %v768_v23  ;;  %v799_v48 = vld [vmem:[%s8216_s0 + $0xb8] sm:$0xf]  ;;  %v431_v16 = vld [vmem:[%s8218_s2 + $0x48] sm:$0xff]  ;;  %v430_v17 = vld [vmem:[%s8218_s2 + $0x40] sm:$0xff] }
  0x23   :  { %v726_v33 = vadd.f32 %v724_v61, %v718_v20  ;;  %v756_v38 = vunpack.c.l.bf16 %v6083_v22  ;;  %v6123_v41 = vmax.bf16 %v8224_v0, %v775_v24  ;;  %v764_v45 = vunpack.c.l.bf16 %v6102_v30  ;;  %v808_v61 = vld [vmem:[%s8216_s0 + $0xc4] sm:$0xf]  ;;  %v824_v22 = vld [vmem:[%s8216_s0 + $0xd4] sm:$0xf] }
  0x24   :  { %465 = vperm.xlu1 %5506, %v427_v35   ;;  %460 = vperm.xlu0 %5505, %v426_v36   ;;  %v725_v32 = vadd.f32 %v723_v60, %v717_v19  ;;  %v6109_v35 = vmax.bf16 %v8224_v0, %v767_v18  ;;  %v783_v36 = vld [vmem:[%s8216_s0 + $0x98] sm:$0xf]  ;;  %v6130_v46 = vmax.bf16 %v8224_v0, %v776_v31  ;;  %v772_v52 = vunpack.c.l.bf16 %v6120_v40  ;;  %v807_v60 = vld [vmem:[%s8216_s0 + $0xc0] sm:$0xf] }
  0x25   :  { %v734_v44 = vadd.f32 %v732_v14, %v726_v33  ;;  %v6147_v53 = vmax.bf16 %v8224_v0, %v783_v36  ;;  %v6150_v54 = vmax.bf16 %v8224_v0, %v784_v37  ;;  %v6168_v7 = vmax.bf16 %v8224_v0, %v792_v47  ;;  %v816_v14 = vld [vmem:[%s8216_s0 + $0xcc] sm:$0xf]  ;;  %v839_v33 = vld [vmem:[%s8216_s0 + $0xf0] sm:$0xf]  ;;  %v847_v40 = vld [vmem:[%s8216_s0 + $0xf8] sm:$0xf] }
  0x26   :  { %v733_v43 = vadd.f32 %v731_v10, %v725_v32  ;;  %v771_v51 = vunpack.c.l.bf16 %v6109_v35  ;;  %v780_v62 = vunpack.c.l.bf16 %v6130_v46  ;;  %v6171_v8 = vmax.bf16 %v8224_v0, %v799_v48  ;;  %v848_v47 = vld [vmem:[%s8216_s0 + $0xfc] sm:$0xf] }
  0x27   :  { %v742_v57 = vadd.f32 %v740_v21, %v734_v44  ;;  %v787_v63 = vunpack.c.l.bf16 %v6147_v53  ;;  %v788_v12 = vunpack.c.l.bf16 %v6150_v54  ;;  %v6178_v13 = vmax.bf16 %v8224_v0, %v800_v55  ;;  %v42_v53 = vld [vmem:[%s8216_s0 + $0x4] sm:$0xf]  ;;  %v545_v54 = vld [vmem:[%s8219_s3 + $0x58] sm:$0xff] }
  0x28   :  { %577 = vperm.xlu1 %5506, %v539_v58   ;;  %572 = vperm.xlu0 %5505, %v538_v59   ;;  %v741_v56 = vadd.f32 %v739_v15, %v733_v43  ;;  %v779_v58 = vunpack.c.l.bf16 %v6123_v41  ;;  %v6157_v59 = vmax.bf16 %v8224_v0, %v791_v42  ;;  %v823_v15 = vld [vmem:[%s8216_s0 + $0xd0] sm:$0xf]  ;;  %v796_v19 = vunpack.c.l.bf16 %v6168_v7  ;;  %v543_v42 = vld [vmem:[%s8219_s3 + $0x48] sm:$0xff] }
  0x29   :  { %v750_v11 = vadd.f32 %v748_v28, %v742_v57  ;;  %v6195_v20 = vmax.bf16 %v8224_v0, %v807_v60  ;;  %v6198_v21 = vmax.bf16 %v8224_v0, %v808_v61  ;;  %v832_v28 = vld [vmem:[%s8216_s0 + $0xdc] sm:$0xf]  ;;  %v804_v29 = vunpack.c.l.bf16 %v6178_v13  ;;  %v856_v57 = vld [vmem:[%s8216_s0 + $0x104] sm:$0xf]  ;;  %v432_v41 = vld [vmem:[%s8218_s2 + $0x50] sm:$0xff] }
  0x2a   :  { %v749_v10 = vadd.f32 %v747_v27, %v741_v56  ;;  %v795_v18 = vunpack.c.l.bf16 %v6157_v59  ;;  %v831_v27 = vld [vmem:[%s8216_s0 + $0xd8] sm:$0xf]  ;;  %v6216_v31 = vmax.bf16 %v8224_v0, %v816_v14  ;;  %v6219_v32 = vmax.bf16 %v8224_v0, %v823_v15  ;;  %v855_v56 = vld [vmem:[%s8216_s0 + $0x100] sm:$0xf] }
  0x2b   :  { %v758_v24 = vadd.f32 %v756_v38, %v750_v11  ;;  %v811_v30 = vunpack.c.l.bf16 %v6195_v20  ;;  %v812_v36 = vunpack.c.l.bf16 %v6198_v21  ;;  %v6226_v37 = vmax.bf16 %v8224_v0, %v824_v22  ;;  %v840_v38 = vld [vmem:[%s8216_s0 + $0xf4] sm:$0xf]  ;;  %v433_v22 = vld [vmem:[%s8218_s2 + $0x58] sm:$0xff] }
  0x2c   :  { %475 = vperm.xlu1 %5506, %v429_v25   ;;  %470 = vperm.xlu0 %5505, %v428_v26   ;;  %v757_v23 = vadd.f32 %v755_v34, %v749_v10  ;;  %v803_v25 = vunpack.c.l.bf16 %v6171_v8  ;;  %v6205_v26 = vmax.bf16 %v8224_v0, %v815_v9  ;;  %v820_v44 = vunpack.c.l.bf16 %v6216_v31  ;;  %v863_v9 = vld [vmem:[%s8216_s0 + $0x108] sm:$0xf]  ;;  %v5507_v8 = vld [vmem:[%s8217_s1] sm:$0xff]  }
  0x2d   :  { %v766_v35 = vadd.f32 %v764_v45, %v758_v24  ;;  %v6243_v45 = vmax.bf16 %v8224_v0, %v831_v27  ;;  %v6246_v46 = vmax.bf16 %v8224_v0, %v832_v28  ;;  %v6253_v55 = vmax.bf16 %v8224_v0, %v839_v33  ;;  %5293 = vmatprep.mubr.msk.bf16.mxu0 %vm300_vm0, %v5507_v8 }
  0x2e   :  { %v765_v34 = vadd.f32 %v763_v39, %v757_v23  ;;  %v542_v39 = vld [vmem:[%s8219_s3 + $0x40] sm:$0xff]  ;;  %v819_v43 = vunpack.c.l.bf16 %v6205_v26  ;;  %v828_v60 = vunpack.c.l.bf16 %v6226_v37  ;;  %v6276_v15 = vmax.bf16 %v8224_v0, %v848_v47  ;;  %v544_v47 = vld [vmem:[%s8219_s3 + $0x50] sm:$0xff] }
  0x2f   :  { %v835_v61 = vunpack.c.l.bf16 %v6243_v45  ;;  %v836_v14 = vunpack.c.l.bf16 %v6246_v46  ;;  %v6293_v23 = vmax.bf16 %v8224_v0, %v855_v56  ;;  %v6296_v24 = vmax.bf16 %v8224_v0, %v856_v57  ;;  %v546_v26 = vld [vmem:[%s8219_s3 + $0x60] sm:$0xff]  ;;  %v98_v46 = vld [vmem:[%s8216_s0 + $0x4c] sm:$0xf] }
  0x30   :  { %587 = vperm.xlu1 %5506, %v541_v49   ;;  %582 = vperm.xlu0 %5505, %v540_v50   ;;  %v773_v48 = vadd.f32 %v771_v51, %v765_v34  ;;  %v774_v49 = vadd.f32 %v772_v52, %v766_v35  ;;  %v827_v50 = vunpack.c.l.bf16 %v6219_v32  ;;  %v6264_v51 = vmax.bf16 %v8224_v0, %v840_v38  ;;  %v872_v35 = vld [vmem:[%s8216_s0 + $0x114] sm:$0xf]  ;;  %v41_v38 = vld [vmem:[%s8216_s0] sm:$0xf]  ;;  %v90_v32 = vld [vmem:[%s8216_s0 + $0x44] sm:$0xf] }
  0x31   :  { %v6267_v52 = vmax.bf16 %v8224_v0, %v847_v40  ;;  %v6304_v34 = vmax.bf16 %v8224_v0, %v863_v9  ;;  %v860_v56 = vunpack.c.l.bf16 %v6296_v24  ;;  %v50_v9 = vld [vmem:[%s8216_s0 + $0xc] sm:$0xf]  ;;  %v6346_v59 = vmax.bf16 %v8224_v0, %v872_v35  ;;  %v73_v35 = vld [vmem:[%s8216_s0 + $0x20] sm:$0xf]  ;;  %v548_v24 = vld [vmem:[%s8219_s3 + $0x70] sm:$0xff] }
  0x32   :  { %v781_v10 = vadd.f32 %v779_v58, %v773_v48  ;;  %v782_v11 = vadd.f32 %v780_v62, %v774_v49  ;;  %v843_v58 = vunpack.c.l.bf16 %v6253_v55  ;;  %v844_v62 = vunpack.c.l.bf16 %v6264_v51 }
  0x33   :  { %v851_v33 = vunpack.c.l.bf16 %v6267_v52  ;;  %v43_v7 = vmax.bf16 %v8224_v0, %v41_v38 }
  0x34   :  { %485 = vperm.xlu1 %5506, %v431_v16   ;;  %480 = vperm.xlu0 %5505, %v430_v17   ;;  %v864_v16 = vld [vmem:[%s8216_s0 + $0x10c] sm:$0xf]  ;;  %v871_v17 = vld [vmem:[%s8216_s0 + $0x110] sm:$0xf]  ;;  %v789_v27 = vadd.f32 %v787_v63, %v781_v10  ;;  %v790_v28 = vadd.f32 %v788_v12, %v782_v11  ;;  %v852_v63 = vunpack.c.l.bf16 %v6276_v15  ;;  %v859_v12 = vunpack.c.l.bf16 %v6293_v23  ;;  %v114_v15 = vld [vmem:[%s8216_s0 + $0x5c] sm:$0xf] }
  0x35   :  { %v6321_v40 = vmax.bf16 %v8224_v0, %v864_v16  ;;  %v57_v10 = vld [vmem:[%s8216_s0 + $0x10] sm:$0xf]  ;;  %v65_v16 = vld [vmem:[%s8216_s0 + $0x18] sm:$0xf]  ;;  %v45_v38 = vunpack.c.l.bf16 %v43_v7  ;;  %v52_v11 = vmax.bf16 %v8224_v0, %v50_v9 }
  0x36   :  { %v797_v48 = vadd.f32 %v795_v18, %v789_v27  ;;  %v798_v49 = vadd.f32 %v796_v19, %v790_v28  ;;  %v44_v18 = vmax.bf16 %v8224_v0, %v42_v53  ;;  %v58_v19 = vld [vmem:[%s8216_s0 + $0x14] sm:$0xf]  ;;  %v59_v57 = vmax.bf16 %v8224_v0, %v57_v10 }
  0x37   :  { %v54_v20 = vunpack.c.l.bf16 %v52_v11  ;;  %v67_v21 = vmax.bf16 %v8224_v0, %v65_v16  ;;  %v547_v11 = vld [vmem:[%s8219_s3 + $0x68] sm:$0xff]  ;;  %v82_v16 = vld [vmem:[%s8216_s0 + $0x3c] sm:$0xf] }
  0x38   :  { %597 = vperm.xlu1 %5506, %v543_v42   ;;  %592 = vperm.xlu0 %5505, %v542_v39   ;;  %v6324_v42 = vmax.bf16 %v8224_v0, %v871_v17  ;;  %v49_v39 = vld [vmem:[%s8216_s0 + $0x8] sm:$0xf]  ;;  %v66_v17 = vld [vmem:[%s8216_s0 + $0x1c] sm:$0xf]  ;;  %v46_v53 = vunpack.c.l.bf16 %v44_v18 }
  0x39   :  { %v51_v28 = vmax.bf16 %v8224_v0, %v49_v39  ;;  %v60_v39 = vmax.bf16 %v8224_v0, %v58_v19  ;;  %v69_v19 = vunpack.c.l.bf16 %v67_v21  ;;  %v105_v21 = vld [vmem:[%s8216_s0 + $0x50] sm:$0xf] }
  0x3a   :  { %v875_v27 = vunpack.c.l.bf16 %v6324_v42  ;;  %v107_v52 = vmax.bf16 %v8224_v0, %v105_v21  ;;  %v138_v42 = vld [vmem:[%s8216_s0 + $0x84] sm:$0xf] }
  0x3b   :  { %v62_v18 = vunpack.c.l.bf16 %v60_v39  ;;  %v437_v39 = vld [vmem:[%s8218_s2 + $0x78] sm:$0xff] }
  0x3c   :  { %495 = vperm.xlu1 %5506, %v433_v22   ;;  %490 = vperm.xlu0 %5505, %v432_v41   ;;  %v805_v22 = vadd.f32 %v803_v25, %v797_v48  ;;  %v806_v41 = vadd.f32 %v804_v29, %v798_v49  ;;  %v53_v29 = vunpack.c.l.bf16 %v51_v28  ;;  %v5508_v48 = vld [vmem:[%s8217_s1] sm:$0xff]   ;;  %v435_v49 = vld [vmem:[%s8218_s2 + $0x68] sm:$0xff]  ;;  %v109_v23 = vunpack.c.l.bf16 %v107_v52 }
  0x3d   :  { %5311 = vmatprep.mubr.msk.bf16.mxu1 %vm300_vm0, %v5508_v48  ;;  %v162_v52 = vld [vmem:[%s8216_s0 + $0xac] sm:$0xf] }
  0x3e   :  { %v813_v13 = vadd.f32 %v811_v30, %v805_v22  ;;  %v814_v25 = vadd.f32 %v812_v36, %v806_v41  ;;  %v61_v30 = vunpack.c.l.bf16 %v59_v57  ;;  %v68_v36 = vmax.bf16 %v8224_v0, %v66_v17  ;;  %v81_v57 = vld [vmem:[%s8216_s0 + $0x38] sm:$0xf] }
  0x3f   :  { %v55_v7 = vadd.f32 %v53_v29, %v45_v38  ;;  %v876_v41 = vunpack.c.l.bf16 %v6346_v59  ;;  %v89_v38 = vld [vmem:[%s8216_s0 + $0x40] sm:$0xf]  ;;  %v97_v29 = vld [vmem:[%s8216_s0 + $0x48] sm:$0xf] }
  0x40   :  { %607 = vperm.xlu1 %5506, %v545_v54   ;;  %602 = vperm.xlu0 %5505, %v544_v47   ;;  %v434_v54 = vld [vmem:[%s8218_s2 + $0x60] sm:$0xff]  ;;  %v821_v9 = vadd.f32 %v819_v43, %v813_v13  ;;  %v822_v10 = vadd.f32 %v820_v44, %v814_v25  ;;  %v56_v43 = vadd.f32 %v54_v20, %v46_v53  ;;  %v70_v31 = vunpack.c.l.bf16 %v68_v36  ;;  %v436_v36 = vld [vmem:[%s8218_s2 + $0x70] sm:$0xff]  ;;  %v145_v59 = vld [vmem:[%s8216_s0 + $0x88] sm:$0xf] }
  0x41   :  { %v74_v47 = vld [vmem:[%s8216_s0 + $0x24] sm:$0xf]  ;;  %v75_v44 = vmax.bf16 %v8224_v0, %v73_v35  ;;  %v63_v28 = vadd.f32 %v61_v30, %v55_v7  ;;  %v83_v13 = vmax.bf16 %v8224_v0, %v81_v57  ;;  %v84_v25 = vmax.bf16 %v8224_v0, %v82_v16  ;;  %v113_v57 = vld [vmem:[%s8216_s0 + $0x58] sm:$0xf]  ;;  %v122_v16 = vld [vmem:[%s8216_s0 + $0x74] sm:$0xf] }
  0x42   :  { %v829_v17 = vadd.f32 %v827_v50, %v821_v9  ;;  %v830_v22 = vadd.f32 %v828_v60, %v822_v10  ;;  %v64_v35 = vadd.f32 %v62_v18, %v56_v43  ;;  %v76_v53 = vmax.bf16 %v8224_v0, %v74_v47  ;;  %v106_v18 = vld [vmem:[%s8216_s0 + $0x54] sm:$0xf] }
  0x43   :  { %v77_v8 = vunpack.c.l.bf16 %v75_v44  ;;  %v71_v60 = vadd.f32 %v69_v19, %v63_v28  ;;  %v91_v45 = vmax.bf16 %v8224_v0, %v89_v38  ;;  %v86_v30 = vunpack.c.l.bf16 %v84_v25 }
  0x44   :  { %505 = vperm.xlu1 %5506, %v435_v49   ;;  %500 = vperm.xlu0 %5505, %v434_v54   ;;  %v837_v37 = vadd.f32 %v835_v61, %v829_v17  ;;  %v838_v50 = vadd.f32 %v836_v14, %v830_v22  ;;  %v72_v48 = vadd.f32 %v70_v31, %v64_v35  ;;  %v78_v49 = vunpack.c.l.bf16 %v76_v53  ;;  %v549_v17 = vld [vmem:[%s8219_s3 + $0x78] sm:$0xff] }
  0x45   :  { %v85_v54 = vunpack.c.l.bf16 %v83_v13  ;;  %v79_v20 = vadd.f32 %v77_v8, %v71_v60  ;;  %v92_v9 = vmax.bf16 %v8224_v0, %v90_v32  ;;  %v93_v10 = vunpack.c.l.bf16 %v91_v45  ;;  %v129_v32 = vld [vmem:[%s8216_s0 + $0x78] sm:$0xf] }
  0x46   :  { %v845_v61 = vadd.f32 %v843_v58, %v837_v37  ;;  %v846_v14 = vadd.f32 %v844_v62, %v838_v50  ;;  %v80_v47 = vadd.f32 %v78_v49, %v72_v48  ;;  %v99_v55 = vmax.bf16 %v8224_v0, %v97_v29  ;;  %v137_v49 = vld [vmem:[%s8216_s0 + $0x80] sm:$0xf] }
  0x47   :  { %v87_v62 = vadd.f32 %v85_v54, %v79_v20  ;;  %v100_v7 = vmax.bf16 %v8224_v0, %v98_v46  ;;  %v108_v28 = vmax.bf16 %v8224_v0, %v106_v18  ;;  %v8227_v35 = vunpack.c.l.bf16 %v6321_v40  ;;  %v161_v18 = vld [vmem:[%s8216_s0 + $0xa8] sm:$0xf] }
  0x48   :  { %617 = vperm.xlu1 %5506, %v547_v11   ;;  %612 = vperm.xlu0 %5505, %v546_v26   ;;  %v853_v51 = vadd.f32 %v851_v33, %v845_v61  ;;  %v854_v58 = vadd.f32 %v852_v63, %v846_v14  ;;  %v88_v11 = vadd.f32 %v86_v30, %v80_v47  ;;  %v94_v26 = vunpack.c.l.bf16 %v92_v9  ;;  %v121_v33 = vld [vmem:[%s8216_s0 + $0x70] sm:$0xf]  ;;  %v146_v30 = vld [vmem:[%s8216_s0 + $0x8c] sm:$0xf] }
  0x49   :  { %v101_v43 = vunpack.c.l.bf16 %v99_v55  ;;  %v95_v31 = vadd.f32 %v93_v10, %v87_v62  ;;  %v102_v44 = vunpack.c.l.bf16 %v100_v7  ;;  %v116_v13 = vmax.bf16 %v8224_v0, %v114_v15  ;;  %v153_v10 = vld [vmem:[%s8216_s0 + $0x90] sm:$0xf]  ;;  %v154_v55 = vld [vmem:[%s8216_s0 + $0x94] sm:$0xf] }
  0x4a   :  { %v861_v63 = vadd.f32 %v859_v12, %v853_v51  ;;  %v862_v19 = vadd.f32 %v860_v56, %v854_v58  ;;  %v96_v22 = vadd.f32 %v94_v26, %v88_v11  ;;  %v115_v12 = vmax.bf16 %v8224_v0, %v113_v57 }
  0x4b   :  { %v8226_v56 = vunpack.c.l.bf16 %v6304_v34  ;;  %v103_v8 = vadd.f32 %v101_v43, %v95_v31  ;;  %v110_v50 = vunpack.c.l.bf16 %v108_v28  ;;  %v123_v25 = vmax.bf16 %v8224_v0, %v121_v33  ;;  %v130_v34 = vld [vmem:[%s8216_s0 + $0x7c] sm:$0xf]  ;;  %v5509_v31 = vld [vmem:[%s8217_s1 + $0x8] sm:$0xff]   ;;  %v177_v28 = vld [vmem:[%s8216_s0 + $0xb8] sm:$0xf] }
  0x4c   :  { %515 = vperm.xlu1 %5506, %v437_v39   ;;  %510 = vperm.xlu0 %5505, %v436_v36   ;;  %v870_v53 = vadd.f32 %v8227_v35, %v862_v19  ;;  %v104_v37 = vadd.f32 %v102_v44, %v96_v22  ;;  %v117_v60 = vunpack.c.l.bf16 %v115_v12  ;;  %v118_v48 = vunpack.c.l.bf16 %v116_v13  ;;  %v5512_v12 = vld [vmem:[%s8217_s1 + $0x10] sm:$0xff]   ;;  %v185_v35 = vld [vmem:[%s8216_s0 + $0xc0] sm:$0xf] }
  0x4d   :  { %v869_v38 = vadd.f32 %v8226_v56, %v861_v63  ;;  %v111_v39 = vadd.f32 %v109_v23, %v103_v8  ;;  %v124_v45 = vmax.bf16 %v8224_v0, %v122_v16  ;;  %v125_v46 = vunpack.c.l.bf16 %v123_v25  ;;  %v178_v23 = vld [vmem:[%s8216_s0 + $0xbc] sm:$0xf] }
  0x4e   :  { %v878_v29 = vadd.f32 %v876_v41, %v870_v53  ;;  %v112_v54 = vadd.f32 %v110_v50, %v104_v37  ;;  %v131_v61 = vmax.bf16 %v8224_v0, %v129_v32  ;;  %v132_v20 = vmax.bf16 %v8224_v0, %v130_v34  ;;  %v186_v37 = vld [vmem:[%s8216_s0 + $0xc4] sm:$0xf] }
  0x4f   :  { %v877_v40 = vadd.f32 %v875_v27, %v869_v38  ;;  %v119_v14 = vadd.f32 %v117_v60, %v111_v39  ;;  %v126_v36 = vunpack.c.l.bf16 %v124_v45  ;;  %v139_v9 = vmax.bf16 %v8224_v0, %v137_v49  ;;  %v201_v49 = vld [vmem:[%s8216_s0 + $0xe0] sm:$0xf] }
  0x50   :  { %627 = vperm.xlu1 %5506, %v549_v17   ;;  %622 = vperm.xlu0 %5505, %v548_v24   ;;  %v880_v41 = vmul.f32 0.04, %v878_v29  ;;  %v120_v21 = vadd.f32 %v118_v48, %v112_v54  ;;  %v133_v47 = vunpack.c.l.bf16 %v131_v61  ;;  %v134_v62 = vunpack.c.l.bf16 %v132_v20  ;;  %v202_v54 = vld [vmem:[%s8216_s0 + $0xe4] sm:$0xf] }
  0x51   :  { %v879_v27 = vmul.f32 0.04, %v877_v40  ;;  %v127_v58 = vadd.f32 %v125_v46, %v119_v14  ;;  %v140_v7 = vmax.bf16 %v8224_v0, %v138_v42  ;;  %v141_v11 = vunpack.c.l.bf16 %v139_v9 }
  0x52   :  { %v128_v57 = vadd.f32 %v126_v36, %v120_v21  ;;  %v147_v26 = vmax.bf16 %v8224_v0, %v145_v59  ;;  %v148_v43 = vmax.bf16 %v8224_v0, %v146_v30  ;;  %v155_v63 = vmax.bf16 %v8224_v0, %v153_v10  ;;  %v209_v59 = vld [vmem:[%s8216_s0 + $0xe8] sm:$0xf]  ;;  %v210_v30 = vld [vmem:[%s8216_s0 + $0xec] sm:$0xf]  ;;  %v1174_v21 = vld [vmem:[%s8219_s3 + $0x18] sm:$0xff] }
  0x53   :  { %v881_v51 = vpack.c.bf16 %v880_v41, %v879_v27  ;;  %v135_v15 = vadd.f32 %v133_v47, %v127_v58  ;;  %v142_v33 = vunpack.c.l.bf16 %v140_v7  ;;  %v156_v19 = vmax.bf16 %v8224_v0, %v154_v55  ;;  %v217_v10 = vld [vmem:[%s8216_s0 + $0xf0] sm:$0xf]  ;;  %v218_v55 = vld [vmem:[%s8216_s0 + $0xf4] sm:$0xf] }
  0x54   :  { %1082 = vperm.xlu1 %5506, %v5956_v4   ;;  %1077 = vperm.xlu0 %5505, %v5944_v2   ;;  %v169_v2 = vld [vmem:[%s8216_s0 + $0xb0] sm:$0xf]  ;;  %v170_v4 = vld [vmem:[%s8216_s0 + $0xb4] sm:$0xf]  ;;  %v136_v44 = vadd.f32 %v134_v62, %v128_v57  ;;  %v149_v16 = vunpack.c.l.bf16 %v147_v26  ;;  %v150_v17 = vunpack.c.l.bf16 %v148_v43  ;;  %v163_v22 = vmax.bf16 %v8224_v0, %v161_v18  ;;  %v225_v57 = vld [vmem:[%s8216_s0 + $0xf8] sm:$0xf] }
  0x55   :  { %5309 = vmatprep.subr.bf16.mxu1 %v881_v51  ;;  %v143_v24 = vadd.f32 %v141_v11, %v135_v15  ;;  %v157_v56 = vunpack.c.l.bf16 %v155_v63  ;;  %v164_v38 = vmax.bf16 %v8224_v0, %v162_v52  ;;  %v158_v8 = vunpack.c.l.bf16 %v156_v19  ;;  %v226_v11 = vld [vmem:[%s8216_s0 + $0xfc] sm:$0xf]  ;;  %v5516_v26 = vld [vmem:[%s8217_s1 + $0x20] sm:$0xff]  }
  0x56   :  { %5310 = vmatpush3.bf16.msra.mxu1 %v881_v51  ;;  %v144_v53 = vadd.f32 %v142_v33, %v136_v44  ;;  %v171_v13 = vmax.bf16 %v8224_v0, %v169_v2  ;;  %v172_v32 = vmax.bf16 %v8224_v0, %v170_v4  ;;  %v165_v60 = vunpack.c.l.bf16 %v163_v22  ;;  %v5513_v51 = vld [vmem:[%s8217_s1 + $0x18] sm:$0xff]   ;;  %v233_v63 = vld [vmem:[%s8216_s0 + $0x100] sm:$0xf]  ;;  %v234_v44 = vld [vmem:[%s8216_s0 + $0x104] sm:$0xf] }
  0x57   :  { %v151_v50 = vadd.f32 %v149_v16, %v143_v24  ;;  %v179_v25 = vmax.bf16 %v8224_v0, %v177_v28  ;;  %v180_v34 = vmax.bf16 %v8224_v0, %v178_v23  ;;  %v166_v29 = vunpack.c.l.bf16 %v164_v38  ;;  %v1064_v16 = vld [vmem:[%s8218_s2 + $0x28] sm:$0xff]  ;;  %v1315_v24 = vld [vmem:[%s8216_s0 + $0x70] sm:$0xf]  ;;  %v1323_v38 = vld [vmem:[%s8216_s0 + $0x78] sm:$0xf] }
  0x58   :  { %1194 = vperm.xlu1 %5506, %v5951_v3   ;;  %1189 = vperm.xlu0 %5505, %v5939_v1   ;;  %v193_v1 = vld [vmem:[%s8216_s0 + $0xc8] sm:$0xf]  ;;  %v194_v3 = vld [vmem:[%s8216_s0 + $0xcc] sm:$0xf]  ;;  %v152_v40 = vadd.f32 %v150_v17, %v144_v53  ;;  %v173_v39 = vunpack.c.l.bf16 %v171_v13  ;;  %v187_v48 = vmax.bf16 %v8224_v0, %v185_v35  ;;  %v174_v46 = vunpack.c.l.bf16 %v172_v32  ;;  %v1063_v17 = vld [vmem:[%s8218_s2 + $0x20] sm:$0xff] }
  0x59   :  { %5312 = vmatmul.mubr.msk.bf16.vlgmr.msra.gmra.mrb[0].mxu1 %vm300_vm0, %v5509_v31  ;;  %v159_v45 = vadd.f32 %v157_v56, %v151_v50  ;;  %v181_v61 = vunpack.c.l.bf16 %v179_v25  ;;  %v6583_v42 = vmax.bf16 %v8224_v0, %v186_v37  ;;  %v182_v41 = vunpack.c.l.bf16 %v180_v34  ;;  %v1316_v56 = vld [vmem:[%s8216_s0 + $0x74] sm:$0xf]  ;;  %v1176_v32 = vld [vmem:[%s8219_s3 + $0x28] sm:$0xff]  ;;  %v1324_v37 = vld [vmem:[%s8216_s0 + $0x7c] sm:$0xf] }
  0x5a   :  { %5315 = vmatprep.mubr.msk.bf16.mxu1 %vm300_vm0, %v5512_v12  ;;  %v160_v27 = vadd.f32 %v158_v8, %v152_v40  ;;  %v6591_v14 = vmax.bf16 %v8224_v0, %v193_v1  ;;  %v6594_v20 = vmax.bf16 %v8224_v0, %v194_v3  ;;  %v189_v36 = vunpack.c.l.bf16 %v187_v48  ;;  %v5517_v1 = vld [vmem:[%s8217_s1 + $0x28] sm:$0xff]   ;;  %v1175_v3 = vld [vmem:[%s8219_s3 + $0x20] sm:$0xff] }
  0x5b   :  { %v6606_v47 = vmax.bf16 %v8224_v0, %v201_v49  ;;  %v6609_v9 = vmax.bf16 %v8224_v0, %v202_v54  ;;  %v190_v62 = vunpack.c.l.bf16 %v6583_v42  ;;  %v6623_v18 = vmax.bf16 %v8224_v0, %v209_v59  ;;  %v1331_v40 = vld [vmem:[%s8216_s0 + $0x80] sm:$0xf]  ;;  %v1332_v54 = vld [vmem:[%s8216_s0 + $0x84] sm:$0xf] }
  0x5c   :  { %1092 = vperm.xlu1 %5506, %v5963_v5   ;;  %1087 = vperm.xlu0 %5505, %v5968_v6   ;;  %v1173_v5 = vld [vmem:[%s8219_s3 + $0x10] sm:$0xff]  ;;  %v167_v6 = vadd.f32 %v165_v60, %v159_v45  ;;  %v168_v58 = vadd.f32 %v166_v29, %v160_v27  ;;  %v197_v7 = vunpack.c.l.bf16 %v6591_v14  ;;  %v198_v52 = vunpack.c.l.bf16 %v6594_v20  ;;  %v1339_v45 = vld [vmem:[%s8216_s0 + $0x88] sm:$0xf]  ;;  %v1340_v27 = vld [vmem:[%s8216_s0 + $0x8c] sm:$0xf] }
  0x5d   :  { %v205_v15 = vunpack.c.l.bf16 %v6606_v47  ;;  %v6637_v33 = vmax.bf16 %v8224_v0, %v210_v30  ;;  %v206_v2 = vunpack.c.l.bf16 %v6609_v9  ;;  %v6644_v4 = vmax.bf16 %v8224_v0, %v217_v10  ;;  %v5520_v14 = vld [vmem:[%s8217_s1 + $0x30] sm:$0xff]  }
  0x5e   :  { %v175_v43 = vadd.f32 %v173_v39, %v167_v6  ;;  %v176_v19 = vadd.f32 %v174_v46, %v168_v58  ;;  %v6647_v31 = vmax.bf16 %v8224_v0, %v218_v55  ;;  %v213_v28 = vunpack.c.l.bf16 %v6623_v18  ;;  %v1347_v9 = vld [vmem:[%s8216_s0 + $0x90] sm:$0xf]  ;;  %v1066_v55 = vld [vmem:[%s8218_s2 + $0x38] sm:$0xff] }
  0x5f   :  { %v6660_v23 = vmax.bf16 %v8224_v0, %v225_v57  ;;  %v6663_v12 = vmax.bf16 %v8224_v0, %v226_v11  ;;  %v214_v53 = vunpack.c.l.bf16 %v6637_v33  ;;  %v221_v8 = vunpack.c.l.bf16 %v6644_v4 }
  0x60   :  { %1204 = vperm.xlu1 %5506, %v1174_v21   ;;  %1199 = vperm.xlu0 %5505, %v1173_v5   ;;  %v183_v22 = vadd.f32 %v181_v61, %v175_v43  ;;  %v184_v35 = vadd.f32 %v182_v41, %v176_v19  ;;  %v6678_v13 = vmax.bf16 %v8224_v0, %v233_v63  ;;  %v222_v60 = vunpack.c.l.bf16 %v6647_v31  ;;  %v1348_v43 = vld [vmem:[%s8216_s0 + $0x94] sm:$0xf] }
  0x61   :  { %5316 = vmatmul.mubr.msk.bf16.gmra.mrb[4].mxu1 %vm300_vm0, %v5513_v51  ;;  %v229_v25 = vunpack.c.l.bf16 %v6660_v23  ;;  %v230_v34 = vunpack.c.l.bf16 %v6663_v12  ;;  %v6700_v39 = vmax.bf16 %v8224_v0, %v234_v44  ;;  %v1317_v48 = vmax.bf16 %v8224_v0, %v1315_v24  ;;  %v1065_v51 = vld [vmem:[%s8218_s2 + $0x30] sm:$0xff]  ;;  %v1380_v12 = vld [vmem:[%s8216_s0 + $0xc4] sm:$0xf] }
  0x62   :  { %5319 = vmatprep.mubr.msk.bf16.mxu1 %vm300_vm0, %v5516_v26  ;;  %v191_v50 = vadd.f32 %v189_v36, %v183_v22  ;;  %v192_v29 = vadd.f32 %v190_v62, %v184_v35  ;;  %v1318_v49 = vmax.bf16 %v8224_v0, %v1316_v56  ;;  %v237_v61 = vunpack.c.l.bf16 %v6678_v13  ;;  %v1178_v35 = vld [vmem:[%s8219_s3 + $0x38] sm:$0xff] }
  0x63   :  { %v1325_v42 = vmax.bf16 %v8224_v0, %v1323_v38  ;;  %v1326_v59 = vmax.bf16 %v8224_v0, %v1324_v37  ;;  %v1319_v20 = vunpack.c.l.bf16 %v1317_v48  ;;  %v1333_v21 = vmax.bf16 %v8224_v0, %v1331_v40  ;;  %v1364_v38 = vld [vmem:[%s8216_s0 + $0xb4] sm:$0xf]  ;;  %v5521_v13 = vld [vmem:[%s8217_s1 + $0x38] sm:$0xff]  }
  0x64   :  { %1102 = vperm.xlu1 %5506, %v1064_v16   ;;  %1097 = vperm.xlu0 %5505, %v1063_v17   ;;  %v199_v46 = vadd.f32 %v197_v7, %v191_v50  ;;  %v200_v41 = vadd.f32 %v198_v52, %v192_v29  ;;  %v1320_v30 = vunpack.c.l.bf16 %v1318_v49  ;;  %v1334_v47 = vmax.bf16 %v8224_v0, %v1332_v54  ;;  %v1355_v52 = vld [vmem:[%s8216_s0 + $0xa8] sm:$0xf]  ;;  %v1363_v17 = vld [vmem:[%s8216_s0 + $0xb0] sm:$0xf]  ;;  %v1379_v54 = vld [vmem:[%s8216_s0 + $0xc0] sm:$0xf] }
  0x65   :  { %v1327_v6 = vunpack.c.l.bf16 %v1325_v42  ;;  %v1328_v36 = vunpack.c.l.bf16 %v1326_v59  ;;  %v1335_v58 = vunpack.c.l.bf16 %v1333_v21  ;;  %v1341_v62 = vmax.bf16 %v8224_v0, %v1339_v45  ;;  %v1068_v59 = vld [vmem:[%s8218_s2 + $0x48] sm:$0xff] }
  0x66   :  { %v207_v5 = vadd.f32 %v205_v15, %v199_v46  ;;  %v208_v10 = vadd.f32 %v206_v2, %v200_v41  ;;  %v1342_v7 = vmax.bf16 %v8224_v0, %v1340_v27  ;;  %v1336_v26 = vunpack.c.l.bf16 %v1334_v47  ;;  %v1356_v2 = vld [vmem:[%s8216_s0 + $0xac] sm:$0xf]  ;;  %v1067_v27 = vld [vmem:[%s8218_s2 + $0x40] sm:$0xff] }
  0x67   :  { %v1329_v57 = vadd.f32 %v1327_v6, %v1319_v20  ;;  %v1330_v11 = vadd.f32 %v1328_v36, %v1320_v30  ;;  %v1343_v33 = vunpack.c.l.bf16 %v1341_v62  ;;  %v1349_v19 = vmax.bf16 %v8224_v0, %v1347_v9  ;;  %v1388_v21 = vld [vmem:[%s8216_s0 + $0xcc] sm:$0xf]  ;;  %v1395_v9 = vld [vmem:[%s8216_s0 + $0xe0] sm:$0xf]  ;;  %v1396_v62 = vld [vmem:[%s8216_s0 + $0xe4] sm:$0xf] }
  0x68   :  { %1214 = vperm.xlu1 %5506, %v1176_v32   ;;  %1209 = vperm.xlu0 %5505, %v1175_v3   ;;  %v215_v18 = vadd.f32 %v213_v28, %v207_v5  ;;  %v216_v15 = vadd.f32 %v214_v53, %v208_v10  ;;  %v1344_v63 = vunpack.c.l.bf16 %v1342_v7  ;;  %v238_v31 = vunpack.c.l.bf16 %v6700_v39  ;;  %v1177_v53 = vld [vmem:[%s8219_s3 + $0x30] sm:$0xff]  ;;  %v1403_v7 = vld [vmem:[%s8216_s0 + $0xe8] sm:$0xf] }
  0x69   :  { %5320 = vmatmul.mubr.msk.bf16.gmra.mrb[8].mxu1 %vm300_vm0, %v5517_v1  ;;  %v1337_v44 = vadd.f32 %v1335_v58, %v1329_v57  ;;  %v1338_v16 = vadd.f32 %v1336_v26, %v1330_v11  ;;  %v1350_v28 = vmax.bf16 %v8224_v0, %v1348_v43  ;;  %v1351_v24 = vunpack.c.l.bf16 %v1349_v19  ;;  %v1404_v43 = vld [vmem:[%s8216_s0 + $0xec] sm:$0xf] }
  0x6a   :  { %5323 = vmatprep.mubr.msk.bf16.mxu1 %vm300_vm0, %v5520_v14  ;;  %v223_v4 = vadd.f32 %v221_v8, %v215_v18  ;;  %v224_v22 = vadd.f32 %v222_v60, %v216_v15  ;;  %v1357_v56 = vmax.bf16 %v8224_v0, %v1355_v52  ;;  %v1358_v50 = vmax.bf16 %v8224_v0, %v1356_v2  ;;  %v1371_v60 = vld [vmem:[%s8216_s0 + $0xb8] sm:$0xf]  ;;  %v1411_v52 = vld [vmem:[%s8216_s0 + $0xf0] sm:$0xf]  ;;  %v1180_v15 = vld [vmem:[%s8219_s3 + $0x48] sm:$0xff] }
  0x6b   :  { %v1345_v32 = vadd.f32 %v1343_v33, %v1337_v44  ;;  %v1346_v37 = vadd.f32 %v1344_v63, %v1338_v16  ;;  %v1352_v3 = vunpack.c.l.bf16 %v1350_v28  ;;  %v1365_v23 = vmax.bf16 %v8224_v0, %v1363_v17  ;;  %v5510_v44 = vld [vmem:[%s8217_s1 + $0x8] sm:$0xff]   ;;  %v5511_v16 = vld [vmem:[%s8217_s1 + $0x10] sm:$0xff]  }
  0x6c   :  { %1112 = vperm.xlu1 %5506, %v1066_v55   ;;  %1107 = vperm.xlu0 %5505, %v1065_v51   ;;  %v231_v8 = vadd.f32 %v229_v25, %v223_v4  ;;  %v232_v1 = vadd.f32 %v230_v34, %v224_v22  ;;  %v1359_v40 = vunpack.c.l.bf16 %v1357_v56  ;;  %v1372_v25 = vld [vmem:[%s8216_s0 + $0xbc] sm:$0xf]  ;;  %v1360_v48 = vunpack.c.l.bf16 %v1358_v50  ;;  %v1412_v4 = vld [vmem:[%s8216_s0 + $0xf4] sm:$0xf]  ;;  %v1419_v56 = vld [vmem:[%s8216_s0 + $0xf8] sm:$0xf] }
  0x6d   :  { %v1353_v39 = vadd.f32 %v1351_v24, %v1345_v32  ;;  %v1366_v49 = vmax.bf16 %v8224_v0, %v1364_v38  ;;  %v1354_v45 = vadd.f32 %v1352_v3, %v1346_v37  ;;  %v1367_v46 = vunpack.c.l.bf16 %v1365_v23  ;;  %v1427_v32 = vld [vmem:[%s8216_s0 + $0x100] sm:$0xf]  ;;  %v1428_v37 = vld [vmem:[%s8216_s0 + $0x104] sm:$0xf]  ;;  %v1436_v23 = vld [vmem:[%s8216_s0 + $0x11c] sm:$0xf] }
  0x6e   :  { %v239_v29 = vadd.f32 %v237_v61, %v231_v8  ;;  %v240_v34 = vadd.f32 %v238_v31, %v232_v1  ;;  %v1373_v42 = vmax.bf16 %v8224_v0, %v1371_v60  ;;  %v1387_v61 = vld [vmem:[%s8216_s0 + $0xc8] sm:$0xf]  ;;  %v1374_v30 = vmax.bf16 %v8224_v0, %v1372_v25  ;;  %v1179_v31 = vld [vmem:[%s8219_s3 + $0x40] sm:$0xff] }
  0x6f   :  { %v1361_v14 = vadd.f32 %v1359_v40, %v1353_v39  ;;  %v1368_v20 = vunpack.c.l.bf16 %v1366_v49  ;;  %v1362_v6 = vadd.f32 %v1360_v48, %v1354_v45  ;;  %v1381_v47 = vmax.bf16 %v8224_v0, %v1379_v54  ;;  %v1435_v40 = vld [vmem:[%s8216_s0 + $0x118] sm:$0xf]  ;;  %v1443_v25 = vld [vmem:[%s8216_s0 + $0x120] sm:$0xf]  ;;  %v1444_v54 = vld [vmem:[%s8216_s0 + $0x124] sm:$0xf] }
  0x70   :  { %1224 = vperm.xlu1 %5506, %v1178_v35   ;;  %1219 = vperm.xlu0 %5505, %v1177_v53   ;;  %v241_v41 = vmul.f32 0.04, %v239_v29  ;;  %v242_v5 = vmul.f32 0.04, %v240_v34  ;;  %v1375_v36 = vunpack.c.l.bf16 %v1373_v42  ;;  %v1376_v55 = vunpack.c.l.bf16 %v1374_v30 }
  0x71   :  { %5324 = vmatmul.mubr.msk.bf16.gmra.mrb[12].mxu1 %vm300_vm0, %v5521_v13  ;;  %v1369_v10 = vadd.f32 %v1367_v46, %v1361_v14  ;;  %v1382_v51 = vmax.bf16 %v8224_v0, %v1380_v12  ;;  %v1389_v58 = vmax.bf16 %v8224_v0, %v1387_v61  ;;  %v1370_v57 = vadd.f32 %v1368_v20, %v1362_v6  ;;  %v1420_v13 = vld [vmem:[%s8216_s0 + $0xfc] sm:$0xf]  ;;  %v1451_v12 = vld [vmem:[%s8216_s0 + $0x128] sm:$0xf]  ;;  %v1452_v61 = vld [vmem:[%s8216_s0 + $0x12c] sm:$0xf] }
  0x72   :  { %v243_v18 = vpack.c.bf16 %v242_v5, %v241_v41  ;;  %v1383_v11 = vunpack.c.l.bf16 %v1381_v47  ;;  %v1390_v26 = vmax.bf16 %v8224_v0, %v1388_v21  ;;  %v1397_v2 = vmax.bf16 %v8224_v0, %v1395_v9  ;;  %v1070_v41 = vld [vmem:[%s8218_s2 + $0x58] sm:$0xff]  ;;  %v1069_v14 = vld [vmem:[%s8218_s2 + $0x50] sm:$0xff] }
  0x73   :  { %v1377_v33 = vadd.f32 %v1375_v36, %v1369_v10  ;;  %v1384_v63 = vunpack.c.l.bf16 %v1382_v51  ;;  %v1391_v19 = vunpack.c.l.bf16 %v1389_v58  ;;  %v1378_v17 = vadd.f32 %v1376_v55, %v1370_v57  ;;  %v1460_v6 = vld [vmem:[%s8216_s0 + $0x134] sm:$0xf]  ;;  %v5514_v36 = vld [vmem:[%s8217_s1 + $0x18] sm:$0xff]   ;;  %v5515_v58 = vld [vmem:[%s8217_s1 + $0x20] sm:$0xff]  }
  0x74   :  { %1122 = vperm.xlu1 %5506, %v1068_v59   ;;  %1117 = vperm.xlu0 %5505, %v1067_v27   ;;  %v1392_v22 = vunpack.c.l.bf16 %v1390_v26  ;;  %v1398_v28 = vmax.bf16 %v8224_v0, %v1396_v62  ;;  %v1405_v24 = vmax.bf16 %v8224_v0, %v1403_v7  ;;  %v1399_v35 = vunpack.c.l.bf16 %v1397_v2  ;;  %v1459_v59 = vld [vmem:[%s8216_s0 + $0x130] sm:$0xf]  ;;  %v5527_v27 = vld [vmem:[%s8217_s1] sm:$0xff]   ;;  %v1467_v51 = vld [vmem:[%s8216_s0 + $0x138] sm:$0xf] }
  0x75   :  { %5291 = vmatprep.subr.bf16.mxu0 %v243_v18  ;;  %v1385_v38 = vadd.f32 %v1383_v11, %v1377_v33  ;;  %v1406_v53 = vmax.bf16 %v8224_v0, %v1404_v43  ;;  %v1413_v8 = vmax.bf16 %v8224_v0, %v1411_v52  ;;  %v1386_v50 = vadd.f32 %v1384_v63, %v1378_v17  ;;  %v1468_v11 = vld [vmem:[%s8216_s0 + $0x13c] sm:$0xf]  ;;  %v1181_v43 = vld [vmem:[%s8219_s3 + $0x50] sm:$0xff]  ;;  %v1483_v17 = vld [vmem:[%s8216_s0 + $0x158] sm:$0xf] }
  0x76   :  { %5292 = vmatpush3.bf16.msra.mxu0 %v243_v18  ;;  %v1400_v60 = vunpack.c.l.bf16 %v1398_v28  ;;  %v1407_v1 = vunpack.c.l.bf16 %v1405_v24  ;;  %v1414_v3 = vmax.bf16 %v8224_v0, %v1412_v4  ;;  %v1421_v49 = vmax.bf16 %v8224_v0, %v1419_v56  ;;  %5347 = vmatprep.mubr.msk.bf16.mxu1 %vm300_vm0, %v5527_v27  ;;  %v1182_v26 = vld [vmem:[%s8219_s3 + $0x58] sm:$0xff]  ;;  %v1476_v2 = vld [vmem:[%s8216_s0 + $0x154] sm:$0xf] }
  0x77   :  { %v1393_v29 = vadd.f32 %v1391_v19, %v1385_v38  ;;  %v1408_v39 = vunpack.c.l.bf16 %v1406_v53  ;;  %v1415_v48 = vunpack.c.l.bf16 %v1413_v8  ;;  %v1394_v34 = vadd.f32 %v1392_v22, %v1386_v50  ;;  %v1475_v19 = vld [vmem:[%s8216_s0 + $0x150] sm:$0xf]  ;;  %v1484_v38 = vld [vmem:[%s8216_s0 + $0x15c] sm:$0xf]  ;;  %v1072_v53 = vld [vmem:[%s8218_s2 + $0x68] sm:$0xff] }
  0x78   :  { %1234 = vperm.xlu1 %5506, %v1180_v15   ;;  %1229 = vperm.xlu0 %5505, %v1179_v31   ;;  %v1416_v45 = vunpack.c.l.bf16 %v1414_v3  ;;  %v1422_v46 = vmax.bf16 %v8224_v0, %v1420_v13  ;;  %v1429_v42 = vmax.bf16 %v8224_v0, %v1427_v32  ;;  %v1423_v30 = vunpack.c.l.bf16 %v1421_v49  ;;  %v1071_v50 = vld [vmem:[%s8218_s2 + $0x60] sm:$0xff]  ;;  %v1499_v49 = vld [vmem:[%s8216_s0 + $0x168] sm:$0xf]  ;;  %v5519_v27 = vld [vmem:[%s8217_s1 + $0x30] sm:$0xff]  }
  0x79   :  { %5294 = vmatmul.mubr.msk.bf16.vlgmr.msra.gmra.mrb[0].mxu0 %vm300_vm0, %v5510_v44  ;;  %v1401_v20 = vadd.f32 %v1399_v35, %v1393_v29  ;;  %v1430_v21 = vmax.bf16 %v8224_v0, %v1428_v37  ;;  %v6885_v5 = vmax.bf16 %v8224_v0, %v1435_v40  ;;  %v1402_v47 = vadd.f32 %v1400_v60, %v1394_v34  ;;  %v1491_v35 = vld [vmem:[%s8216_s0 + $0x160] sm:$0xf] }
  0x7a   :  { %5297 = vmatprep.mubr.msk.bf16.mxu0 %vm300_vm0, %v5511_v16  ;;  %v1424_v9 = vunpack.c.l.bf16 %v1422_v46  ;;  %v1431_v10 = vunpack.c.l.bf16 %v1429_v42  ;;  %v6894_v55 = vmax.bf16 %v8224_v0, %v1436_v23  ;;  %v6905_v57 = vmax.bf16 %v8224_v0, %v1443_v25  ;;  %v1492_v23 = vld [vmem:[%s8216_s0 + $0x164] sm:$0xf] }
  0x7b   :  { %v1409_v62 = vadd.f32 %v1407_v1, %v1401_v20  ;;  %v1432_v7 = vunpack.c.l.bf16 %v1430_v21  ;;  %v1439_v18 = vunpack.c.l.bf16 %v6885_v5  ;;  %v1410_v52 = vadd.f32 %v1408_v39, %v1402_v47  ;;  %v1508_v21 = vld [vmem:[%s8216_s0 + $0x174] sm:$0xf]  ;;  %v1951_v5 = vld [vmem:[%s8216_s0 + $0x80] sm:$0xf] }
  0x7c   :  { %1132 = vperm.xlu1 %5506, %v1070_v41   ;;  %1127 = vperm.xlu0 %5505, %v1069_v14   ;;  %v1440_v15 = vunpack.c.l.bf16 %v6894_v55  ;;  %v6918_v33 = vmax.bf16 %v8224_v0, %v1444_v54  ;;  %v6921_v63 = vmax.bf16 %v8224_v0, %v1451_v12  ;;  %v1447_v31 = vunpack.c.l.bf16 %v6905_v57  ;;  %v1500_v54 = vld [vmem:[%s8216_s0 + $0x16c] sm:$0xf]  ;;  %v1952_v55 = vld [vmem:[%s8216_s0 + $0x84] sm:$0xf] }
  0x7d   :  { %v1417_v4 = vadd.f32 %v1415_v48, %v1409_v62  ;;  %v6931_v44 = vmax.bf16 %v8224_v0, %v1452_v61  ;;  %v6934_v16 = vmax.bf16 %v8224_v0, %v1459_v59  ;;  %v1418_v22 = vadd.f32 %v1416_v45, %v1410_v52  ;;  %v5518_v12 = vld [vmem:[%s8217_s1 + $0x28] sm:$0xff]   ;;  %v1507_v61 = vld [vmem:[%s8216_s0 + $0x170] sm:$0xf] }
  0x7e   :  { %v1448_v28 = vunpack.c.l.bf16 %v6918_v33  ;;  %v1455_v24 = vunpack.c.l.bf16 %v6921_v63  ;;  %v6942_v56 = vmax.bf16 %v8224_v0, %v1460_v6  ;;  %v6956_v37 = vmax.bf16 %v8224_v0, %v1467_v51  ;;  %v1184_v59 = vld [vmem:[%s8219_s3 + $0x68] sm:$0xff]  ;;  %v1183_v6 = vld [vmem:[%s8219_s3 + $0x60] sm:$0xff]  ;;  %v1074_v33 = vld [vmem:[%s8218_s2 + $0x78] sm:$0xff] }
  0x7f   :  { %v1425_v8 = vadd.f32 %v1423_v30, %v1417_v4  ;;  %v1456_v13 = vunpack.c.l.bf16 %v6931_v44  ;;  %v1463_v32 = vunpack.c.l.bf16 %v6934_v16  ;;  %v1426_v60 = vadd.f32 %v1424_v9, %v1418_v22  ;;  %v1959_v51 = vld [vmem:[%s8216_s0 + $0x88] sm:$0xf]  ;;  %v1960_v57 = vld [vmem:[%s8216_s0 + $0x8c] sm:$0xf]  ;;  %v1073_v44 = vld [vmem:[%s8218_s2 + $0x70] sm:$0xff] }
  0x80   :  { %1244 = vperm.xlu1 %5506, %v1182_v26   ;;  %1239 = vperm.xlu0 %5505, %v1181_v43   ;;  %v1464_v1 = vunpack.c.l.bf16 %v6942_v56  ;;  %v6964_v3 = vmax.bf16 %v8224_v0, %v1468_v11  ;;  %v6967_v40 = vmax.bf16 %v8224_v0, %v1475_v19  ;;  %v1471_v29 = vunpack.c.l.bf16 %v6956_v37  ;;  %v1967_v11 = vld [vmem:[%s8216_s0 + $0x90] sm:$0xf] }
  0x81   :  { %5298 = vmatmul.mubr.msk.bf16.gmra.mrb[4].mxu0 %vm300_vm0, %v5514_v36  ;;  %v1433_v25 = vadd.f32 %v1431_v10, %v1425_v8  ;;  %v6975_v39 = vmax.bf16 %v8224_v0, %v1476_v2  ;;  %v6978_v48 = vmax.bf16 %v8224_v0, %v1483_v17  ;;  %v1434_v34 = vadd.f32 %v1432_v7, %v1426_v60  ;;  %v1983_v60 = vld [vmem:[%s8216_s0 + $0xa0] sm:$0xf] }
  0x82   :  { %5301 = vmatprep.mubr.msk.bf16.mxu0 %vm300_vm0, %v5515_v58  ;;  %v1472_v45 = vunpack.c.l.bf16 %v6964_v3  ;;  %v1479_v46 = vunpack.c.l.bf16 %v6967_v40  ;;  %v6992_v42 = vmax.bf16 %v8224_v0, %v1484_v38  ;;  %v7006_v30 = vmax.bf16 %v8224_v0, %v1491_v35  ;;  %v1975_v38 = vld [vmem:[%s8216_s0 + $0x98] sm:$0xf]  ;;  %v1976_v35 = vld [vmem:[%s8216_s0 + $0x9c] sm:$0xf] }
  0x83   :  { %v1441_v41 = vadd.f32 %v1439_v18, %v1433_v25  ;;  %v1480_v14 = vunpack.c.l.bf16 %v6975_v39  ;;  %v1487_v20 = vunpack.c.l.bf16 %v6978_v48  ;;  %v1442_v36 = vadd.f32 %v1440_v15, %v1434_v34  ;;  %v7093_v34 = vld [vmem:[%s8219_s3 + $0x78] sm:$0xff]  ;;  %v2008_v39 = vld [vmem:[%s8216_s0 + $0xcc] sm:$0xf]  ;;  %v2015_v48 = vld [vmem:[%s8216_s0 + $0xd0] sm:$0xf] }
  0x84   :  { %1142 = vperm.xlu1 %5506, %v1072_v53   ;;  %1137 = vperm.xlu0 %5505, %v1071_v50   ;;  %v1488_v47 = vunpack.c.l.bf16 %v6992_v42  ;;  %v7019_v9 = vmax.bf16 %v8224_v0, %v1492_v23  ;;  %v7022_v10 = vmax.bf16 %v8224_v0, %v1499_v49  ;;  %v1495_v62 = vunpack.c.l.bf16 %v7006_v30  ;;  %v5522_v23 = vld [vmem:[%s8217_s1 + $0x38] sm:$0xff]   ;;  %v7172_v30 = vld [vmem:[%s8219_s3] sm:$0xff] }
  0x85   :  { %v1449_v58 = vadd.f32 %v1447_v31, %v1441_v41  ;;  %v7032_v7 = vmax.bf16 %v8224_v0, %v1500_v54  ;;  %v7035_v18 = vmax.bf16 %v8224_v0, %v1507_v61  ;;  %v1450_v26 = vadd.f32 %v1448_v28, %v1442_v36  ;;  %v1968_v31 = vld [vmem:[%s8216_s0 + $0x94] sm:$0xf]  ;;  %v1984_v54 = vld [vmem:[%s8216_s0 + $0xa4] sm:$0xf]  ;;  %v1992_v41 = vld [vmem:[%s8216_s0 + $0xbc] sm:$0xf] }
  0x86   :  { %v1496_v43 = vunpack.c.l.bf16 %v7019_v9  ;;  %v1503_v52 = vunpack.c.l.bf16 %v7022_v10  ;;  %v7046_v15 = vmax.bf16 %v8224_v0, %v1508_v21  ;;  %v1953_v4 = vmax.bf16 %v8224_v0, %v1951_v5  ;;  %v7107_v21 = vld [vmem:[%s8219_s3 + $0x70] sm:$0xff]  ;;  %v1999_v36 = vld [vmem:[%s8216_s0 + $0xc0] sm:$0xf]  ;;  %v2024_v9 = vld [vmem:[%s8216_s0 + $0xdc] sm:$0xf] }
  0x87   :  { %v1457_v63 = vadd.f32 %v1455_v24, %v1449_v58  ;;  %v1504_v19 = vunpack.c.l.bf16 %v7032_v7  ;;  %v1511_v2 = vunpack.c.l.bf16 %v7035_v18  ;;  %v1458_v17 = vadd.f32 %v1456_v13, %v1450_v26  ;;  %v2031_v10 = vld [vmem:[%s8216_s0 + $0xf0] sm:$0xf]  ;;  %v7203_v7 = vld [vmem:[%s8218_s2 + $0x18] sm:$0xff] }
  0x88   :  { %1254 = vperm.xlu1 %5506, %v1184_v59   ;;  %1249 = vperm.xlu0 %5505, %v1183_v6   ;;  %v1512_v22 = vunpack.c.l.bf16 %v7046_v15  ;;  %v1954_v28 = vmax.bf16 %v8224_v0, %v1952_v55  ;;  %v1961_v24 = vmax.bf16 %v8224_v0, %v1959_v51  ;;  %v1955_v8 = vunpack.c.l.bf16 %v1953_v4  ;;  %v7118_v55 = vld [vmem:[%s8218_s2 + $0x8] sm:$0xff]  ;;  %v2047_v15 = vld [vmem:[%s8216_s0 + $0x100] sm:$0xf] }
  0x89   :  { %5302 = vmatmul.mubr.msk.bf16.gmra.mrb[8].mxu0 %vm300_vm0, %v5518_v12  ;;  %v1465_v53 = vadd.f32 %v1463_v32, %v1457_v63  ;;  %v1962_v13 = vmax.bf16 %v8224_v0, %v1960_v57  ;;  %v1969_v50 = vmax.bf16 %v8224_v0, %v1967_v11  ;;  %v1466_v25 = vadd.f32 %v1464_v1, %v1458_v17  ;;  %v1991_v12 = vld [vmem:[%s8216_s0 + $0xb8] sm:$0xf]  ;;  %v5523_v1 = vld [vmem:[%s8217_s1] sm:$0xff]   ;;  %v2007_v63 = vld [vmem:[%s8216_s0 + $0xc8] sm:$0xf] }
  0x8a   :  { %5305 = vmatprep.mubr.msk.bf16.mxu0 %vm300_vm0, %v5519_v27  ;;  %v1956_v49 = vunpack.c.l.bf16 %v1954_v28  ;;  %v1963_v16 = vunpack.c.l.bf16 %v1961_v24  ;;  %v1970_v32 = vmax.bf16 %v8224_v0, %v1968_v31  ;;  %v1977_v27 = vmax.bf16 %v8224_v0, %v1975_v38  ;;  %v7130_v11 = vld [vmem:[%s8218_s2] sm:$0xff] }
  0x8b   :  { %v1473_v56 = vadd.f32 %v1471_v29, %v1465_v53  ;;  %v1964_v61 = vunpack.c.l.bf16 %v1962_v13  ;;  %v1971_v59 = vunpack.c.l.bf16 %v1969_v50  ;;  %v1474_v37 = vadd.f32 %v1472_v45, %v1466_v25  ;;  %v2000_v45 = vld [vmem:[%s8216_s0 + $0xc4] sm:$0xf]  ;;  %v2016_v13 = vld [vmem:[%s8216_s0 + $0xd4] sm:$0xf]  ;;  %v7167_v50 = vld [vmem:[%s8219_s3 + $0x8] sm:$0xff] }
  0x8c   :  { %1152 = vperm.xlu1 %5506, %v1074_v33   ;;  %1147 = vperm.xlu0 %5505, %v1073_v44   ;;  %v1965_v29 = vadd.f32 %v1963_v16, %v1955_v8  ;;  %v1972_v5 = vunpack.c.l.bf16 %v1970_v32  ;;  %v1978_v6 = vmax.bf16 %v8224_v0, %v1976_v35  ;;  %v1979_v57 = vunpack.c.l.bf16 %v1977_v27 }
  0x8d   :  { %v1481_v51 = vadd.f32 %v1479_v46, %v1473_v56  ;;  %v1966_v58 = vadd.f32 %v1964_v61, %v1956_v49  ;;  %v1985_v3 = vmax.bf16 %v8224_v0, %v1983_v60  ;;  %v1482_v26 = vadd.f32 %v1480_v14, %v1474_v37  ;;  %v2023_v49 = vld [vmem:[%s8216_s0 + $0xd8] sm:$0xf] }
  0x8e   :  { %v1973_v40 = vadd.f32 %v1971_v59, %v1965_v29  ;;  %v1980_v46 = vunpack.c.l.bf16 %v1978_v6  ;;  %v1986_v33 = vmax.bf16 %v8224_v0, %v1984_v54  ;;  %v1993_v17 = vmax.bf16 %v8224_v0, %v1991_v12  ;;  %v7215_v6 = vld [vmem:[%s8218_s2 + $0x10] sm:$0xff] }
  0x8f   :  { %v1489_v4 = vadd.f32 %v1487_v20, %v1481_v51  ;;  %v1974_v31 = vadd.f32 %v1972_v5, %v1966_v58  ;;  %v1987_v44 = vunpack.c.l.bf16 %v1985_v3  ;;  %v1490_v14 = vadd.f32 %v1488_v47, %v1482_v26  ;;  %v2039_v5 = vld [vmem:[%s8216_s0 + $0xf8] sm:$0xf]  ;;  %v2040_v58 = vld [vmem:[%s8216_s0 + $0xfc] sm:$0xf] }
  0x90   :  { %1264 = vperm.xlu1 %5506, %v7093_v34   ;;  %1259 = vperm.xlu0 %5505, %v7107_v21   ;;  %v1981_v28 = vadd.f32 %v1979_v57, %v1973_v40  ;;  %v1988_v24 = vunpack.c.l.bf16 %v1986_v33  ;;  %v1994_v38 = vmax.bf16 %v8224_v0, %v1992_v41  ;;  %v1995_v42 = vunpack.c.l.bf16 %v1993_v17 }
  0x91   :  { %5306 = vmatmul.mubr.msk.bf16.gmra.mrb[12].mxu0 %vm300_vm0, %v5522_v23  ;;  %v1497_v53 = vadd.f32 %v1495_v62, %v1489_v4  ;;  %v1982_v8 = vadd.f32 %v1980_v46, %v1974_v31  ;;  %v2001_v47 = vmax.bf16 %v8224_v0, %v1999_v36  ;;  %v1498_v62 = vadd.f32 %v1496_v43, %v1490_v14  ;;  %v2055_v4 = vld [vmem:[%s8216_s0 + $0x108] sm:$0xf]  ;;  %v2056_v31 = vld [vmem:[%s8216_s0 + $0x10c] sm:$0xf] }
  0x92   :  { %5329 = vmatprep.mubr.msk.bf16.mxu0 %vm300_vm0, %v5523_v1  ;;  %v1989_v60 = vadd.f32 %v1987_v44, %v1981_v28  ;;  %v1996_v23 = vunpack.c.l.bf16 %v1994_v38  ;;  %v2002_v25 = vmax.bf16 %v8224_v0, %v2000_v45  ;;  %v2009_v12 = vmax.bf16 %v8224_v0, %v2007_v63 }
  0x93   :  { %v7152_v20 = vpop.permute.xlu1 %552  ;;  %v7154_v35 = vpop.permute.xlu0 %440  ;;  %v1505_v16 = vadd.f32 %v1503_v52, %v1497_v53  ;;  %v1990_v32 = vadd.f32 %v1988_v24, %v1982_v8  ;;  %v2003_v54 = vunpack.c.l.bf16 %v2001_v47  ;;  %v1506_v43 = vadd.f32 %v1504_v19, %v1498_v62  ;;  %v2032_v52 = vld [vmem:[%s8216_s0 + $0xf4] sm:$0xf] }
  0x94   :  { %1718 = vperm.xlu1 %5506, %v7118_v55   ;;  %1713 = vperm.xlu0 %5505, %v7130_v11   ;;  %v1997_v56 = vadd.f32 %v1995_v42, %v1989_v60  ;;  %v2004_v1 = vunpack.c.l.bf16 %v2002_v25  ;;  %v2010_v61 = vmax.bf16 %v8224_v0, %v2008_v39  ;;  %v2011_v37 = vunpack.c.l.bf16 %v2009_v12  ;;  %v7245_v39 = vld [vmem:[%s8219_s3 + $0x18] sm:$0xff]  ;;  %v7256_v53 = vld [vmem:[%s8219_s3 + $0x10] sm:$0xff]  ;;  %v5524_v42 = vld [vmem:[%s8217_s1 + $0x8] sm:$0xff]  }
  0x95   :  { %v1513_v19 = vadd.f32 %v1511_v2, %v1505_v16  ;;  %v1998_v41 = vadd.f32 %v1996_v23, %v1990_v32  ;;  %v2017_v29 = vmax.bf16 %v8224_v0, %v2015_v48  ;;  %v1514_v36 = vadd.f32 %v1512_v22, %v1506_v43  ;;  %v2048_v22 = vld [vmem:[%s8216_s0 + $0x104] sm:$0xf]  ;;  %v2063_v48 = vld [vmem:[%s8216_s0 + $0x110] sm:$0xf]  ;;  %v2064_v60 = vld [vmem:[%s8216_s0 + $0x114] sm:$0xf] }
  0x96   :  { %v2005_v18 = vadd.f32 %v2003_v54, %v1997_v56  ;;  %v2012_v2 = vunpack.c.l.bf16 %v2010_v61  ;;  %v2018_v51 = vmax.bf16 %v8224_v0, %v2016_v13  ;;  %v2025_v26 = vmax.bf16 %v8224_v0, %v2023_v49  ;;  %v5525_v23 = vld [vmem:[%s8217_s1 + $0x10] sm:$0xff]   ;;  %v2071_v54 = vld [vmem:[%s8216_s0 + $0x128] sm:$0xf] }
  0x97   :  { %v7196_v59 = vpop.permute.xlu1 %557  ;;  %v7198_v27 = vpop.permute.xlu0 %445  ;;  %v1515_v57 = vmul.f32 0.04, %v1513_v19  ;;  %v2006_v3 = vadd.f32 %v2004_v1, %v1998_v41  ;;  %v2019_v45 = vunpack.c.l.bf16 %v2017_v29  ;;  %v1516_v40 = vmul.f32 0.04, %v1514_v36  ;;  %v2072_v1 = vld [vmem:[%s8216_s0 + $0x12c] sm:$0xf] }
  0x98   :  { %1830 = vperm.xlu1 %5506, %v7167_v50   ;;  %1825 = vperm.xlu0 %5505, %v7172_v30   ;;  %v2013_v46 = vadd.f32 %v2011_v37, %v2005_v18  ;;  %v2020_v33 = vunpack.c.l.bf16 %v2018_v51  ;;  %v2026_v63 = vmax.bf16 %v8224_v0, %v2024_v9  ;;  %v2027_v28 = vunpack.c.l.bf16 %v2025_v26  ;;  %v7296_v36 = vld [vmem:[%s8218_s2 + $0x20] sm:$0xff]  ;;  %v2087_v26 = vld [vmem:[%s8216_s0 + $0x138] sm:$0xf] }
  0x99   :  { %v2014_v14 = vadd.f32 %v2012_v2, %v2006_v3  ;;  %v2033_v24 = vmax.bf16 %v8224_v0, %v2031_v10  ;;  %v2034_v38 = vmax.bf16 %v8224_v0, %v2032_v52  ;;  %v1517_v8 = vpack.c.bf16 %v1516_v40, %v1515_v57  ;;  %v7285_v52 = vld [vmem:[%s8218_s2 + $0x28] sm:$0xff] }
  0x9a   :  { %v2021_v47 = vadd.f32 %v2019_v45, %v2013_v46  ;;  %v2028_v13 = vunpack.c.l.bf16 %v2026_v63  ;;  %v2041_v62 = vmax.bf16 %v8224_v0, %v2039_v5  ;;  %v2042_v32 = vmax.bf16 %v8224_v0, %v2040_v58  ;;  %v2079_v5 = vld [vmem:[%s8216_s0 + $0x130] sm:$0xf]  ;;  %v2080_v58 = vld [vmem:[%s8216_s0 + $0x134] sm:$0xf]  ;;  %v2088_v46 = vld [vmem:[%s8216_s0 + $0x13c] sm:$0xf] }
  0x9b   :  { %v7238_v44 = vpop.permute.xlu1 %455  ;;  %v7240_v17 = vpop.permute.xlu0 %450  ;;  %v2022_v25 = vadd.f32 %v2020_v33, %v2014_v14  ;;  %v2035_v49 = vunpack.c.l.bf16 %v2033_v24  ;;  %v2036_v16 = vunpack.c.l.bf16 %v2034_v38  ;;  %5327 = vmatprep.subr.bf16.mxu0 %v1517_v8  ;;  %v2049_v43 = vmax.bf16 %v8224_v0, %v2047_v15  ;;  %v2095_v24 = vld [vmem:[%s8216_s0 + $0x140] sm:$0xf] }
  0x9c   :  { %1728 = vperm.xlu1 %5506, %v7203_v7   ;;  %1723 = vperm.xlu0 %5505, %v7215_v6   ;;  %v2029_v12 = vadd.f32 %v2027_v28, %v2021_v47  ;;  %v2043_v9 = vunpack.c.l.bf16 %v2041_v62  ;;  %v2050_v56 = vmax.bf16 %v8224_v0, %v2048_v22  ;;  %v2044_v41 = vunpack.c.l.bf16 %v2042_v32  ;;  %v7331_v38 = vld [vmem:[%s8219_s3 + $0x20] sm:$0xff] }
  0x9d   :  { %5328 = vmatpush3.bf16.msra.mxu0 %v1517_v8  ;;  %v2030_v19 = vadd.f32 %v2028_v13, %v2022_v25  ;;  %v2057_v37 = vmax.bf16 %v8224_v0, %v2055_v4  ;;  %v2058_v29 = vmax.bf16 %v8224_v0, %v2056_v31  ;;  %v2051_v2 = vunpack.c.l.bf16 %v2049_v43  ;;  %v7320_v4 = vld [vmem:[%s8219_s3 + $0x28] sm:$0xff]  ;;  %v2096_v13 = vld [vmem:[%s8216_s0 + $0x144] sm:$0xf] }
  0x9e   :  { %v2037_v18 = vadd.f32 %v2035_v49, %v2029_v12  ;;  %v2065_v51 = vmax.bf16 %v8224_v0, %v2063_v48  ;;  %3771 = vmatprep.subr.bf16.mxu0 %v8224_v0  ;;  %v2052_v3 = vunpack.c.l.bf16 %v2050_v56  ;;  %v2066_v45 = vmax.bf16 %v8224_v0, %v2064_v60  ;;  %v5526_v48 = vld [vmem:[%s8217_s1 + $0x18] sm:$0xff]   ;;  %v2103_v25 = vld [vmem:[%s8216_s0 + $0x148] sm:$0xf]  ;;  %v5529_v49 = vld [vmem:[%s8217_s1 + $0x20] sm:$0xff]  }
  0x9f   :  { %v7278_v61 = vpop.permute.xlu1 %567  ;;  %v7280_v10 = vpop.permute.xlu0 %562  ;;  %v2038_v57 = vadd.f32 %v2036_v16, %v2030_v19  ;;  %v2059_v22 = vunpack.c.l.bf16 %v2057_v37  ;;  %v2073_v40 = vmax.bf16 %v8224_v0, %v2071_v54  ;;  %v2060_v14 = vunpack.c.l.bf16 %v2058_v29  ;;  %v2104_v12 = vld [vmem:[%s8216_s0 + $0x14c] sm:$0xf]  ;;  %v7359_v56 = vld [vmem:[%s8218_s2 + $0x38] sm:$0xff]  ;;  %v2111_v37 = vld [vmem:[%s8216_s0 + $0x160] sm:$0xf] }
  0xa0   :  { %1840 = vperm.xlu1 %5506, %v7245_v39   ;;  %1835 = vperm.xlu0 %5505, %v7256_v53   ;;  %v2045_v15 = vadd.f32 %v2043_v9, %v2037_v18  ;;  %v2074_v28 = vmax.bf16 %v8224_v0, %v2072_v1  ;;  %v2081_v47 = vmax.bf16 %v8224_v0, %v2079_v5  ;;  %v2068_v60 = vunpack.c.l.bf16 %v2066_v45  ;;  %v7369_v29 = vld [vmem:[%s8218_s2 + $0x30] sm:$0xff]  ;;  %v2119_v45 = vld [vmem:[%s8216_s0 + $0x168] sm:$0xf] }
  0xa1   :  { %5330 = vmatmul.mubr.msk.bf16.vlgmr.msra.gmra.mrb[16].mxu0 %vm300_vm0, %v5524_v42  ;;  %v2046_v31 = vadd.f32 %v2044_v41, %v2038_v57  ;;  %v2067_v42 = vunpack.c.l.bf16 %v2065_v51  ;;  %v2075_v32 = vunpack.c.l.bf16 %v2073_v40  ;;  %v2089_v54 = vmax.bf16 %v8224_v0, %v2087_v26  ;;  %v2112_v51 = vld [vmem:[%s8216_s0 + $0x164] sm:$0xf]  ;;  %v2120_v40 = vld [vmem:[%s8216_s0 + $0x16c] sm:$0xf] }
  0xa2   :  { %5333 = vmatprep.mubr.msk.bf16.mxu0 %vm300_vm0, %v5525_v23  ;;  %v2053_v8 = vadd.f32 %v2051_v2, %v2045_v15  ;;  %v2082_v23 = vmax.bf16 %v8224_v0, %v2080_v58  ;;  %v2076_v19 = vunpack.c.l.bf16 %v2074_v28  ;;  %v2090_v41 = vmax.bf16 %v8224_v0, %v2088_v46 }
  0xa3   :  { %v7313_v33 = vpop.permute.xlu1 %465  ;;  %v7315_v63 = vpop.permute.xlu0 %460  ;;  %v2054_v62 = vadd.f32 %v2052_v3, %v2046_v31  ;;  %v2083_v18 = vunpack.c.l.bf16 %v2081_v47  ;;  %v2097_v2 = vmax.bf16 %v8224_v0, %v2095_v24  ;;  %v2098_v3 = vmax.bf16 %v8224_v0, %v2096_v13  ;;  %v2128_v13 = vld [vmem:[%s8216_s0 + $0x174] sm:$0xf] }
  0xa4   :  { %1738 = vperm.xlu1 %5506, %v7285_v52   ;;  %1733 = vperm.xlu0 %5505, %v7296_v36   ;;  %v2061_v16 = vadd.f32 %v2059_v22, %v2053_v8  ;;  %v2084_v57 = vunpack.c.l.bf16 %v2082_v23  ;;  %v2091_v15 = vunpack.c.l.bf16 %v2089_v54  ;;  %v2105_v22 = vmax.bf16 %v8224_v0, %v2103_v25 }
  0xa5   :  { %v2062_v1 = vadd.f32 %v2060_v14, %v2054_v62  ;;  %v2092_v28 = vunpack.c.l.bf16 %v2090_v41  ;;  %v2106_v24 = vmax.bf16 %v8224_v0, %v2104_v12  ;;  %v2113_v47 = vmax.bf16 %v8224_v0, %v2111_v37  ;;  %v5530_v62 = vld [vmem:[%s8217_s1 + $0x28] sm:$0xff]  }
  0xa6   :  { %v2069_v5 = vadd.f32 %v2067_v42, %v2061_v16  ;;  %v2099_v42 = vunpack.c.l.bf16 %v2097_v2  ;;  %v2100_v23 = vunpack.c.l.bf16 %v2098_v3  ;;  %v2114_v25 = vmax.bf16 %v8224_v0, %v2112_v51  ;;  %v5531_v16 = vld [vmem:[%s8217_s1 + $0x30] sm:$0xff]   ;;  %v2143_v2 = vld [vmem:[%s8216_s0 + $0x180] sm:$0xf]  ;;  %v7425_v51 = vld [vmem:[%s8219_s3 + $0x38] sm:$0xff] }
  0xa7   :  { %v7352_v9 = vpop.permute.xlu1 %577  ;;  %v7354_v43 = vpop.permute.xlu0 %572  ;;  %v2070_v58 = vadd.f32 %v2068_v60, %v2062_v1  ;;  %v2107_v54 = vunpack.c.l.bf16 %v2105_v22  ;;  %v2121_v12 = vmax.bf16 %v8224_v0, %v2119_v45  ;;  %v2136_v1 = vld [vmem:[%s8216_s0 + $0x17c] sm:$0xf]  ;;  %v2144_v45 = vld [vmem:[%s8216_s0 + $0x184] sm:$0xf] }
  0xa8   :  { %1850 = vperm.xlu1 %5506, %v7320_v4   ;;  %1845 = vperm.xlu0 %5505, %v7331_v38   ;;  %v2077_v26 = vadd.f32 %v2075_v32, %v2069_v5  ;;  %v2108_v5 = vunpack.c.l.bf16 %v2106_v24  ;;  %v2116_v22 = vunpack.c.l.bf16 %v2114_v25 }
  0xa9   :  { %5334 = vmatmul.mubr.msk.bf16.gmra.mrb[20].mxu0 %vm300_vm0, %v5526_v48  ;;  %v2078_v14 = vadd.f32 %v2076_v19, %v2070_v58  ;;  %v2127_v48 = vld [vmem:[%s8216_s0 + $0x170] sm:$0xf] }
  0xaa   :  { %5337 = vmatprep.mubr.msk.bf16.mxu0 %vm300_vm0, %v5529_v49  ;;  %v2085_v8 = vadd.f32 %v2083_v18, %v2077_v26  ;;  %v2135_v49 = vld [vmem:[%s8216_s0 + $0x178] sm:$0xf]  ;;  %v2122_v18 = vmax.bf16 %v8224_v0, %v2120_v40  ;;  %v2129_v3 = vmax.bf16 %v8224_v0, %v2127_v48  ;;  %v7435_v26 = vld [vmem:[%s8219_s3 + $0x30] sm:$0xff]  ;;  %v2130_v40 = vmax.bf16 %v8224_v0, %v2128_v13  ;;  %v7450_v13 = vld [vmem:[%s8218_s2 + $0x48] sm:$0xff] }
  0xab   :  { %v7385_v46 = vpop.permute.xlu1 %475  ;;  %v7387_v31 = vpop.permute.xlu0 %470  ;;  %v2086_v60 = vadd.f32 %v2084_v57, %v2078_v14  ;;  %v2115_v57 = vunpack.c.l.bf16 %v2113_v47  ;;  %v2137_v24 = vmax.bf16 %v8224_v0, %v2135_v49  ;;  %v5532_v49 = vld [vmem:[%s8217_s1 + $0x38] sm:$0xff]  }
  0xac   :  { %1748 = vperm.xlu1 %5506, %v7359_v56   ;;  %1743 = vperm.xlu0 %5505, %v7369_v29   ;;  %v2093_v32 = vadd.f32 %v2091_v15, %v2085_v8  ;;  %v2124_v47 = vunpack.c.l.bf16 %v2122_v18  ;;  %v2131_v25 = vunpack.c.l.bf16 %v2129_v3 }
  0xad   :  { %v2094_v37 = vadd.f32 %v2092_v28, %v2086_v60  ;;  %v2123_v28 = vunpack.c.l.bf16 %v2121_v12  ;;  %v2138_v60 = vmax.bf16 %v8224_v0, %v2136_v1  ;;  %v2146_v12 = vmax.bf16 %v8224_v0, %v2144_v45  ;;  %v7477_v45 = vld [vmem:[%s8219_s3 + $0x40] sm:$0xff] }
  0xae   :  { %v2101_v58 = vadd.f32 %v2099_v42, %v2093_v32  ;;  %v7460_v32 = vld [vmem:[%s8218_s2 + $0x40] sm:$0xff] }
  0xaf   :  { %v7414_v19 = vpop.permute.xlu1 %587  ;;  %v7416_v41 = vpop.permute.xlu0 %582  ;;  %v2102_v15 = vadd.f32 %v2100_v23, %v2094_v37  ;;  %v2139_v37 = vunpack.c.l.bf16 %v2137_v24 }
  0xb0   :  { %1860 = vperm.xlu1 %5506, %v7425_v51   ;;  %1855 = vperm.xlu0 %5505, %v7435_v26   ;;  %v2109_v14 = vadd.f32 %v2107_v54, %v2101_v58  ;;  %v2132_v54 = vunpack.c.l.bf16 %v2130_v40  ;;  %v2140_v58 = vunpack.c.l.bf16 %v2138_v60  ;;  %v2148_v40 = vunpack.c.l.bf16 %v2146_v12  ;;  %v7504_v12 = vld [vmem:[%s8219_s3 + $0x58] sm:$0xff] }
  0xb1   :  { %5338 = vmatmul.mubr.msk.bf16.gmra.mrb[24].mxu0 %vm300_vm0, %v5530_v62  ;;  %v2110_v42 = vadd.f32 %v2108_v5, %v2102_v15  ;;  %v2145_v62 = vmax.bf16 %v8224_v0, %v2143_v2 }
  0xb2   :  { %5341 = vmatprep.mubr.msk.bf16.mxu0 %vm300_vm0, %v5531_v16  ;;  %v2117_v23 = vadd.f32 %v2115_v57, %v2109_v14  ;;  %v7471_v57 = vld [vmem:[%s8219_s3 + $0x48] sm:$0xff] }
  0xb3   :  { %v7441_v48 = vpop.permute.xlu1 %485  ;;  %v7443_v8 = vpop.permute.xlu0 %480  ;;  %v2118_v16 = vadd.f32 %v2116_v22, %v2110_v42  ;;  %v2147_v15 = vunpack.c.l.bf16 %v2145_v62 }
  0xb4   :  { %8228 = vst [vmem:[#allocation6_spill] sm:$0xff] %v7441_v48  ;;  %1758 = vperm.xlu1 %5506, %v7450_v13   ;;  %1753 = vperm.xlu0 %5505, %v7460_v32   ;;  %v2125_v1 = vadd.f32 %v2123_v28, %v2117_v23  ;;  %v7494_v23 = vld [vmem:[%s8218_s2 + $0x50] sm:$0xff] }
  0xb5   :  { %v2126_v2 = vadd.f32 %v2124_v47, %v2118_v16  ;;  %v7488_v47 = vld [vmem:[%s8218_s2 + $0x58] sm:$0xff] }
  0xb6   :  { %v2133_v3 = vadd.f32 %v2131_v25, %v2125_v1  ;;  %v7510_v1 = vld [vmem:[%s8219_s3 + $0x50] sm:$0xff] }
  0xb7   :  { %v7464_v5 = vpop.permute.xlu1 %597  ;;  %v7466_v18 = vpop.permute.xlu0 %592  ;;  %v2134_v22 = vadd.f32 %v2132_v54, %v2126_v2  ;;  %v5528_v2 = vld [vmem:[%s8217_s1 + $0x8] sm:$0xff]  }
  0xb8   :  { %8229 = vst [vmem:[#allocation7_spill] sm:$0xff] %v7464_v5  ;;  %8230 = vst [vmem:[#allocation8_spill] sm:$0xff] %v7466_v18  ;;  %1870 = vperm.xlu1 %5506, %v7471_v57   ;;  %1865 = vperm.xlu0 %5505, %v7477_v45   ;;  %v2141_v14 = vadd.f32 %v2139_v37, %v2133_v3 }
  0xb9   :  { %5342 = vmatmul.mubr.msk.bf16.gmra.mrb[28].mxu0 %vm300_vm0, %v5532_v49  ;;  %v2142_v42 = vadd.f32 %v2140_v58, %v2134_v22  ;;  %v5533_v58 = vld [vmem:[%s8217_s1 + $0x10] sm:$0xff]   ;;  %v7526_v22 = vld [vmem:[%s8218_s2 + $0x68] sm:$0xff] }
  0xba   :  { %v2149_v60 = vadd.f32 %v2147_v15, %v2141_v14 }
  0xbb   :  { %v7481_v28 = vpop.permute.xlu1 %495  ;;  %v7483_v24 = vpop.permute.xlu0 %490  ;;  %v2150_v25 = vadd.f32 %v2148_v40, %v2142_v42  ;;  %v7532_v40 = vld [vmem:[%s8218_s2 + $0x60] sm:$0xff] }
  0xbc   :  { %8231 = vst [vmem:[#allocation9_spill] sm:$0xff] %v7481_v28  ;;  %1768 = vperm.xlu1 %5506, %v7488_v47   ;;  %1763 = vperm.xlu0 %5505, %v7494_v23   ;;  %v2151_v62 = vmul.f32 0.04, %v2149_v60  ;;  %v7544_v60 = vld [vmem:[%s8219_s3 + $0x68] sm:$0xff] }
  0xbd   :  { %v2152_v54 = vmul.f32 0.04, %v2150_v25  ;;  %v7551_v25 = vld [vmem:[%s8219_s3 + $0x60] sm:$0xff] }
  0xbf   :  { %v7497_v49 = vpop.permute.xlu1 %607  ;;  %v7499_v16 = vpop.permute.xlu0 %602  ;;  %v2153_v37 = vpack.c.bf16 %v2152_v54, %v2151_v62  ;;  %v5534_v62 = vld [vmem:[%s8217_s1 + $0x18] sm:$0xff]   ;;  %v5535_v54 = vld [vmem:[%s8217_s1 + $0x20] sm:$0xff]  }
  0xc0   :  { %8232 = vst [vmem:[#allocation10_spill] sm:$0xff] %v7497_v49  ;;  %8233 = vst [vmem:[#allocation11_spill] sm:$0xff] %v7499_v16  ;;  %1880 = vperm.xlu1 %5506, %v7504_v12   ;;  %1875 = vperm.xlu0 %5505, %v7510_v1  }
  0xc1   :  { %5345 = vmatprep.subr.bf16.mxu1 %v2153_v37 }
  0xc2   :  { %5346 = vmatpush3.bf16.msra.mxu1 %v2153_v37 }
  0xc3   :  { %v7519_v3 = vpop.permute.xlu1 %505  ;;  %v7521_v15 = vpop.permute.xlu0 %500  ;;  %5363 = vmatprep.subr.bf16.mxu1 %v8224_v0  ;;  %v7573_v0 = vld [vmem:[%s8218_s2 + $0x70] sm:$0xff] }
  0xc4   :  { %8234 = vst [vmem:[#allocation12_spill] sm:$0xff] %v7519_v3  ;;  %8235 = vst [vmem:[#allocation13_spill] sm:$0xff] %v7521_v15  ;;  %1778 = vperm.xlu1 %5506, %v7526_v22   ;;  %1773 = vperm.xlu0 %5505, %v7532_v40   ;;  %v5536_v15 = vld [vmem:[%s8217_s1 + $0x28] sm:$0xff]  }
  0xc5   :  { %5348 = vmatmul.mubr.msk.bf16.vlgmr.msra.gmra.mrb[16].mxu1 %vm300_vm0, %v5528_v2 }
  0xc6   :  { %5351 = vmatprep.mubr.msk.bf16.mxu1 %vm300_vm0, %v5533_v58  ;;  %v7567_v58 = vld [vmem:[%s8218_s2 + $0x78] sm:$0xff] }
  0xc7   :  { %v7536_v14 = vpop.permute.xlu1 %617  ;;  %v7538_v42 = vpop.permute.xlu0 %612 }
  0xc8   :  { %8236 = vst [vmem:[#allocation14_spill] sm:$0xff] %v7536_v14  ;;  %8237 = vst [vmem:[#allocation15_spill] sm:$0xff] %v7538_v42  ;;  %1890 = vperm.xlu1 %5506, %v7544_v60   ;;  %1885 = vperm.xlu0 %5505, %v7551_v25  }
  0xcb   :  { %v7560_v37 = vpop.permute.xlu1 %515  ;;  %v7562_v2 = vpop.permute.xlu0 %510 }
  0xcc   :  { %8238 = vst [vmem:[#allocation16_spill] sm:$0xff] %v7560_v37  ;;  %8239 = vst [vmem:[#allocation17_spill] sm:$0xff] %v7562_v2  ;;  %1788 = vperm.xlu1 %5506, %v7567_v58   ;;  %1783 = vperm.xlu0 %5505, %v7573_v0  }
  0xcd   :  { %5352 = vmatmul.mubr.msk.bf16.gmra.mrb[20].mxu1 %vm300_vm0, %v5534_v62  ;;  %v5537_v62 = vld [vmem:[%s8217_s1 + $0x30] sm:$0xff]  }
  0xce   :  { %5355 = vmatprep.mubr.msk.bf16.mxu1 %vm300_vm0, %v5535_v54 }
  0xcf   :  { %v7576_v14 = vpop.permute.xlu1 %627  ;;  %v7578_v3 = vpop.permute.xlu0 %622 }
  0xd0   :  { %8240 = vst [vmem:[#allocation18_spill] sm:$0xff] %v7576_v14  ;;  %8241 = vst [vmem:[#allocation19_spill] sm:$0xff] %v7578_v3  ;;  %1900 = vperm.xlu1 %5506, %v7093_v34   ;;  %1895 = vperm.xlu0 %5505, %v7107_v21  }
  0xd3   :  { %v7584_v42 = vpop.permute.xlu1 %1082  ;;  %v7586_v37 = vpop.permute.xlu0 %1077 }
  0xd4   :  { %2354 = vperm.xlu1 %5506, %v7118_v55   ;;  %2349 = vperm.xlu0 %5505, %v7130_v11   ;;  %v5538_v11 = vld [vmem:[%s8217_s1 + $0x38] sm:$0xff]  }
  0xd5   :  { %5356 = vmatmul.mubr.msk.bf16.gmra.mrb[24].mxu1 %vm300_vm0, %v5536_v15 }
  0xd6   :  { %5359 = vmatprep.mubr.msk.bf16.mxu1 %vm300_vm0, %v5537_v62 }
  0xd7   :  { %v7596_v34 = vpop.permute.xlu1 %1194  ;;  %v7598_v54 = vpop.permute.xlu0 %1189 }
  0xd8   :  { %2466 = vperm.xlu1 %5506, %v7167_v50   ;;  %2461 = vperm.xlu0 %5505, %v7172_v30  }
  0xdb   :  { %v7604_v21 = vpop.permute.xlu1 %1092  ;;  %v7606_v55 = vpop.permute.xlu0 %1087 }
  0xdc   :  { %2364 = vperm.xlu1 %5506, %v7203_v7   ;;  %2359 = vperm.xlu0 %5505, %v7215_v6  }
  0xdd   :  { %5360 = vmatmul.mubr.msk.bf16.gmra.mrb[28].mxu1 %vm300_vm0, %v5538_v11 }
  0xdf   :  { %v7613_v14 = vpop.permute.xlu1 %1204  ;;  %v7615_v15 = vpop.permute.xlu0 %1199 }
  0xe0   :  { %2476 = vperm.xlu1 %5506, %v7245_v39   ;;  %2471 = vperm.xlu0 %5505, %v7256_v53  }
  0xe3   :  { %v7620_v50 = vpop.permute.xlu1 %1102  ;;  %v7622_v30 = vpop.permute.xlu0 %1097 }
  0xe4   :  { %2374 = vperm.xlu1 %5506, %v7285_v52   ;;  %2369 = vperm.xlu0 %5505, %v7296_v36  }
  0xe7   :  { %v7626_v7 = vpop.permute.xlu1 %1214  ;;  %v7628_v6 = vpop.permute.xlu0 %1209 }
  0xe8   :  { %2486 = vperm.xlu1 %5506, %v7320_v4   ;;  %2481 = vperm.xlu0 %5505, %v7331_v38  }
  0xeb   :  { %v7632_v62 = vpop.permute.xlu1 %1112  ;;  %v7634_v39 = vpop.permute.xlu0 %1107 }
  0xec   :  { %2384 = vperm.xlu1 %5506, %v7359_v56   ;;  %2379 = vperm.xlu0 %5505, %v7369_v29  }
  0xef   :  { %v7638_v53 = vpop.permute.xlu1 %1224  ;;  %v7640_v52 = vpop.permute.xlu0 %1219 }
  0xf0   :  { %2496 = vperm.xlu1 %5506, %v7425_v51   ;;  %2491 = vperm.xlu0 %5505, %v7435_v26  }
  0xf3   :  { %v7644_v36 = vpop.permute.xlu1 %1122  ;;  %v7646_v4 = vpop.permute.xlu0 %1117 }
  0xf4   :  { %2394 = vperm.xlu1 %5506, %v7450_v13   ;;  %2389 = vperm.xlu0 %5505, %v7460_v32  }
  0xf7   :  { %v7650_v38 = vpop.permute.xlu1 %1234  ;;  %v7652_v56 = vpop.permute.xlu0 %1229 }
  0xf8   :  { %2506 = vperm.xlu1 %5506, %v7471_v57   ;;  %2501 = vperm.xlu0 %5505, %v7477_v45  }
  0xfb   :  { %v7656_v29 = vpop.permute.xlu1 %1132  ;;  %v7658_v51 = vpop.permute.xlu0 %1127 }
  0xfc   :  { %2404 = vperm.xlu1 %5506, %v7488_v47   ;;  %2399 = vperm.xlu0 %5505, %v7494_v23  }
  0xff   :  { %v7662_v26 = vpop.permute.xlu1 %1244  ;;  %v7664_v13 = vpop.permute.xlu0 %1239 }
 0x100   :  { %2516 = vperm.xlu1 %5506, %v7504_v12   ;;  %2511 = vperm.xlu0 %5505, %v7510_v1  }
 0x103   :  { %v7668_v32 = vpop.permute.xlu1 %1142  ;;  %v7670_v57 = vpop.permute.xlu0 %1137 }
 0x104   :  { %2414 = vperm.xlu1 %5506, %v7526_v22   ;;  %2409 = vperm.xlu0 %5505, %v7532_v40   ;;  %v5852_v40 = vld [vmem:[%s8219_s3 + $0x78] sm:$0xff] }
 0x107   :  { %v7674_v45 = vpop.permute.xlu1 %1254  ;;  %v7676_v47 = vpop.permute.xlu0 %1249 }
 0x108   :  { %2526 = vperm.xlu1 %5506, %v7544_v60   ;;  %2521 = vperm.xlu0 %5505, %v7551_v25   ;;  %v5853_v60 = vld [vmem:[%s8219_s3 + $0x70] sm:$0xff]  ;;  %v4756_v25 = vld [vmem:[%s8222_s6 + $0x8] sm:$0xff] }
 0x10b   :  { %v7680_v23 = vpop.permute.xlu1 %1152  ;;  %v7682_v12 = vpop.permute.xlu0 %1147 }
 0x10c   :  { %2424 = vperm.xlu1 %5506, %v7567_v58   ;;  %2419 = vperm.xlu0 %5505, %v7573_v0   ;;  %v4755_v0 = vld [vmem:[%s8222_s6] sm:$0xff] }
 0x10f   :  { %v7686_v1 = vpop.permute.xlu1 %1264  ;;  %v7688_v22 = vpop.permute.xlu0 %1259 }
 0x110   :  { %2536 = vperm.xlu1 %5506, %v5852_v40   ;;  %2531 = vperm.xlu0 %5505, %v5853_v60  }
 0x113   :  { %v7702_v58 = vpop.permute.xlu1 %1718  ;;  %v7704_v11 = vpop.permute.xlu0 %1713 }
 0x114   :  { %8242 = vst [vmem:[#allocation20_spill] sm:$0xff] %v7702_v58  ;;  %8243 = vst [vmem:[#allocation21_spill] sm:$0xff] %v7704_v11  ;;  %4764 = vperm.xlu1 %5506, %v4756_v25   ;;  %4759 = vperm.xlu0 %5505, %v4755_v0  }
 0x117   :  { %v7706_v40 = vpop.permute.xlu1 %1830  ;;  %v7708_v3 = vpop.permute.xlu0 %1825 }
 0x118   :  { %8244 = vst [vmem:[#allocation22_spill] sm:$0xff] %v7706_v40  ;;  %8245 = vst [vmem:[#allocation23_spill] sm:$0xff] %v7708_v3 }
 0x11b   :  { %v7710_v2 = vpop.permute.xlu1 %1728  ;;  %v7712_v60 = vpop.permute.xlu0 %1723 }
 0x11c   :  { %8246 = vst [vmem:[#allocation24_spill] sm:$0xff] %v7710_v2  ;;  %8247 = vst [vmem:[#allocation25_spill] sm:$0xff] %v7712_v60 }
 0x11f   :  { %v7714_v5 = vpop.permute.xlu1 %1840  ;;  %v7716_v49 = vpop.permute.xlu0 %1835 }
 0x120   :  { %8248 = vst [vmem:[#allocation26_spill] sm:$0xff] %v7714_v5  ;;  %8249 = vst [vmem:[#allocation27_spill] sm:$0xff] %v7716_v49 }
 0x123   :  { %v7718_v48 = vpop.permute.xlu1 %1738  ;;  %v7720_v18 = vpop.permute.xlu0 %1733 }
 0x124   :  { %8250 = vst [vmem:[#allocation28_spill] sm:$0xff] %v7718_v48  ;;  %8251 = vst [vmem:[#allocation29_spill] sm:$0xff] %v7720_v18  ;;  %v5541_v48 = vld [vmem:[#allocation3 + $0x4] ss:$16 sps:$4 sm:$0xff]  }
 0x125   :  { %3803 = vmatprep.mubr.bf16.mxu0 %v5541_v48 }
 0x127   :  { %v7722_v58 = vpop.permute.xlu1 %1850  ;;  %v7724_v25 = vpop.permute.xlu0 %1845 }
 0x128   :  { %8252 = vst [vmem:[#allocation30_spill] sm:$0xff] %v7722_v58  ;;  %8253 = vst [vmem:[#allocation31_spill] sm:$0xff] %v7724_v25 }
 0x12b   :  { %v7726_v0 = vpop.permute.xlu1 %1748  ;;  %v7728_v40 = vpop.permute.xlu0 %1743 }
 0x12c   :  { %8254 = vst [vmem:[#allocation32_spill] sm:$0xff] %v7726_v0  ;;  %8255 = vst [vmem:[#allocation33_spill] sm:$0xff] %v7728_v40  ;;  %v5313_v3 = vpop.f32.mrb[0].mxu1 }
 0x12d   :  { %v1157_v2 = vmul.f32 %v5313_v3, %v7606_v55  ;;  %v996_v11 = vpop.f32.mrb[1].mxu1 }
 0x12e   :  { %v1155_v5 = vmul.f32 %v7586_v37, %v996_v11  ;;  %v5314_v60 = vpop.f32.mrb[2].mxu1 }
 0x12f   :  { %v7732_v49 = vpop.permute.xlu1 %1860  ;;  %v1269_v18 = vadd.f32 %v7615_v15, %v1157_v2  ;;  %v1158_v58 = vmul.f32 %v5314_v60, %v7604_v21  ;;  %v999_v28 = vpop.f32.mrb[3].mxu1 }
 0x130   :  { %8256 = vst [vmem:[#allocation34_spill] sm:$0xff] %v7732_v49  ;;  %v7736_v25 = vpop.permute.xlu0 %1855  ;;  %v1267_v0 = vadd.f32 %v7598_v54, %v1155_v5  ;;  %v1156_v40 = vmul.f32 %v7584_v42, %v999_v28 }
 0x131   :  { %v1270_v3 = vadd.f32 %v7613_v14, %v1158_v58  ;;  %v1285_v11 = vmax.f32 %v1269_v18, 0.0 }
 0x132   :  { %v1268_v37 = vadd.f32 %v7596_v34, %v1156_v40  ;;  %v1283_v2 = vmax.f32 %v1267_v0, 0.0 }
 0x133   :  { %v7742_v55 = vpop.permute.xlu1 %1758  ;;  %v1286_v49 = vmax.f32 %v1270_v3, 0.0 }
 0x134   :  { %v7744_v16 = vpop.permute.xlu0 %1753  ;;  %v1284_v21 = vmax.f32 %v1268_v37, 0.0  ;;  %v5317_v15 = vpop.f32.mrb[4].mxu1 }
 0x135   :  { %v1300_v60 = vpack.c.bf16 %v1286_v49, %v1285_v11  ;;  %v1161_v5 = vmul.f32 %v5317_v15, %v7634_v39  ;;  %v1012_v54 = vpop.f32.mrb[5].mxu1 }
 0x136   :  { %v1299_v28 = vpack.c.bf16 %v1284_v21, %v1283_v2  ;;  %v1159_v48 = vmul.f32 %v7622_v30, %v1012_v54  ;;  %v5318_v14 = vpop.f32.mrb[6].mxu1 }
 0x137   :  { %v7748_v42 = vpop.permute.xlu1 %1870  ;;  %1308 = vst.msk [vmem:[#allocation2 + $0x48] sm:$0xff] %vm670_vm1, %v1300_v60  ;;  %v1273_v18 = vadd.f32 %v7640_v52, %v1161_v5  ;;  %v1162_v34 = vmul.f32 %v5318_v14, %v7632_v62  ;;  %v1015_v58 = vpop.f32.mrb[7].mxu1 }
 0x138   :  { %v7753_v40 = vpop.permute.xlu0 %1865  ;;  %1307 = vst.msk [vmem:[#allocation2 + $0x40] sm:$0xff] %vm670_vm1, %v1299_v28  ;;  %v1271_v49 = vadd.f32 %v7628_v6, %v1159_v48  ;;  %v1160_v39 = vmul.f32 %v7620_v50, %v1015_v58 }
 0x139   :  { %v1274_v30 = vadd.f32 %v7638_v53, %v1162_v34  ;;  %v1289_v37 = vmax.f32 %v1273_v18, 0.0 }
 0x13a   :  { %v1272_v0 = vadd.f32 %v7626_v7, %v1160_v39  ;;  %v1287_v62 = vmax.f32 %v1271_v49, 0.0 }
 0x13b   :  { %v7760_v3 = vpop.permute.xlu1 %1768  ;;  %v1290_v11 = vmax.f32 %v1274_v30, 0.0 }
 0x13c   :  { %v7762_v52 = vpop.permute.xlu0 %1763  ;;  %v1288_v2 = vmax.f32 %v1272_v0, 0.0  ;;  %v5321_v21 = vpop.f32.mrb[8].mxu1 }
 0x13d   :  { %v1302_v15 = vpack.c.bf16 %v1290_v11, %v1289_v37  ;;  %v1165_v60 = vmul.f32 %v5321_v21, %v7658_v51  ;;  %v1028_v5 = vpop.f32.mrb[9].mxu1 }
 0x13e   :  { %v1301_v6 = vpack.c.bf16 %v1288_v2, %v1287_v62  ;;  %v1163_v50 = vmul.f32 %v7646_v4, %v1028_v5  ;;  %v5322_v54 = vpop.f32.mrb[10].mxu1 }
 0x13f   :  { %v7766_v53 = vpop.permute.xlu1 %1880  ;;  %1310 = vst.msk [vmem:[#allocation2 + $0x58] sm:$0xff] %vm670_vm1, %v1302_v15  ;;  %v1277_v7 = vadd.f32 %v7664_v13, %v1165_v60  ;;  %v1166_v28 = vmul.f32 %v5322_v54, %v7656_v29  ;;  %v1031_v48 = vpop.f32.mrb[11].mxu1 }
 0x140   :  { %v7771_v14 = vpop.permute.xlu0 %1875  ;;  %1309 = vst.msk [vmem:[#allocation2 + $0x50] sm:$0xff] %vm670_vm1, %v1301_v6  ;;  %v1275_v51 = vadd.f32 %v7652_v56, %v1163_v50  ;;  %v1164_v18 = vmul.f32 %v7644_v36, %v1031_v48  ;;  %v5559_v50 = vld [vmem:[#allocation3 + $0xac] ss:$16 sps:$4 sm:$0xff]  }
 0x141   :  { %v1278_v4 = vadd.f32 %v7662_v26, %v1166_v28  ;;  %v1293_v49 = vmax.f32 %v1277_v7, 0.0  ;;  %4260 = vmatprep.mubr.bf16.mxu1 %v5559_v50 }
 0x142   :  { %v1276_v34 = vadd.f32 %v7650_v38, %v1164_v18  ;;  %v1291_v29 = vmax.f32 %v1275_v51, 0.0 }
 0x143   :  { %v7778_v58 = vpop.permute.xlu1 %1778  ;;  %v1294_v39 = vmax.f32 %v1278_v4, 0.0 }
 0x144   :  { %v7780_v13 = vpop.permute.xlu0 %1773  ;;  %v1292_v30 = vmax.f32 %v1276_v34, 0.0  ;;  %v5325_v0 = vpop.f32.mrb[12].mxu1 }
 0x145   :  { %v1304_v37 = vpack.c.bf16 %v1294_v39, %v1293_v49  ;;  %v1169_v11 = vmul.f32 %v5325_v0, %v7682_v12  ;;  %v1044_v62 = vpop.f32.mrb[13].mxu1 }
 0x146   :  { %v1303_v56 = vpack.c.bf16 %v1292_v30, %v1291_v29  ;;  %v1167_v36 = vmul.f32 %v7670_v57, %v1044_v62  ;;  %v5326_v2 = vpop.f32.mrb[14].mxu1 }
 0x147   :  { %1312 = vst.msk [vmem:[#allocation2 + $0x68] sm:$0xff] %vm670_vm1, %v1304_v37  ;;  %v1281_v38 = vadd.f32 %v7688_v22, %v1169_v11  ;;  %v1170_v26 = vmul.f32 %v5326_v2, %v7680_v23  ;;  %v1047_v21 = vpop.f32.mrb[15].mxu1  ;;  %v7792_v5 = vpop.permute.xlu1 %1890 }
 0x148   :  { %v7787_v15 = vpop.permute.xlu0 %1885  ;;  %1311 = vst.msk [vmem:[#allocation2 + $0x60] sm:$0xff] %vm670_vm1, %v1303_v56  ;;  %v1279_v60 = vadd.f32 %v7676_v47, %v1167_v36  ;;  %v1168_v12 = vmul.f32 %v7668_v32, %v1047_v21 }
 0x149   :  { %v1282_v57 = vadd.f32 %v7686_v1, %v1170_v26  ;;  %v1297_v54 = vmax.f32 %v1281_v38, 0.0 }
 0x14a   :  { %v1280_v6 = vadd.f32 %v7674_v45, %v1168_v12  ;;  %v1295_v7 = vmax.f32 %v1279_v60, 0.0 }
 0x14b   :  { %v1298_v22 = vmax.f32 %v1282_v57, 0.0  ;;  %v7799_v4 = vpop.permute.xlu1 %1788 }
 0x14c   :  { %v1296_v23 = vmax.f32 %v1280_v6, 0.0  ;;  %v7796_v28 = vpop.permute.xlu0 %1783  ;;  %v5295_v48 = vpop.f32.mrb[0].mxu0 }
 0x14d   :  { %v1306_v51 = vpack.c.bf16 %v1298_v22, %v1297_v54  ;;  %v520_v47 = vmul.f32 %v5295_v48, %v7240_v17  ;;  %v359_v18 = vpop.f32.mrb[1].mxu0 }
 0x14e   :  { %v1305_v32 = vpack.c.bf16 %v1296_v23, %v1295_v7  ;;  %v518_v1 = vmul.f32 %v7154_v35, %v359_v18  ;;  %v5296_v34 = vpop.f32.mrb[2].mxu0 }
 0x14f   :  { %1314 = vst.msk [vmem:[#allocation2 + $0x78] sm:$0xff] %vm670_vm1, %v1306_v51  ;;  %v632_v45 = vadd.f32 %v7280_v10, %v520_v47  ;;  %v521_v49 = vmul.f32 %v5296_v34, %v7238_v44  ;;  %v362_v39 = vpop.f32.mrb[3].mxu0  ;;  %v7812_v62 = vpop.permute.xlu1 %1900 }
 0x150   :  { %1313 = vst.msk [vmem:[#allocation2 + $0x70] sm:$0xff] %vm670_vm1, %v1305_v32  ;;  %v630_v29 = vadd.f32 %v7152_v20, %v518_v1  ;;  %v519_v17 = vmul.f32 %v7198_v27, %v362_v39  ;;  %v7809_v0 = vpop.permute.xlu0 %1895  ;;  %v8260_v39 = vld [vmem:[#allocation6_spill] sm:$0xff] }
 0x151   :  { %v633_v30 = vadd.f32 %v7278_v61, %v521_v49  ;;  %v648_v37 = vmax.f32 %v632_v45, 0.0 }
 0x152   :  { %v631_v35 = vadd.f32 %v7196_v59, %v519_v17  ;;  %v646_v10 = vmax.f32 %v630_v29, 0.0  ;;  %v8261_v17 = vld [vmem:[#allocation10_spill] sm:$0xff] }
 0x153   :  { %v649_v11 = vmax.f32 %v633_v30, 0.0  ;;  %v7825_v6 = vpop.permute.xlu1 %2354  ;;  %v8262_v30 = vmov 0  }
 0x154   :  { %v647_v56 = vmax.f32 %v631_v35, 0.0  ;;  %v5299_v44 = vpop.f32.mrb[4].mxu0  ;;  %v7819_v60 = vpop.permute.xlu0 %2349  ;;  %v8263_v35 = vld [vmem:[#allocation7_spill] sm:$0xff] }
 0x155   :  { %v663_v36 = vpack.c.bf16 %v649_v11, %v648_v37  ;;  %v524_v2 = vmul.f32 %v5299_v44, %v7387_v31  ;;  %v375_v38 = vpop.f32.mrb[5].mxu0 }
 0x156   :  { %v662_v20 = vpack.c.bf16 %v647_v56, %v646_v10  ;;  %v522_v27 = vmul.f32 %v7315_v63, %v375_v38  ;;  %v5300_v26 = vpop.f32.mrb[6].mxu0 }
 0x157   :  { %672 = vst.msk [vmem:[#allocation2 + $0x8] sm:$0xff] %vm670_vm1, %v663_v36  ;;  %v636_v61 = vadd.f32 %v7416_v41, %v524_v2  ;;  %v525_v59 = vmul.f32 %v5300_v26, %v7385_v46  ;;  %v378_v21 = vpop.f32.mrb[7].mxu0  ;;  %v7835_v45 = vpop.permute.xlu1 %2466 }
 0x158   :  { %671 = vst.msk [vmem:[#allocation2] sm:$0xff] %vm670_vm1, %v662_v20  ;;  %v634_v12 = vadd.f32 %v7354_v43, %v522_v27  ;;  %v523_v31 = vmul.f32 %v7313_v33, %v378_v21  ;;  %v7829_v51 = vpop.permute.xlu0 %2461  ;;  %v8264_v27 = vld [vmem:[#allocation17_spill] sm:$0xff] }
 0x159   :  { %v637_v57 = vadd.f32 %v7414_v19, %v525_v59  ;;  %v652_v50 = vmax.f32 %v636_v61, 0.0  ;;  %v8257_v19 = vld [vmem:[#allocation11_spill] sm:$0xff] }
 0x15a   :  { %v635_v63 = vadd.f32 %v7352_v9, %v523_v31  ;;  %v650_v41 = vmax.f32 %v634_v12, 0.0  ;;  %v8258_v9 = vld [vmem:[#allocation9_spill] sm:$0xff] }
 0x15b   :  { %v653_v54 = vmax.f32 %v637_v57, 0.0  ;;  %v7847_v59 = vpop.permute.xlu1 %2364  ;;  %v8265_v12 = vld [vmem:[#allocation13_spill] sm:$0xff] }
 0x15c   :  { %v651_v22 = vmax.f32 %v635_v63, 0.0  ;;  %v5303_v46 = vpop.f32.mrb[8].mxu0  ;;  %v7843_v44 = vpop.permute.xlu0 %2359  ;;  %v8266_v63 = vld [vmem:[#allocation19_spill] sm:$0xff] }
 0x15d   :  { %v665_v7 = vpack.c.bf16 %v653_v54, %v652_v50  ;;  %v528_v23 = vmul.f32 %v5303_v46, %v7483_v24  ;;  %v391_v48 = vpop.f32.mrb[9].mxu0  ;;  %v8259_v24 = vld [vmem:[#allocation8_spill] sm:$0xff] }
 0x15e   :  { %v664_v43 = vpack.c.bf16 %v651_v22, %v650_v41  ;;  %v526_v33 = vmul.f32 %v7443_v8, %v391_v48  ;;  %v5304_v47 = vpop.f32.mrb[10].mxu0  ;;  %v2780_v56 = vld [vmem:[#allocation2 + $0x8] sm:$0xff]  ;;  %v8267_v54 = vld [vmem:[#allocation16_spill] sm:$0xff] }
 0x15f   :  { %674 = vst.msk [vmem:[#allocation2 + $0x18] sm:$0xff] %vm670_vm1, %v665_v7  ;;  %v640_v18 = vadd.f32 %v8257_v19, %v528_v23  ;;  %v529_v32 = vmul.f32 %v5304_v47, %v8258_v9  ;;  %v394_v1 = vpop.f32.mrb[11].mxu0  ;;  %v2779_v34 = vld [vmem:[#allocation2] sm:$0xff]  ;;  %v8268_v7 = vld [vmem:[#allocation15_spill] sm:$0xff]  ;;  %v8269_v48 = vld [vmem:[#allocation12_spill] sm:$0xff] }
 0x160   :  { %673 = vst.msk [vmem:[#allocation2 + $0x10] sm:$0xff] %vm670_vm1, %v664_v43  ;;  %v638_v49 = vadd.f32 %v8259_v24, %v526_v33  ;;  %v527_v29 = vmul.f32 %v8260_v39, %v394_v1  ;;  %3772 = vmatpush1.bf16.msra.mxu0 %v2779_v34  ;;  %v8270_v33 = vld [vmem:[#allocation18_spill] sm:$0xff]  ;;  %v7858_v19 = vpop.permute.xlu0 %2471  ;;  %v7861_v24 = vpop.permute.xlu1 %2476 }
 0x161   :  { %v641_v8 = vadd.f32 %v8261_v17, %v529_v32  ;;  %3773 = vmatprep.subr.bf16.mxu0 %v8262_v30  ;;  %v656_v11 = vmax.f32 %v640_v18, 0.0  ;;  %v8271_v18 = vld [vmem:[#allocation14_spill] sm:$0xff] }
 0x162   :  { %v639_v37 = vadd.f32 %v8263_v35, %v527_v29  ;;  %v654_v36 = vmax.f32 %v638_v49, 0.0 }
 0x163   :  { %v657_v10 = vmax.f32 %v641_v8, 0.0 }
 0x164   :  { %v655_v2 = vmax.f32 %v639_v37, 0.0  ;;  %v5307_v38 = vpop.f32.mrb[12].mxu0  ;;  %3774 = vmatpush1.bf16.msra.mxu0 %v2780_v56  ;;  %v7865_v35 = vpop.permute.xlu0 %2369  ;;  %v8272_v56 = vld [vmem:[#allocation25_spill] sm:$0xff] }
 0x165   :  { %v667_v20 = vpack.c.bf16 %v657_v10, %v656_v11  ;;  %v532_v26 = vmul.f32 %v5307_v38, %v8264_v27  ;;  %v407_v61 = vpop.f32.mrb[13].mxu0  ;;  %3775 = vmatprep.subr.bf16.mxu0 %v8262_v30  ;;  %v7869_v37 = vpop.permute.xlu1 %2374 }
 0x166   :  { %v666_v21 = vpack.c.bf16 %v655_v2, %v654_v36  ;;  %v530_v31 = vmul.f32 %v8265_v12, %v407_v61  ;;  %v5308_v57 = vpop.f32.mrb[14].mxu0  ;;  %v2782_v34 = vld [vmem:[#allocation2 + $0x18] sm:$0xff]  ;;  %v8274_v61 = vld [vmem:[#allocation27_spill] sm:$0xff]  ;;  %v8275_v12 = vld [vmem:[#allocation24_spill] sm:$0xff] }
 0x167   :  { %676 = vst.msk [vmem:[#allocation2 + $0x28] sm:$0xff] %vm670_vm1, %v667_v20  ;;  %v644_v50 = vadd.f32 %v8266_v63, %v532_v26  ;;  %v533_v41 = vmul.f32 %v5308_v57, %v8267_v54  ;;  %v410_v22 = vpop.f32.mrb[15].mxu0  ;;  %v2781_v46 = vld [vmem:[#allocation2 + $0x10] sm:$0xff]  ;;  %v8273_v20 = vld [vmem:[#allocation21_spill] sm:$0xff]  ;;  %v8276_v54 = vld [vmem:[#allocation23_spill] sm:$0xff] }
 0x168   :  { %675 = vst.msk [vmem:[#allocation2 + $0x20] sm:$0xff] %vm670_vm1, %v666_v21  ;;  %v642_v23 = vadd.f32 %v8268_v7, %v530_v31  ;;  %v531_v43 = vmul.f32 %v8269_v48, %v410_v22  ;;  %3776 = vmatpush1.bf16.msra.mxu0 %v2781_v46  ;;  %v7873_v38 = vpop.permute.xlu0 %2481  ;;  %v8277_v22 = vld [vmem:[#allocation20_spill] sm:$0xff]  ;;  %v8278_v7 = vld [vmem:[#allocation26_spill] sm:$0xff] }
 0x169   :  { %v645_v47 = vadd.f32 %v8270_v33, %v533_v41  ;;  %3777 = vmatprep.subr.bf16.mxu0 %v8262_v30  ;;  %v660_v32 = vmax.f32 %v644_v50, 0.0  ;;  %v7878_v50 = vpop.permute.xlu1 %2486  ;;  %v8279_v48 = vld [vmem:[#allocation22_spill] sm:$0xff] }
 0x16a   :  { %v643_v9 = vadd.f32 %v8271_v18, %v531_v43  ;;  %v658_v49 = vmax.f32 %v642_v23, 0.0 }
 0x16b   :  { %v661_v1 = vmax.f32 %v645_v47, 0.0 }
 0x16c   :  { %v659_v39 = vmax.f32 %v643_v9, 0.0  ;;  %3778 = vmatpush1.bf16.msra.mxu0 %v2782_v34  ;;  %v7885_v9 = vpop.permute.xlu0 %2379 }
 0x16d   :  { %v669_v29 = vpack.c.bf16 %v661_v1, %v660_v32  ;;  %3779 = vmatprep.subr.bf16.mxu0 %v8262_v30 }
 0x16e   :  { %v668_v17 = vpack.c.bf16 %v659_v39, %v658_v49  ;;  %v2784_v11 = vld [vmem:[#allocation2 + $0x28] sm:$0xff]  ;;  %v8280_v39 = vld [vmem:[#allocation33_spill] sm:$0xff] }
 0x16f   :  { %678 = vst.msk [vmem:[#allocation2 + $0x38] sm:$0xff] %vm670_vm1, %v669_v29  ;;  %v2783_v8 = vld [vmem:[#allocation2 + $0x20] sm:$0xff] }
 0x170   :  { %677 = vst.msk [vmem:[#allocation2 + $0x30] sm:$0xff] %vm670_vm1, %v668_v17  ;;  %3780 = vmatpush1.bf16.msra.mxu0 %v2783_v8  ;;  %v7889_v8 = vpop.permute.xlu1 %2384 }
 0x171   :  { %3781 = vmatprep.subr.bf16.mxu0 %v8262_v30 }
 0x174   :  { %v5331_v10 = vpop.f32.mrb[16].mxu0  ;;  %3782 = vmatpush1.bf16.msra.mxu0 %v2784_v11 }
 0x175   :  { %v1793_v36 = vmul.f32 %v5331_v10, %v8272_v56  ;;  %v1632_v2 = vpop.f32.mrb[17].mxu0  ;;  %3783 = vmatprep.subr.bf16.mxu0 %v8262_v30  ;;  %v8281_v10 = vld [vmem:[#allocation29_spill] sm:$0xff] }
 0x176   :  { %v1791_v27 = vmul.f32 %v8273_v20, %v1632_v2  ;;  %v5332_v26 = vpop.f32.mrb[18].mxu0  ;;  %v2786_v18 = vld [vmem:[#allocation2 + $0x38] sm:$0xff]  ;;  %v8282_v20 = vld [vmem:[#allocation32_spill] sm:$0xff] }
 0x177   :  { %v1905_v21 = vadd.f32 %v8274_v61, %v1793_v36  ;;  %v1794_v31 = vmul.f32 %v5332_v26, %v8275_v12  ;;  %v1635_v57 = vpop.f32.mrb[19].mxu0  ;;  %v2785_v63 = vld [vmem:[#allocation2 + $0x30] sm:$0xff]  ;;  %v2787_v61 = vld [vmem:[#allocation2 + $0x40] sm:$0xff] }
 0x178   :  { %v1903_v41 = vadd.f32 %v8276_v54, %v1791_v27  ;;  %v1792_v46 = vmul.f32 %v8277_v22, %v1635_v57  ;;  %3784 = vmatpush1.bf16.msra.mxu0 %v2785_v63  ;;  %v8285_v63 = vld [vmem:[#allocation34_spill] sm:$0xff] }
 0x179   :  { %v1906_v23 = vadd.f32 %v8278_v7, %v1794_v31  ;;  %3785 = vmatprep.subr.bf16.mxu0 %v8262_v30  ;;  %v1921_v33 = vmax.f32 %v1905_v21, 0.0  ;;  %v8283_v21 = vld [vmem:[#allocation31_spill] sm:$0xff]  ;;  %v8284_v31 = vld [vmem:[#allocation28_spill] sm:$0xff]  ;;  %v8286_v22 = vld [vmem:[#allocation30_spill] sm:$0xff] }
 0x17a   :  { %v1904_v43 = vadd.f32 %v8279_v48, %v1792_v46  ;;  %v1919_v32 = vmax.f32 %v1903_v41, 0.0  ;;  %v7900_v41 = vpop.permute.xlu0 %2491  ;;  %v7903_v48 = vpop.permute.xlu1 %2496 }
 0x17b   :  { %v1922_v47 = vmax.f32 %v1906_v23, 0.0  ;;  %v2788_v23 = vld [vmem:[#allocation2 + $0x48] sm:$0xff] }
 0x17c   :  { %v1920_v1 = vmax.f32 %v1904_v43, 0.0  ;;  %v5335_v34 = vpop.f32.mrb[20].mxu0  ;;  %3786 = vmatpush1.bf16.msra.mxu0 %v2786_v18 }
 0x17d   :  { %v1936_v49 = vpack.c.bf16 %v1922_v47, %v1921_v33  ;;  %v1797_v29 = vmul.f32 %v5335_v34, %v8280_v39  ;;  %v1648_v17 = vpop.f32.mrb[21].mxu0  ;;  %3787 = vmatprep.subr.bf16.mxu0 %v8262_v30 }
 0x17e   :  { %v1935_v11 = vpack.c.bf16 %v1920_v1, %v1919_v32  ;;  %v1795_v56 = vmul.f32 %v8281_v10, %v1648_v17  ;;  %v5336_v36 = vpop.f32.mrb[22].mxu0 }
 0x17f   :  { %1944 = vst.msk [vmem:[#allocation2 + $0x88] sm:$0xff] %vm670_vm1, %v1936_v49  ;;  %v1909_v2 = vadd.f32 %v7736_v25, %v1797_v29  ;;  %v1798_v27 = vmul.f32 %v5336_v36, %v8282_v20  ;;  %v1651_v26 = vpop.f32.mrb[23].mxu0  ;;  %v7913_v36 = vpop.permute.xlu0 %2389 }
 0x180   :  { %1943 = vst.msk [vmem:[#allocation2 + $0x80] sm:$0xff] %vm670_vm1, %v1935_v11  ;;  %v1907_v12 = vadd.f32 %v8283_v21, %v1795_v56  ;;  %v1796_v57 = vmul.f32 %v8284_v31, %v1651_v26  ;;  %3788 = vmatpush1.bf16.msra.mxu0 %v2787_v61  ;;  %v2789_v56 = vld [vmem:[#allocation2 + $0x50] sm:$0xff] }
 0x181   :  { %v1910_v54 = vadd.f32 %v8285_v63, %v1798_v27  ;;  %3789 = vmatprep.subr.bf16.mxu0 %v8262_v30  ;;  %v1925_v25 = vmax.f32 %v1909_v2, 0.0 }
 0x182   :  { %v1908_v46 = vadd.f32 %v8286_v22, %v1796_v57  ;;  %v1923_v43 = vmax.f32 %v1907_v12, 0.0 }
 0x183   :  { %v1926_v7 = vmax.f32 %v1910_v54, 0.0 }
 0x184   :  { %v1924_v33 = vmax.f32 %v1908_v46, 0.0  ;;  %v5339_v47 = vpop.f32.mrb[24].mxu0  ;;  %3790 = vmatpush1.bf16.msra.mxu0 %v2788_v23 }
 0x185   :  { %v1938_v18 = vpack.c.bf16 %v1926_v7, %v1925_v25  ;;  %v1801_v32 = vmul.f32 %v5339_v47, %v7762_v52  ;;  %v1664_v1 = vpop.f32.mrb[25].mxu0  ;;  %3791 = vmatprep.subr.bf16.mxu0 %v8262_v30 }
 0x186   :  { %v1937_v34 = vpack.c.bf16 %v1924_v33, %v1923_v43  ;;  %v1799_v49 = vmul.f32 %v7744_v16, %v1664_v1  ;;  %v5340_v39 = vpop.f32.mrb[26].mxu0  ;;  %v7925_v26 = vld [vmem:[#allocation2 + $0x88] sm:$0xff] }
 0x187   :  { %1946 = vst.msk [vmem:[#allocation2 + $0x98] sm:$0xff] %vm670_vm1, %v1938_v18  ;;  %v1913_v29 = vadd.f32 %v7771_v14, %v1801_v32  ;;  %v1802_v17 = vmul.f32 %v5340_v39, %v7760_v3  ;;  %v1667_v11 = vpop.f32.mrb[27].mxu0  ;;  %v7911_v10 = vld [vmem:[#allocation2 + $0x80] sm:$0xff]  ;;  %v7922_v3 = vpop.permute.xlu1 %2394  ;;  %v2792_v32 = vld [vmem:[#allocation2 + $0x68] sm:$0xff]  ;;  %v2793_v39 = vld [vmem:[#allocation2 + $0x70] sm:$0xff] }
 0x188   :  { %1945 = vst.msk [vmem:[#allocation2 + $0x90] sm:$0xff] %vm670_vm1, %v1937_v34  ;;  %v1911_v52 = vadd.f32 %v7753_v40, %v1799_v49  ;;  %v1800_v2 = vmul.f32 %v7742_v55, %v1667_v11  ;;  %5379 = vmatpush1.bf16.msra.mxu1 %v7911_v10  ;;  %3792 = vmatpush1.bf16.msra.mxu0 %v2789_v56  ;;  %v2790_v40 = vld [vmem:[#allocation2 + $0x58] sm:$0xff] }
 0x189   :  { %v1914_v16 = vadd.f32 %v7766_v53, %v1802_v17  ;;  %5364 = vmatprep.subr.bf16.mxu1 %v8262_v30  ;;  %3793 = vmatprep.subr.bf16.mxu0 %v8262_v30  ;;  %v1929_v20 = vmax.f32 %v1913_v29, 0.0 }
 0x18a   :  { %v1912_v14 = vadd.f32 %v7748_v42, %v1800_v2  ;;  %v1927_v61 = vmax.f32 %v1911_v52, 0.0  ;;  %v7931_v42 = vpop.permute.xlu0 %2501 }
 0x18b   :  { %v1930_v27 = vmax.f32 %v1914_v16, 0.0  ;;  %v7939_v23 = vpop.permute.xlu1 %2506 }
 0x18c   :  { %v1928_v55 = vmax.f32 %v1912_v14, 0.0  ;;  %v5343_v21 = vpop.f32.mrb[28].mxu0  ;;  %5380 = vmatpush1.bf16.msra.mxu1 %v7925_v26  ;;  %3794 = vmatpush1.bf16.msra.mxu0 %v2790_v40  ;;  %v2794_v14 = vld [vmem:[#allocation2 + $0x78] sm:$0xff] }
 0x18d   :  { %v1940_v53 = vpack.c.bf16 %v1930_v27, %v1929_v20  ;;  %v1805_v12 = vmul.f32 %v5343_v21, %v7796_v28  ;;  %v1680_v31 = vpop.f32.mrb[29].mxu0  ;;  %5365 = vmatprep.subr.bf16.mxu1 %v8262_v30  ;;  %3795 = vmatprep.subr.bf16.mxu0 %v8262_v30  ;;  %v2791_v28 = vld [vmem:[#allocation2 + $0x60] sm:$0xff] }
 0x18e   :  { %v1939_v57 = vpack.c.bf16 %v1928_v55, %v1927_v61  ;;  %v1803_v63 = vmul.f32 %v7780_v13, %v1680_v31  ;;  %v5344_v54 = vpop.f32.mrb[30].mxu0  ;;  %v7949_v18 = vld [vmem:[#allocation2 + $0x98] sm:$0xff]  ;;  %v7951_v1 = vpop.permute.xlu0 %2399  ;;  %v5539_v20 = vld [vmem:[#allocation3] ss:$16 sps:$4 sm:$0xff]  }
 0x18f   :  { %1948 = vst.msk [vmem:[#allocation2 + $0xa8] sm:$0xff] %vm670_vm1, %v1940_v53  ;;  %v1917_v22 = vadd.f32 %v7809_v0, %v1805_v12  ;;  %v1806_v46 = vmul.f32 %v5344_v54, %v7799_v4  ;;  %v1683_v25 = vpop.f32.mrb[31].mxu0  ;;  %v7937_v7 = vld [vmem:[#allocation2 + $0x90] sm:$0xff] }
 0x190   :  { %1947 = vst.msk [vmem:[#allocation2 + $0xa0] sm:$0xff] %vm670_vm1, %v1939_v57  ;;  %v1915_v43 = vadd.f32 %v7787_v15, %v1803_v63  ;;  %v1804_v33 = vmul.f32 %v7778_v58, %v1683_v25  ;;  %5381 = vmatpush1.bf16.msra.mxu1 %v7937_v7  ;;  %3796 = vmatpush1.bf16.msra.mxu0 %v2791_v28  ;;  %v5542_v12 = vld [vmem:[#allocation3 + $0x24] ss:$16 sps:$4 sm:$0xff]  }
 0x191   :  { %v1918_v13 = vadd.f32 %v7812_v62, %v1806_v46  ;;  %5366 = vmatprep.subr.bf16.mxu1 %v8262_v30  ;;  %3797 = vmatprep.subr.bf16.mxu0 %v8262_v30  ;;  %v1933_v0 = vmax.f32 %v1917_v22, 0.0  ;;  %v7956_v62 = vpop.permute.xlu1 %2404 }
 0x192   :  { %v1916_v4 = vadd.f32 %v7792_v5, %v1804_v33  ;;  %v1931_v15 = vmax.f32 %v1915_v43, 0.0  ;;  %v7965_v17 = vpop.permute.xlu0 %2511 }
 0x193   :  { %v1934_v47 = vmax.f32 %v1918_v13, 0.0 }
 0x194   :  { %v1932_v58 = vmax.f32 %v1916_v4, 0.0  ;;  %5382 = vmatpush1.bf16.msra.mxu1 %v7949_v18  ;;  %3798 = vmatpush1.bf16.msra.mxu0 %v2792_v32 }
 0x195   :  { %v1942_v34 = vpack.c.bf16 %v1934_v47, %v1933_v0  ;;  %5367 = vmatprep.subr.bf16.mxu1 %v8262_v30  ;;  %3799 = vmatprep.subr.bf16.mxu0 %v8262_v30  ;;  %v7971_v27 = vpop.permute.xlu1 %2516 }
 0x196   :  { %v1941_v5 = vpack.c.bf16 %v1932_v58, %v1931_v15  ;;  %v7969_v16 = vld [vmem:[#allocation2 + $0xa8] sm:$0xff] }
 0x197   :  { %1950 = vst.msk [vmem:[#allocation2 + $0xb8] sm:$0xff] %vm670_vm1, %v1942_v34  ;;  %v7959_v49 = vld [vmem:[#allocation2 + $0xa0] sm:$0xff] }
 0x198   :  { %1949 = vst.msk [vmem:[#allocation2 + $0xb0] sm:$0xff] %vm670_vm1, %v1941_v5  ;;  %5383 = vmatpush1.bf16.msra.mxu1 %v7959_v49  ;;  %3800 = vmatpush1.bf16.msra.mxu0 %v2793_v39  ;;  %v5349_v29 = vpop.f32.mrb[16].mxu1 }
 0x199   :  { %5368 = vmatprep.subr.bf16.mxu1 %v8262_v30  ;;  %3801 = vmatprep.subr.bf16.mxu0 %v8262_v30  ;;  %v2268_v11 = vpop.f32.mrb[17].mxu1  ;;  %v2429_v56 = vmul.f32 %v5349_v29, %v7843_v44 }
 0x19a   :  { %v5350_v52 = vpop.f32.mrb[18].mxu1  ;;  %v2427_v2 = vmul.f32 %v7819_v60, %v2268_v11  ;;  %v5547_v11 = vld [vmem:[#allocation3 + $0x40] ss:$16 sps:$4 sm:$0xff]  }
 0x19b   :  { %v2271_v40 = vpop.f32.mrb[19].mxu1  ;;  %v2430_v61 = vmul.f32 %v5350_v52, %v7847_v59  ;;  %v2541_v55 = vadd.f32 %v7858_v19, %v2429_v56  ;;  %v7984_v19 = vpop.permute.xlu0 %2409 }
 0x19c   :  { %5384 = vmatpush1.bf16.msra.mxu1 %v7969_v16  ;;  %3802 = vmatpush1.bf16.msra.mxu0 %v2794_v14  ;;  %v2428_v21 = vmul.f32 %v7825_v6, %v2271_v40  ;;  %v2539_v44 = vadd.f32 %v7829_v51, %v2427_v2 }
 0x19d   :  { %5369 = vmatprep.subr.bf16.mxu1 %v8262_v30  ;;  %4188 = vmatprep.subr.bf16.mxu0 %v8262_v30  ;;  %v2542_v60 = vadd.f32 %v7861_v24, %v2430_v61  ;;  %v2557_v53 = vmax.f32 %v2541_v55, 0.0  ;;  %v7990_v24 = vpop.permute.xlu1 %2414 }
 0x19e   :  { %v2540_v31 = vadd.f32 %v7835_v45, %v2428_v21  ;;  %v2555_v59 = vmax.f32 %v2539_v44, 0.0  ;;  %v7994_v43 = vld [vmem:[#allocation2 + $0xb8] sm:$0xff] }
 0x19f   :  { %v7982_v57 = vld [vmem:[#allocation2 + $0xb0] sm:$0xff]  ;;  %3804 = vmatmul.mubr.bf16.vlgmr.msra.gmra.mrb[32].mxu0 %v5539_v20  ;;  %v2558_v63 = vmax.f32 %v2542_v60, 0.0  ;;  %v8006_v47 = vpop.permute.xlu0 %2521 }
 0x1a0   :  { %5385 = vmatpush1.bf16.msra.mxu1 %v7982_v57  ;;  %4189 = vmatpush1.bf16.msra.mxu0 %v7911_v10  ;;  %v2556_v6 = vmax.f32 %v2540_v31, 0.0  ;;  %v5353_v51 = vpop.f32.mrb[20].mxu1  ;;  %v5544_v10 = vld [vmem:[#allocation3 + $0x20] ss:$16 sps:$4 sm:$0xff]   ;;  %v5548_v20 = vld [vmem:[#allocation3 + $0x64] ss:$16 sps:$4 sm:$0xff]  }
 0x1a1   :  { %5370 = vmatprep.subr.bf16.mxu1 %v8262_v30  ;;  %4190 = vmatprep.subr.bf16.mxu0 %v8262_v30  ;;  %v2572_v45 = vpack.c.bf16 %v2558_v63, %v2557_v53  ;;  %v2284_v54 = vpop.f32.mrb[21].mxu1  ;;  %v2433_v22 = vmul.f32 %v5353_v51, %v7885_v9  ;;  %v5545_v9 = vld [vmem:[#allocation3 + $0x44] ss:$16 sps:$4 sm:$0xff]  }
 0x1a2   :  { %3811 = vmatprep.mubr.bf16.mxu0 %v5542_v12  ;;  %v2571_v46 = vpack.c.bf16 %v2556_v6, %v2555_v59  ;;  %v5354_v25 = vpop.f32.mrb[22].mxu1  ;;  %v2431_v28 = vmul.f32 %v7865_v35, %v2284_v54  ;;  %v5550_v59 = vld [vmem:[#allocation3 + $0x60] ss:$16 sps:$4 sm:$0xff]   ;;  %v5551_v54 = vld [vmem:[#allocation3 + $0x84] ss:$16 sps:$4 sm:$0xff]  }
 0x1a3   :  { %2580 = vst.msk [vmem:[#allocation2 + $0xc8] sm:$0xff] %vm670_vm1, %v2572_v45  ;;  %v2287_v33 = vpop.f32.mrb[23].mxu1  ;;  %v2434_v13 = vmul.f32 %v5354_v25, %v7889_v8  ;;  %v2545_v4 = vadd.f32 %v7900_v41, %v2433_v22  ;;  %v2420_v56 = vpop.permute.xlu0 %2419 }
 0x1a4   :  { %5386 = vmatpush1.bf16.msra.mxu1 %v7994_v43  ;;  %4191 = vmatpush1.bf16.msra.mxu0 %v7925_v26  ;;  %2579 = vst.msk [vmem:[#allocation2 + $0xc0] sm:$0xff] %vm670_vm1, %v2571_v46  ;;  %v2432_v0 = vmul.f32 %v7869_v37, %v2287_v33  ;;  %v2543_v35 = vadd.f32 %v7873_v38, %v2431_v28  ;;  %v8010_v26 = vpop.permute.xlu1 %2526 }
 0x1a5   :  { %5371 = vmatprep.subr.bf16.mxu1 %v8262_v30  ;;  %4192 = vmatprep.subr.bf16.mxu0 %v8262_v30  ;;  %v2546_v8 = vadd.f32 %v7903_v48, %v2434_v13  ;;  %v2561_v41 = vmax.f32 %v2545_v4, 0.0 }
 0x1a6   :  { %v2544_v32 = vadd.f32 %v7878_v50, %v2432_v0  ;;  %v2559_v15 = vmax.f32 %v2543_v35, 0.0  ;;  %v5554_v35 = vld [vmem:[#allocation3 + $0xa4] ss:$16 sps:$4 sm:$0xff]  }
 0x1a7   :  { %3812 = vmatmul.mubr.bf16.gmra.mrb[36].mxu0 %v5544_v10  ;;  %v2562_v58 = vmax.f32 %v2546_v8, 0.0  ;;  %v2532_v44 = vpop.permute.xlu0 %2531  ;;  %v5560_v8 = vld [vmem:[#allocation3 + $0xc4] ss:$16 sps:$4 sm:$0xff]  }
 0x1a8   :  { %4193 = vmatpush1.bf16.msra.mxu0 %v7937_v7  ;;  %3819 = vmatprep.mubr.bf16.mxu0 %v5545_v9  ;;  %v2560_v37 = vmax.f32 %v2544_v32, 0.0  ;;  %v5357_v38 = vpop.f32.mrb[24].mxu1  ;;  %v2425_v40 = vpop.permute.xlu1 %2424  ;;  %v5553_v9 = vld [vmem:[#allocation3 + $0x80] ss:$16 sps:$4 sm:$0xff]   ;;  %v5557_v32 = vld [vmem:[#allocation3 + $0xa8] ss:$16 sps:$4 sm:$0xff]  }
 0x1a9   :  { %4194 = vmatprep.subr.bf16.mxu0 %v8262_v30  ;;  %v2574_v34 = vpack.c.bf16 %v2562_v58, %v2561_v41  ;;  %v2300_v5 = vpop.f32.mrb[25].mxu1  ;;  %v2437_v39 = vmul.f32 %v5357_v38, %v7951_v1  ;;  %v5566_v58 = vld [vmem:[#allocation3 + $0xe4] ss:$16 sps:$4 sm:$0xff]   ;;  %v5569_v38 = vld [vmem:[#allocation3 + $0xec] ss:$16 sps:$4 sm:$0xff]  }
 0x1aa   :  { %v2573_v48 = vpack.c.bf16 %v2560_v37, %v2559_v15  ;;  %v5358_v29 = vpop.f32.mrb[26].mxu1  ;;  %v2435_v50 = vmul.f32 %v7913_v36, %v2300_v5  ;;  %v8030_v55 = vld [vmem:[#allocation2 + $0xc8] sm:$0xff]  ;;  %v5572_v5 = vld [vmem:[#allocation3 + $0x104] ss:$16 sps:$4 sm:$0xff]  }
 0x1ab   :  { %2582 = vst.msk [vmem:[#allocation2 + $0xd8] sm:$0xff] %vm670_vm1, %v2574_v34  ;;  %v2303_v52 = vpop.f32.mrb[27].mxu1  ;;  %v8017_v2 = vld [vmem:[#allocation2 + $0xc0] sm:$0xff]  ;;  %v2438_v7 = vmul.f32 %v5358_v29, %v7956_v62  ;;  %v2549_v14 = vadd.f32 %v7965_v17, %v2437_v39  ;;  %v5563_v15 = vld [vmem:[#allocation3 + $0xcc] ss:$16 sps:$4 sm:$0xff]  }
 0x1ac   :  { %4195 = vmatpush1.bf16.msra.mxu0 %v7949_v18  ;;  %2581 = vst.msk [vmem:[#allocation2 + $0xd0] sm:$0xff] %vm670_vm1, %v2573_v48  ;;  %v2436_v1 = vmul.f32 %v7922_v3, %v2303_v52  ;;  %v2547_v36 = vadd.f32 %v7931_v42, %v2435_v50  ;;  %5387 = vmatpush1.bf16.msra.mxu1 %v8017_v2  ;;  %v2537_v63 = vpop.permute.xlu1 %2536  ;;  %v5565_v37 = vld [vmem:[#allocation3 + $0xc8] ss:$16 sps:$4 sm:$0xff]   ;;  %v5568_v34 = vld [vmem:[#allocation3 + $0xe0] ss:$16 sps:$4 sm:$0xff]  }
 0x1ad   :  { %4196 = vmatprep.subr.bf16.mxu0 %v8262_v30  ;;  %5372 = vmatprep.subr.bf16.mxu1 %v8262_v30  ;;  %v2550_v62 = vadd.f32 %v7971_v27, %v2438_v7  ;;  %v2565_v61 = vmax.f32 %v2549_v14, 0.0  ;;  %v5571_v39 = vld [vmem:[#allocation3 + $0xe8] ss:$16 sps:$4 sm:$0xff]   ;;  %v5575_v48 = vld [vmem:[#allocation3 + $0x10c] ss:$16 sps:$4 sm:$0xff]  }
 0x1ae   :  { %v2548_v17 = vadd.f32 %v7939_v23, %v2436_v1  ;;  %v2563_v18 = vmax.f32 %v2547_v36, 0.0  ;;  %v5574_v29 = vld [vmem:[#allocation3 + $0x100] ss:$16 sps:$4 sm:$0xff]   ;;  %v5578_v50 = vld [vmem:[#allocation3 + $0x124] ss:$16 sps:$4 sm:$0xff]  }
 0x1af   :  { %3820 = vmatmul.mubr.bf16.gmra.mrb[40].mxu0 %v5547_v11  ;;  %v2566_v21 = vmax.f32 %v2550_v62, 0.0  ;;  %v5577_v11 = vld [vmem:[#allocation3 + $0x108] ss:$16 sps:$4 sm:$0xff]   ;;  %v5580_v52 = vld [vmem:[#allocation3 + $0x120] ss:$16 sps:$4 sm:$0xff]  }
 0x1b0   :  { %4197 = vmatpush1.bf16.msra.mxu0 %v7959_v49  ;;  %3827 = vmatprep.mubr.bf16.mxu0 %v5548_v20  ;;  %v2564_v3 = vmax.f32 %v2548_v17, 0.0  ;;  %v5361_v42 = vpop.f32.mrb[28].mxu1  ;;  %v5583_v7 = vld [vmem:[#allocation3 + $0x128] ss:$16 sps:$4 sm:$0xff]   ;;  %v5587_v14 = vld [vmem:[#allocation3 + $0x14c] ss:$16 sps:$4 sm:$0xff]  }
 0x1b1   :  { %5388 = vmatpush1.bf16.msra.mxu1 %v8030_v55  ;;  %4198 = vmatprep.subr.bf16.mxu0 %v8262_v30  ;;  %v2576_v27 = vpack.c.bf16 %v2566_v21, %v2565_v61  ;;  %v2316_v60 = vpop.f32.mrb[29].mxu1  ;;  %v2441_v23 = vmul.f32 %v5361_v42, %v2420_v56  ;;  %v5581_v56 = vld [vmem:[#allocation3 + $0x12c] ss:$16 sps:$4 sm:$0xff]   ;;  %v5586_v20 = vld [vmem:[#allocation3 + $0x140] ss:$16 sps:$4 sm:$0xff]  }
 0x1b2   :  { %5373 = vmatprep.subr.bf16.mxu1 %v8262_v30  ;;  %v2575_v53 = vpack.c.bf16 %v2564_v3, %v2563_v18  ;;  %v5362_v12 = vpop.f32.mrb[30].mxu1  ;;  %v2439_v31 = vmul.f32 %v7984_v19, %v2316_v60  ;;  %v5589_v1 = vld [vmem:[#allocation3 + $0x148] ss:$16 sps:$4 sm:$0xff]   ;;  %v5593_v36 = vld [vmem:[#allocation3 + $0x16c] ss:$16 sps:$4 sm:$0xff]  }
 0x1b3   :  { %2584 = vst.msk [vmem:[#allocation2 + $0xe8] sm:$0xff] %vm670_vm1, %v2576_v27  ;;  %v2805_v49 = vld [vmem:[#allocation2 + $0xd0] sm:$0xff]  ;;  %v2319_v6 = vpop.f32.mrb[31].mxu1  ;;  %v2442_v51 = vmul.f32 %v5362_v12, %v2425_v40  ;;  %v2553_v45 = vadd.f32 %v2532_v44, %v2441_v23  ;;  %v5595_v61 = vld [vmem:[#allocation3 + $0x168] ss:$16 sps:$4 sm:$0xff]  }
 0x1b4   :  { %4199 = vmatpush1.bf16.msra.mxu0 %v7969_v16  ;;  %2583 = vst.msk [vmem:[#allocation2 + $0xe0] sm:$0xff] %vm670_vm1, %v2575_v53  ;;  %v2440_v22 = vmul.f32 %v7990_v24, %v2319_v6  ;;  %v2551_v46 = vadd.f32 %v8006_v47, %v2439_v31  ;;  %v2806_v16 = vld [vmem:[#allocation2 + $0xd8] sm:$0xff]  ;;  %v5556_v47 = vld [vmem:[#allocation3 + $0xa0] ss:$16 sps:$4 sm:$0xff]   ;;  %v5596_v62 = vld [vmem:[#allocation3 + $0x184] ss:$16 sps:$4 sm:$0xff]  }
 0x1b5   :  { %5389 = vmatpush1.bf16.msra.mxu1 %v2805_v49  ;;  %4200 = vmatprep.subr.bf16.mxu0 %v8262_v30  ;;  %v2554_v19 = vadd.f32 %v2537_v63, %v2442_v51  ;;  %v2569_v25 = vmax.f32 %v2553_v45, 0.0  ;;  %v5592_v40 = vld [vmem:[#allocation3 + $0x160] ss:$16 sps:$4 sm:$0xff]   ;;  %v5599_v17 = vld [vmem:[#allocation3 + $0x18c] ss:$16 sps:$4 sm:$0xff]  }
 0x1b6   :  { %5374 = vmatprep.subr.bf16.mxu1 %v8262_v30  ;;  %v2552_v28 = vadd.f32 %v8010_v26, %v2440_v22  ;;  %v2567_v10 = vmax.f32 %v2551_v46, 0.0  ;;  %v5562_v26 = vld [vmem:[#allocation3 + $0xc0] ss:$16 sps:$4 sm:$0xff]   ;;  %v5601_v21 = vld [vmem:[#allocation3 + $0x188] ss:$16 sps:$4 sm:$0xff]  }
 0x1b7   :  { %3828 = vmatmul.mubr.bf16.gmra.mrb[44].mxu0 %v5550_v59  ;;  %v2570_v33 = vmax.f32 %v2554_v19, 0.0  ;;  %v5598_v18 = vld [vmem:[#allocation3 + $0x180] ss:$16 sps:$4 sm:$0xff]   ;;  %v5605_v3 = vld [vmem:[#allocation3 + $0x1ac] ss:$16 sps:$4 sm:$0xff]  }
 0x1b8   :  { %4201 = vmatpush1.bf16.msra.mxu0 %v7982_v57  ;;  %3835 = vmatprep.mubr.bf16.mxu0 %v5551_v54  ;;  %v2568_v13 = vmax.f32 %v2552_v28, 0.0  ;;  %v5604_v42 = vld [vmem:[#allocation3 + $0x1a0] ss:$16 sps:$4 sm:$0xff]   ;;  %v5608_v44 = vld [vmem:[#allocation3 + $0x1c4] ss:$16 sps:$4 sm:$0xff]  }
 0x1b9   :  { %5390 = vmatpush1.bf16.msra.mxu1 %v2806_v16  ;;  %4202 = vmatprep.subr.bf16.mxu0 %v8262_v30  ;;  %v2578_v24 = vpack.c.bf16 %v2570_v33, %v2569_v25  ;;  %v5607_v27 = vld [vmem:[#allocation3 + $0x1a8] ss:$16 sps:$4 sm:$0xff]   ;;  %v5611_v60 = vld [vmem:[#allocation3 + $0x1cc] ss:$16 sps:$4 sm:$0xff]   ;;  %v5610_v23 = vld [vmem:[#allocation3 + $0x1c0] ss:$16 sps:$4 sm:$0xff]  }
 0x1ba   :  { %5375 = vmatprep.subr.bf16.mxu1 %v8262_v30  ;;  %v2577_v4 = vpack.c.bf16 %v2568_v13, %v2567_v10  ;;  %v2808_v57 = vld [vmem:[#allocation2 + $0xe8] sm:$0xff]  ;;  %v5614_v53 = vld [vmem:[#allocation3 + $0x1e4] ss:$16 sps:$4 sm:$0xff]   ;;  %v5616_v59 = vld [vmem:[#allocation3 + $0x1e0] ss:$16 sps:$4 sm:$0xff]  }
 0x1bb   :  { %v2807_v0 = vld [vmem:[#allocation2 + $0xe0] sm:$0xff]  ;;  %2586 = vst.msk [vmem:[#allocation2 + $0xf8] sm:$0xff] %vm670_vm1, %v2578_v24  ;;  %v5613_v12 = vld [vmem:[#allocation3 + $0x1c8] ss:$16 sps:$4 sm:$0xff]   ;;  %v5617_v31 = vld [vmem:[#allocation3 + $0x1ec] ss:$16 sps:$4 sm:$0xff]  }
 0x1bc   :  { %4203 = vmatpush1.bf16.msra.mxu0 %v7994_v43  ;;  %2585 = vst.msk [vmem:[#allocation2 + $0xf0] sm:$0xff] %vm670_vm1, %v2577_v4  ;;  %v5620_v63 = vld [vmem:[#allocation3 + $0x204] ss:$16 sps:$4 sm:$0xff]   ;;  %v5623_v6 = vld [vmem:[#allocation3 + $0x20c] ss:$16 sps:$4 sm:$0xff]  }
 0x1bd   :  { %5391 = vmatpush1.bf16.msra.mxu1 %v2807_v0  ;;  %4204 = vmatprep.subr.bf16.mxu0 %v8262_v30  ;;  %v5622_v51 = vld [vmem:[#allocation3 + $0x200] ss:$16 sps:$4 sm:$0xff]   ;;  %v5626_v45 = vld [vmem:[#allocation3 + $0x224] ss:$16 sps:$4 sm:$0xff]   ;;  %v5625_v54 = vld [vmem:[#allocation3 + $0x208] ss:$16 sps:$4 sm:$0xff]  }
 0x1be   :  { %5376 = vmatprep.subr.bf16.mxu1 %v8262_v30  ;;  %v5629_v22 = vld [vmem:[#allocation3 + $0x22c] ss:$16 sps:$4 sm:$0xff]   ;;  %v5628_v46 = vld [vmem:[#allocation3 + $0x220] ss:$16 sps:$4 sm:$0xff]   ;;  %v5632_v19 = vld [vmem:[#allocation3 + $0x244] ss:$16 sps:$4 sm:$0xff]  }
 0x1bf   :  { %3836 = vmatmul.mubr.bf16.gmra.mrb[48].mxu0 %v5553_v9  ;;  %v5631_v25 = vld [vmem:[#allocation3 + $0x228] ss:$16 sps:$4 sm:$0xff]   ;;  %v5635_v28 = vld [vmem:[#allocation3 + $0x24c] ss:$16 sps:$4 sm:$0xff]   ;;  %v5634_v10 = vld [vmem:[#allocation3 + $0x240] ss:$16 sps:$4 sm:$0xff]  }
 0x1c0   :  { %4205 = vmatpush1.bf16.msra.mxu0 %v8017_v2  ;;  %3843 = vmatprep.mubr.bf16.mxu0 %v5554_v35  ;;  %v5584_v2 = vld [vmem:[#allocation3 + $0x144] ss:$16 sps:$4 sm:$0xff]   ;;  %v5637_v33 = vld [vmem:[#allocation3 + $0x248] ss:$16 sps:$4 sm:$0xff]   ;;  %v5641_v13 = vld [vmem:[#allocation3 + $0x26c] ss:$16 sps:$4 sm:$0xff]  }
 0x1c1   :  { %5392 = vmatpush1.bf16.msra.mxu1 %v2808_v57  ;;  %4206 = vmatprep.subr.bf16.mxu0 %v8262_v30  ;;  %v5640_v24 = vld [vmem:[#allocation3 + $0x260] ss:$16 sps:$4 sm:$0xff]   ;;  %v5644_v4 = vld [vmem:[#allocation3 + $0x284] ss:$16 sps:$4 sm:$0xff]   ;;  %v5643_v9 = vld [vmem:[#allocation3 + $0x268] ss:$16 sps:$4 sm:$0xff]  }
 0x1c2   :  { %5377 = vmatprep.subr.bf16.mxu1 %v8262_v30  ;;  %v2810_v41 = vld [vmem:[#allocation2 + $0xf8] sm:$0xff]  ;;  %v5646_v35 = vld [vmem:[#allocation3 + $0x280] ss:$16 sps:$4 sm:$0xff]  }
 0x1c3   :  { %v2809_v43 = vld [vmem:[#allocation2 + $0xf0] sm:$0xff] }
 0x1c4   :  { %4207 = vmatpush1.bf16.msra.mxu0 %v8030_v55  ;;  %v5602_v55 = vld [vmem:[#allocation3 + $0x1a4] ss:$16 sps:$4 sm:$0xff]  }
 0x1c5   :  { %5393 = vmatpush1.bf16.msra.mxu1 %v2809_v43  ;;  %4208 = vmatprep.subr.bf16.mxu0 %v8262_v30 }
 0x1c6   :  { %5378 = vmatprep.subr.bf16.mxu1 %v8262_v30 }
 0x1c7   :  { %3844 = vmatmul.mubr.bf16.gmra.mrb[52].mxu0 %v5556_v47  ;;  %v5649_v47 = vld [vmem:[#allocation3 + $0x288] ss:$16 sps:$4 sm:$0xff]  }
 0x1c8   :  { %4209 = vmatpush1.bf16.msra.mxu0 %v2805_v49  ;;  %3851 = vmatprep.mubr.bf16.mxu0 %v5560_v8  ;;  %v5619_v49 = vld [vmem:[#allocation3 + $0x1e8] ss:$16 sps:$4 sm:$0xff]   ;;  %v5652_v8 = vld [vmem:[#allocation3 + $0x2a0] ss:$16 sps:$4 sm:$0xff]  }
 0x1c9   :  { %5394 = vmatpush1.bf16.msra.mxu1 %v2810_v41  ;;  %4210 = vmatprep.subr.bf16.mxu0 %v8262_v30 }
 0x1cc   :  { %4261 = vmatmul.mubr.bf16.vlgmr.msra.gmra.mrb[32].mxu1 %v5557_v32  ;;  %4211 = vmatpush1.bf16.msra.mxu0 %v2806_v16  ;;  %v5638_v16 = vld [vmem:[#allocation3 + $0x264] ss:$16 sps:$4 sm:$0xff]   ;;  %v5655_v32 = vld [vmem:[#allocation3 + $0x2a8] ss:$16 sps:$4 sm:$0xff]  }
 0x1cd   :  { %4212 = vmatprep.subr.bf16.mxu0 %v8262_v30  ;;  %4268 = vmatprep.mubr.bf16.mxu1 %v5563_v15  ;;  %v5659_v15 = vld [vmem:[#allocation3 + $0x2cc] ss:$16 sps:$4 sm:$0xff]  }
 0x1cf   :  { %3852 = vmatmul.mubr.bf16.gmra.mrb[56].mxu0 %v5562_v26  ;;  %v5658_v26 = vld [vmem:[#allocation3 + $0x2c0] ss:$16 sps:$4 sm:$0xff]  }
 0x1d0   :  { %4213 = vmatpush1.bf16.msra.mxu0 %v2807_v0  ;;  %3859 = vmatprep.mubr.bf16.mxu0 %v5566_v58  ;;  %v5647_v0 = vld [vmem:[#allocation3 + $0x28c] ss:$16 sps:$4 sm:$0xff]   ;;  %v5662_v58 = vld [vmem:[#allocation3 + $0x2e4] ss:$16 sps:$4 sm:$0xff]  }
 0x1d1   :  { %4214 = vmatprep.subr.bf16.mxu0 %v8262_v30 }
 0x1d4   :  { %4269 = vmatmul.mubr.bf16.gmra.mrb[36].mxu1 %v5565_v37  ;;  %4215 = vmatpush1.bf16.msra.mxu0 %v2808_v57  ;;  %v5650_v57 = vld [vmem:[#allocation3 + $0x2a4] ss:$16 sps:$4 sm:$0xff]   ;;  %v5661_v37 = vld [vmem:[#allocation3 + $0x2c8] ss:$16 sps:$4 sm:$0xff]  }
 0x1d5   :  { %4216 = vmatprep.subr.bf16.mxu0 %v8262_v30  ;;  %4276 = vmatprep.mubr.bf16.mxu1 %v5569_v38  ;;  %v5665_v38 = vld [vmem:[#allocation3 + $0x2ec] ss:$16 sps:$4 sm:$0xff]  }
 0x1d7   :  { %3860 = vmatmul.mubr.bf16.gmra.mrb[60].mxu0 %v5568_v34  ;;  %v5664_v34 = vld [vmem:[#allocation3 + $0x2e0] ss:$16 sps:$4 sm:$0xff]  }
 0x1d8   :  { %4217 = vmatpush1.bf16.msra.mxu0 %v2809_v43  ;;  %3867 = vmatprep.mubr.bf16.mxu0 %v5572_v5  ;;  %v5653_v43 = vld [vmem:[#allocation3 + $0x2ac] ss:$16 sps:$4 sm:$0xff]   ;;  %v5668_v5 = vld [vmem:[#allocation3 + $0x304] ss:$16 sps:$4 sm:$0xff]  }
 0x1d9   :  { %4218 = vmatprep.subr.bf16.mxu0 %v8262_v30  ;;  %v5590_v30 = vld [vmem:[#allocation3 + $0x164] ss:$16 sps:$4 sm:$0xff]  }
 0x1dc   :  { %4277 = vmatmul.mubr.bf16.gmra.mrb[40].mxu1 %v5571_v39  ;;  %4219 = vmatpush1.bf16.msra.mxu0 %v2810_v41  ;;  %v5656_v41 = vld [vmem:[#allocation3 + $0x2c4] ss:$16 sps:$4 sm:$0xff]   ;;  %v5667_v39 = vld [vmem:[#allocation3 + $0x2e8] ss:$16 sps:$4 sm:$0xff]  }
 0x1dd   :  { %4284 = vmatprep.mubr.bf16.mxu1 %v5575_v48  ;;  %v5671_v48 = vld [vmem:[#allocation3 + $0x30c] ss:$16 sps:$4 sm:$0xff]  }
 0x1df   :  { %3868 = vmatmul.mubr.bf16.gmra.mrb[64].mxu0 %v5574_v29  ;;  %v5670_v29 = vld [vmem:[#allocation3 + $0x300] ss:$16 sps:$4 sm:$0xff]  }
 0x1e0   :  { %3875 = vmatprep.mubr.bf16.mxu0 %v5578_v50  ;;  %v5674_v50 = vld [vmem:[#allocation3 + $0x324] ss:$16 sps:$4 sm:$0xff]  }
 0x1e4   :  { %4285 = vmatmul.mubr.bf16.gmra.mrb[44].mxu1 %v5577_v11  ;;  %v5673_v11 = vld [vmem:[#allocation3 + $0x308] ss:$16 sps:$4 sm:$0xff]  }
 0x1e5   :  { %4292 = vmatprep.mubr.bf16.mxu1 %v5581_v56  ;;  %v5677_v56 = vld [vmem:[#allocation3 + $0x32c] ss:$16 sps:$4 sm:$0xff]  }
 0x1e7   :  { %3876 = vmatmul.mubr.bf16.gmra.mrb[68].mxu0 %v5580_v52  ;;  %v5676_v52 = vld [vmem:[#allocation3 + $0x320] ss:$16 sps:$4 sm:$0xff]  }
 0x1e8   :  { %3883 = vmatprep.mubr.bf16.mxu0 %v5584_v2  ;;  %v5680_v2 = vld [vmem:[#allocation3 + $0x344] ss:$16 sps:$4 sm:$0xff]  }
 0x1ec   :  { %4293 = vmatmul.mubr.bf16.gmra.mrb[48].mxu1 %v5583_v7  ;;  %v5679_v7 = vld [vmem:[#allocation3 + $0x328] ss:$16 sps:$4 sm:$0xff]  }
 0x1ed   :  { %4300 = vmatprep.mubr.bf16.mxu1 %v5587_v14  ;;  %v5683_v14 = vld [vmem:[#allocation3 + $0x34c] ss:$16 sps:$4 sm:$0xff]  }
 0x1ef   :  { %3884 = vmatmul.mubr.bf16.gmra.mrb[72].mxu0 %v5586_v20  ;;  %v5682_v20 = vld [vmem:[#allocation3 + $0x340] ss:$16 sps:$4 sm:$0xff]  }
 0x1f0   :  { %3891 = vmatprep.mubr.bf16.mxu0 %v5590_v30  ;;  %v5686_v30 = vld [vmem:[#allocation3 + $0x364] ss:$16 sps:$4 sm:$0xff]  }
 0x1f4   :  { %4301 = vmatmul.mubr.bf16.gmra.mrb[52].mxu1 %v5589_v1  ;;  %v5685_v1 = vld [vmem:[#allocation3 + $0x348] ss:$16 sps:$4 sm:$0xff]  }
 0x1f5   :  { %4308 = vmatprep.mubr.bf16.mxu1 %v5593_v36  ;;  %v5689_v36 = vld [vmem:[#allocation3 + $0x36c] ss:$16 sps:$4 sm:$0xff]  }
 0x1f7   :  { %3892 = vmatmul.mubr.bf16.gmra.mrb[76].mxu0 %v5592_v40  ;;  %v5688_v40 = vld [vmem:[#allocation3 + $0x360] ss:$16 sps:$4 sm:$0xff]  }
 0x1f8   :  { %3899 = vmatprep.mubr.bf16.mxu0 %v5596_v62  ;;  %v5692_v62 = vld [vmem:[#allocation3 + $0x384] ss:$16 sps:$4 sm:$0xff]  }
 0x1fc   :  { %4309 = vmatmul.mubr.bf16.gmra.mrb[56].mxu1 %v5595_v61  ;;  %v5691_v61 = vld [vmem:[#allocation3 + $0x368] ss:$16 sps:$4 sm:$0xff]  }
 0x1fd   :  { %4316 = vmatprep.mubr.bf16.mxu1 %v5599_v17  ;;  %v5695_v17 = vld [vmem:[#allocation3 + $0x38c] ss:$16 sps:$4 sm:$0xff]  }
 0x1ff   :  { %3900 = vmatmul.mubr.bf16.gmra.mrb[80].mxu0 %v5598_v18  ;;  %v5694_v18 = vld [vmem:[#allocation3 + $0x380] ss:$16 sps:$4 sm:$0xff]  }
 0x200   :  { %3907 = vmatprep.mubr.bf16.mxu0 %v5602_v55  ;;  %v5698_v55 = vld [vmem:[#allocation3 + $0x3a4] ss:$16 sps:$4 sm:$0xff]  }
 0x204   :  { %4317 = vmatmul.mubr.bf16.gmra.mrb[60].mxu1 %v5601_v21  ;;  %v5697_v21 = vld [vmem:[#allocation3 + $0x388] ss:$16 sps:$4 sm:$0xff]  }
 0x205   :  { %4324 = vmatprep.mubr.bf16.mxu1 %v5605_v3  ;;  %v5701_v3 = vld [vmem:[#allocation3 + $0x3ac] ss:$16 sps:$4 sm:$0xff]  }
 0x207   :  { %3908 = vmatmul.mubr.bf16.gmra.mrb[84].mxu0 %v5604_v42  ;;  %v5700_v42 = vld [vmem:[#allocation3 + $0x3a0] ss:$16 sps:$4 sm:$0xff]  }
 0x208   :  { %3915 = vmatprep.mubr.bf16.mxu0 %v5608_v44  ;;  %v5704_v44 = vld [vmem:[#allocation3 + $0x3c4] ss:$16 sps:$4 sm:$0xff]  }
 0x20c   :  { %4325 = vmatmul.mubr.bf16.gmra.mrb[64].mxu1 %v5607_v27  ;;  %v5703_v27 = vld [vmem:[#allocation3 + $0x3a8] ss:$16 sps:$4 sm:$0xff]  }
 0x20d   :  { %4332 = vmatprep.mubr.bf16.mxu1 %v5611_v60  ;;  %v5707_v60 = vld [vmem:[#allocation3 + $0x3cc] ss:$16 sps:$4 sm:$0xff]  }
 0x20f   :  { %3916 = vmatmul.mubr.bf16.gmra.mrb[88].mxu0 %v5610_v23  ;;  %v5706_v23 = vld [vmem:[#allocation3 + $0x3c0] ss:$16 sps:$4 sm:$0xff]  }
 0x210   :  { %3923 = vmatprep.mubr.bf16.mxu0 %v5614_v53  ;;  %v5710_v53 = vld [vmem:[#allocation3 + $0x3e4] ss:$16 sps:$4 sm:$0xff]  }
 0x214   :  { %4333 = vmatmul.mubr.bf16.gmra.mrb[68].mxu1 %v5613_v12  ;;  %v5709_v12 = vld [vmem:[#allocation3 + $0x3c8] ss:$16 sps:$4 sm:$0xff]  }
 0x215   :  { %4340 = vmatprep.mubr.bf16.mxu1 %v5617_v31  ;;  %v5713_v31 = vld [vmem:[#allocation3 + $0x3ec] ss:$16 sps:$4 sm:$0xff]  }
 0x217   :  { %3924 = vmatmul.mubr.bf16.gmra.mrb[92].mxu0 %v5616_v59  ;;  %v5712_v59 = vld [vmem:[#allocation3 + $0x3e0] ss:$16 sps:$4 sm:$0xff]  }
 0x218   :  { %3931 = vmatprep.mubr.bf16.mxu0 %v5620_v63  ;;  %v5716_v63 = vld [vmem:[#allocation3 + $0x404] ss:$16 sps:$4 sm:$0xff]  }
 0x21c   :  { %4341 = vmatmul.mubr.bf16.gmra.mrb[72].mxu1 %v5619_v49  ;;  %v5715_v49 = vld [vmem:[#allocation3 + $0x3e8] ss:$16 sps:$4 sm:$0xff]  }
 0x21d   :  { %4348 = vmatprep.mubr.bf16.mxu1 %v5623_v6  ;;  %v5719_v6 = vld [vmem:[#allocation3 + $0x40c] ss:$16 sps:$4 sm:$0xff]  }
 0x21f   :  { %3932 = vmatmul.mubr.bf16.gmra.mrb[96].mxu0 %v5622_v51 }
 0x220   :  { %3939 = vmatprep.mubr.bf16.mxu0 %v5626_v45 }
 0x224   :  { %4349 = vmatmul.mubr.bf16.gmra.mrb[76].mxu1 %v5625_v54  ;;  %v5718_v54 = vld [vmem:[#allocation3 + $0x400] ss:$16 sps:$4 sm:$0xff]  }
 0x225   :  { %4356 = vmatprep.mubr.bf16.mxu1 %v5629_v22 }
 0x227   :  { %3940 = vmatmul.mubr.bf16.gmra.mrb[100].mxu0 %v5628_v46  ;;  %v5722_v46 = vld [vmem:[#allocation3 + $0x424] ss:$16 sps:$4 sm:$0xff]  }
 0x228   :  { %3947 = vmatprep.mubr.bf16.mxu0 %v5632_v19 }
 0x22c   :  { %4357 = vmatmul.mubr.bf16.gmra.mrb[80].mxu1 %v5631_v25 }
 0x22d   :  { %4364 = vmatprep.mubr.bf16.mxu1 %v5635_v28 }
 0x22f   :  { %3948 = vmatmul.mubr.bf16.gmra.mrb[104].mxu0 %v5634_v10 }
 0x230   :  { %3955 = vmatprep.mubr.bf16.mxu0 %v5638_v16  ;;  %v5721_v16 = vld [vmem:[#allocation3 + $0x408] ss:$16 sps:$4 sm:$0xff]  }
 0x234   :  { %4365 = vmatmul.mubr.bf16.gmra.mrb[84].mxu1 %v5637_v33 }
 0x235   :  { %4372 = vmatprep.mubr.bf16.mxu1 %v5641_v13  ;;  %v5725_v13 = vld [vmem:[#allocation3 + $0x42c] ss:$16 sps:$4 sm:$0xff]  }
 0x237   :  { %3956 = vmatmul.mubr.bf16.gmra.mrb[108].mxu0 %v5640_v24 }
 0x238   :  { %3963 = vmatprep.mubr.bf16.mxu0 %v5644_v4 }
 0x23c   :  { %4373 = vmatmul.mubr.bf16.gmra.mrb[88].mxu1 %v5643_v9 }
 0x23d   :  { %4380 = vmatprep.mubr.bf16.mxu1 %v5647_v0 }
 0x23f   :  { %3964 = vmatmul.mubr.bf16.gmra.mrb[112].mxu0 %v5646_v35  ;;  %v5724_v35 = vld [vmem:[#allocation3 + $0x420] ss:$16 sps:$4 sm:$0xff]  }
 0x240   :  { %3971 = vmatprep.mubr.bf16.mxu0 %v5650_v57 }
 0x244   :  { %4381 = vmatmul.mubr.bf16.gmra.mrb[92].mxu1 %v5649_v47 }
 0x245   :  { %4388 = vmatprep.mubr.bf16.mxu1 %v5653_v43 }
 0x247   :  { %3972 = vmatmul.mubr.bf16.gmra.mrb[116].mxu0 %v5652_v8  ;;  %v5728_v8 = vld [vmem:[#allocation3 + $0x444] ss:$16 sps:$4 sm:$0xff]  }
 0x248   :  { %3979 = vmatprep.mubr.bf16.mxu0 %v5656_v41 }
 0x24c   :  { %4389 = vmatmul.mubr.bf16.gmra.mrb[96].mxu1 %v5655_v32 }
 0x24d   :  { %4396 = vmatprep.mubr.bf16.mxu1 %v5659_v15 }
 0x24f   :  { %3980 = vmatmul.mubr.bf16.gmra.mrb[120].mxu0 %v5658_v26 }
 0x250   :  { %3987 = vmatprep.mubr.bf16.mxu0 %v5662_v58 }
 0x254   :  { %4397 = vmatmul.mubr.bf16.gmra.mrb[100].mxu1 %v5661_v37  ;;  %v5727_v37 = vld [vmem:[#allocation3 + $0x428] ss:$16 sps:$4 sm:$0xff]  }
 0x255   :  { %4404 = vmatprep.mubr.bf16.mxu1 %v5665_v38 }
 0x257   :  { %3988 = vmatmul.mubr.bf16.gmra.mrb[124].mxu0 %v5664_v34  ;;  %v5731_v34 = vld [vmem:[#allocation3 + $0x44c] ss:$16 sps:$4 sm:$0xff]  }
 0x258   :  { %3995 = vmatprep.mubr.bf16.mxu0 %v5668_v5 }
 0x25c   :  { %4405 = vmatmul.mubr.bf16.gmra.mrb[104].mxu1 %v5667_v39 }
 0x25d   :  { %4412 = vmatprep.mubr.bf16.mxu1 %v5671_v48 }
 0x25f   :  { %3996 = vmatmul.mubr.bf16.gmra.mrb[128].mxu0 %v5670_v29 }
 0x260   :  { %4003 = vmatprep.mubr.bf16.mxu0 %v5674_v50  ;;  %v5730_v50 = vld [vmem:[#allocation3 + $0x440] ss:$16 sps:$4 sm:$0xff]  }
 0x264   :  { %4413 = vmatmul.mubr.bf16.gmra.mrb[108].mxu1 %v5673_v11 }
 0x265   :  { %4420 = vmatprep.mubr.bf16.mxu1 %v5677_v56 }
 0x267   :  { %4004 = vmatmul.mubr.bf16.gmra.mrb[132].mxu0 %v5676_v52 }
 0x268   :  { %4011 = vmatprep.mubr.bf16.mxu0 %v5680_v2  ;;  %v5734_v2 = vld [vmem:[#allocation3 + $0x464] ss:$16 sps:$4 sm:$0xff]  }
 0x26c   :  { %4421 = vmatmul.mubr.bf16.gmra.mrb[112].mxu1 %v5679_v7 }
 0x26d   :  { %4428 = vmatprep.mubr.bf16.mxu1 %v5683_v14 }
 0x26f   :  { %4012 = vmatmul.mubr.bf16.gmra.mrb[136].mxu0 %v5682_v20 }
 0x270   :  { %4019 = vmatprep.mubr.bf16.mxu0 %v5686_v30 }
 0x274   :  { %4429 = vmatmul.mubr.bf16.gmra.mrb[116].mxu1 %v5685_v1 }
 0x275   :  { %4436 = vmatprep.mubr.bf16.mxu1 %v5689_v36  ;;  %v5733_v36 = vld [vmem:[#allocation3 + $0x448] ss:$16 sps:$4 sm:$0xff]  }
 0x277   :  { %4020 = vmatmul.mubr.bf16.gmra.mrb[140].mxu0 %v5688_v40 }
 0x278   :  { %4027 = vmatprep.mubr.bf16.mxu0 %v5692_v62  ;;  %v5737_v62 = vld [vmem:[#allocation3 + $0x46c] ss:$16 sps:$4 sm:$0xff]  }
 0x27c   :  { %4437 = vmatmul.mubr.bf16.gmra.mrb[120].mxu1 %v5691_v61 }
 0x27d   :  { %4444 = vmatprep.mubr.bf16.mxu1 %v5695_v17 }
 0x27f   :  { %4028 = vmatmul.mubr.bf16.gmra.mrb[144].mxu0 %v5694_v18 }
 0x280   :  { %4035 = vmatprep.mubr.bf16.mxu0 %v5698_v55 }
 0x284   :  { %4445 = vmatmul.mubr.bf16.gmra.mrb[124].mxu1 %v5697_v21  ;;  %v5736_v21 = vld [vmem:[#allocation3 + $0x460] ss:$16 sps:$4 sm:$0xff]  }
 0x285   :  { %4452 = vmatprep.mubr.bf16.mxu1 %v5701_v3 }
 0x287   :  { %4036 = vmatmul.mubr.bf16.gmra.mrb[148].mxu0 %v5700_v42 }
 0x288   :  { %4043 = vmatprep.mubr.bf16.mxu0 %v5704_v44 }
 0x28c   :  { %4453 = vmatmul.mubr.bf16.gmra.mrb[128].mxu1 %v5703_v27  ;;  %v5740_v27 = vld [vmem:[#allocation3 + $0x484] ss:$16 sps:$4 sm:$0xff]  }
 0x28d   :  { %4460 = vmatprep.mubr.bf16.mxu1 %v5707_v60 }
 0x28f   :  { %4044 = vmatmul.mubr.bf16.gmra.mrb[152].mxu0 %v5706_v23 }
 0x290   :  { %4051 = vmatprep.mubr.bf16.mxu0 %v5710_v53 }
 0x294   :  { %4461 = vmatmul.mubr.bf16.gmra.mrb[132].mxu1 %v5709_v12 }
 0x295   :  { %4468 = vmatprep.mubr.bf16.mxu1 %v5713_v31 }
 0x297   :  { %4052 = vmatmul.mubr.bf16.gmra.mrb[156].mxu0 %v5712_v59  ;;  %v5739_v59 = vld [vmem:[#allocation3 + $0x468] ss:$16 sps:$4 sm:$0xff]  }
 0x298   :  { %4059 = vmatprep.mubr.bf16.mxu0 %v5716_v63 }
 0x29a   :  { %v3845_v51 = vpop.f32.mrb[52].mxu0 }
 0x29b   :  { %v3847_v45 = vpop.f32.mrb[53].mxu0 }
 0x29c   :  { %4469 = vmatmul.mubr.bf16.gmra.mrb[136].mxu1 %v5715_v49  ;;  %v3848_v22 = vpop.f32.mrb[54].mxu0  ;;  %v5743_v49 = vld [vmem:[#allocation3 + $0x48c] ss:$16 sps:$4 sm:$0xff]  }
 0x29d   :  { %v3850_v19 = vpop.f32.mrb[55].mxu0  ;;  %4476 = vmatprep.mubr.bf16.mxu1 %v5719_v6 }
 0x29f   :  { %v4262_v25 = vpop.f32.mrb[32].mxu1  ;;  %4060 = vmatmul.mubr.bf16.gmra.mrb[160].mxu0 %v5718_v54 }
 0x2a0   :  { %v4263_v28 = vadd.f32 %v4262_v25, %v3845_v51  ;;  %v4264_v10 = vpop.f32.mrb[33].mxu1  ;;  %4067 = vmatprep.mubr.bf16.mxu0 %v5722_v46 }
 0x2a1   :  { %v4265_v33 = vpop.f32.mrb[34].mxu1 }
 0x2a2   :  { %v4266_v24 = vadd.f32 %v4265_v33, %v3848_v22  ;;  %v3853_v4 = vpop.f32.mrb[56].mxu0  ;;  %v4267_v9 = vpop.f32.mrb[35].mxu1  ;;  %v4615_v57 = vmax.f32 %v4263_v28, 0.0  ;;  %v5742_v22 = vld [vmem:[#allocation3 + $0x480] ss:$16 sps:$4 sm:$0xff]  }
 0x2a3   :  { %v3855_v0 = vpop.f32.mrb[57].mxu0  ;;  %v5746_v28 = vld [vmem:[#allocation3 + $0x4a4] ss:$16 sps:$4 sm:$0xff]  }
 0x2a4   :  { %v4616_v47 = vmax.f32 %v4266_v24, 0.0  ;;  %4477 = vmatmul.mubr.bf16.gmra.mrb[140].mxu1 %v5721_v16  ;;  %v3856_v43 = vpop.f32.mrb[58].mxu0  ;;  %v5749_v0 = vld [vmem:[#allocation3 + $0x4ac] ss:$16 sps:$4 sm:$0xff]  }
 0x2a5   :  { %v3858_v41 = vpop.f32.mrb[59].mxu0  ;;  %4484 = vmatprep.mubr.bf16.mxu1 %v5725_v13 }
 0x2a6   :  { %v8064_v32 = vpack.c.bf16 %v4616_v47, %v4615_v57 }
 0x2a7   :  { %v4270_v15 = vpop.f32.mrb[36].mxu1  ;;  %4068 = vmatmul.mubr.bf16.gmra.mrb[164].mxu0 %v5724_v35 }
 0x2a8   :  { %v4271_v26 = vadd.f32 %v4270_v15, %v3853_v4  ;;  %v4272_v58 = vpop.f32.mrb[37].mxu1  ;;  %4075 = vmatprep.mubr.bf16.mxu0 %v5728_v8  ;;  %v5745_v4 = vld [vmem:[#allocation3 + $0x488] ss:$16 sps:$4 sm:$0xff]   ;;  %v5748_v8 = vld [vmem:[#allocation3 + $0x4a0] ss:$16 sps:$4 sm:$0xff]  }
 0x2a9   :  { %v4273_v38 = vpop.f32.mrb[38].mxu1  ;;  %v5752_v58 = vld [vmem:[#allocation3 + $0x4c4] ss:$16 sps:$4 sm:$0xff]  }
 0x2aa   :  { %v4274_v5 = vadd.f32 %v4273_v38, %v3856_v43  ;;  %v3861_v39 = vpop.f32.mrb[60].mxu0  ;;  %v4275_v48 = vpop.f32.mrb[39].mxu1  ;;  %v4617_v11 = vmax.f32 %v4271_v26, 0.0 }
 0x2ab   :  { %v3863_v29 = vpop.f32.mrb[61].mxu0  ;;  %v5751_v48 = vld [vmem:[#allocation3 + $0x4a8] ss:$16 sps:$4 sm:$0xff]  }
 0x2ac   :  { %v4618_v56 = vmax.f32 %v4274_v5, 0.0  ;;  %4485 = vmatmul.mubr.bf16.gmra.mrb[144].mxu1 %v5727_v37  ;;  %v3864_v52 = vpop.f32.mrb[62].mxu0 }
 0x2ad   :  { %v3866_v7 = vpop.f32.mrb[63].mxu0  ;;  %4492 = vmatprep.mubr.bf16.mxu1 %v5731_v34 }
 0x2ae   :  { %v8066_v14 = vpack.c.bf16 %v4618_v56, %v4617_v11  ;;  %v5754_v7 = vld [vmem:[#allocation3 + $0x4c0] ss:$16 sps:$4 sm:$0xff]  }
 0x2af   :  { %v4278_v20 = vpop.f32.mrb[40].mxu1  ;;  %4076 = vmatmul.mubr.bf16.gmra.mrb[168].mxu0 %v5730_v50  ;;  %v5755_v50 = vld [vmem:[#allocation3 + $0x4cc] ss:$16 sps:$4 sm:$0xff]  }
 0x2b0   :  { %v4279_v30 = vadd.f32 %v4278_v20, %v3861_v39  ;;  %v4280_v1 = vpop.f32.mrb[41].mxu1  ;;  %4083 = vmatprep.mubr.bf16.mxu0 %v5734_v2 }
 0x2b1   :  { %v4281_v40 = vpop.f32.mrb[42].mxu1 }
 0x2b2   :  { %v4282_v61 = vadd.f32 %v4281_v40, %v3864_v52  ;;  %v3869_v17 = vpop.f32.mrb[64].mxu0  ;;  %v4283_v18 = vpop.f32.mrb[43].mxu1  ;;  %v4619_v3 = vmax.f32 %v4279_v30, 0.0 }
 0x2b3   :  { %v3871_v55 = vpop.f32.mrb[65].mxu0 }
 0x2b4   :  { %v4620_v42 = vmax.f32 %v4282_v61, 0.0  ;;  %4493 = vmatmul.mubr.bf16.gmra.mrb[148].mxu1 %v5733_v36  ;;  %v3872_v44 = vpop.f32.mrb[66].mxu0  ;;  %v5758_v36 = vld [vmem:[#allocation3 + $0x4e4] ss:$16 sps:$4 sm:$0xff]   ;;  %v5757_v55 = vld [vmem:[#allocation3 + $0x4c8] ss:$16 sps:$4 sm:$0xff]  }
 0x2b5   :  { %v3874_v60 = vpop.f32.mrb[67].mxu0  ;;  %4500 = vmatprep.mubr.bf16.mxu1 %v5737_v62 }
 0x2b6   :  { %v8068_v23 = vpack.c.bf16 %v4620_v42, %v4619_v3  ;;  %v5761_v3 = vld [vmem:[#allocation3 + $0x4ec] ss:$16 sps:$4 sm:$0xff]  }
 0x2b7   :  { %v4286_v53 = vpop.f32.mrb[44].mxu1  ;;  %4084 = vmatmul.mubr.bf16.gmra.mrb[172].mxu0 %v5736_v21 }
 0x2b8   :  { %v4287_v12 = vadd.f32 %v4286_v53, %v3869_v17  ;;  %v4288_v31 = vpop.f32.mrb[45].mxu1  ;;  %4091 = vmatprep.mubr.bf16.mxu0 %v5740_v27  ;;  %v5760_v53 = vld [vmem:[#allocation3 + $0x4e0] ss:$16 sps:$4 sm:$0xff]  }
 0x2b9   :  { %v4289_v63 = vpop.f32.mrb[46].mxu1 }
 0x2ba   :  { %v4290_v6 = vadd.f32 %v4289_v63, %v3872_v44  ;;  %v3877_v51 = vpop.f32.mrb[68].mxu0  ;;  %v4291_v45 = vpop.f32.mrb[47].mxu1  ;;  %v4621_v46 = vmax.f32 %v4287_v12, 0.0  ;;  %v5764_v63 = vld [vmem:[#allocation3 + $0x504] ss:$16 sps:$4 sm:$0xff]  }
 0x2bb   :  { %v3879_v54 = vpop.f32.mrb[69].mxu0 }
 0x2bc   :  { %v4622_v19 = vmax.f32 %v4290_v6, 0.0  ;;  %4501 = vmatmul.mubr.bf16.gmra.mrb[152].mxu1 %v5739_v59  ;;  %v3880_v25 = vpop.f32.mrb[70].mxu0 }
 0x2bd   :  { %v3882_v10 = vpop.f32.mrb[71].mxu0  ;;  %4508 = vmatprep.mubr.bf16.mxu1 %v5743_v49 }
 0x2be   :  { %v4709_v16 = vpack.c.bf16 %v4622_v19, %v4621_v46  ;;  %v5767_v19 = vld [vmem:[#allocation3 + $0x50c] ss:$16 sps:$4 sm:$0xff]  }
 0x2bf   :  { %v4294_v33 = vpop.f32.mrb[48].mxu1  ;;  %4092 = vmatmul.mubr.bf16.gmra.mrb[176].mxu0 %v5742_v22  ;;  %v5763_v22 = vld [vmem:[#allocation3 + $0x4e8] ss:$16 sps:$4 sm:$0xff]  }
 0x2c0   :  { %v4295_v13 = vadd.f32 %v4294_v33, %v3877_v51  ;;  %v4296_v24 = vpop.f32.mrb[49].mxu1  ;;  %5225 = vmatprep.subr.bf16.mxu1 %v4709_v16  ;;  %4099 = vmatprep.mubr.bf16.mxu0 %v5746_v28  ;;  %v5766_v33 = vld [vmem:[#allocation3 + $0x500] ss:$16 sps:$4 sm:$0xff]  }
 0x2c1   :  { %v4297_v9 = vpop.f32.mrb[50].mxu1 }
 0x2c2   :  { %v4298_v35 = vadd.f32 %v4297_v9, %v3880_v25  ;;  %v3885_v57 = vpop.f32.mrb[72].mxu0  ;;  %v4299_v47 = vpop.f32.mrb[51].mxu1  ;;  %v4623_v41 = vmax.f32 %v4295_v13, 0.0  ;;  %v5770_v9 = vld [vmem:[#allocation3 + $0x524] ss:$16 sps:$4 sm:$0xff]  }
 0x2c3   :  { %v3887_v43 = vpop.f32.mrb[73].mxu0 }
 0x2c4   :  { %v4624_v15 = vmax.f32 %v4298_v35, 0.0  ;;  %4509 = vmatmul.mubr.bf16.gmra.mrb[156].mxu1 %v5745_v4  ;;  %v3888_v26 = vpop.f32.mrb[74].mxu0 }
 0x2c5   :  { %v3890_v37 = vpop.f32.mrb[75].mxu0  ;;  %4516 = vmatprep.mubr.bf16.mxu1 %v5749_v0 }
 0x2c6   :  { %v8070_v38 = vpack.c.bf16 %v4624_v15, %v4623_v41  ;;  %v5773_v15 = vld [vmem:[#allocation3 + $0x52c] ss:$16 sps:$4 sm:$0xff]  }
 0x2c7   :  { %v4302_v34 = vpop.f32.mrb[52].mxu1  ;;  %4100 = vmatmul.mubr.bf16.gmra.mrb[180].mxu0 %v5748_v8  ;;  %v5769_v8 = vld [vmem:[#allocation3 + $0x508] ss:$16 sps:$4 sm:$0xff]  }
 0x2c8   :  { %v4303_v5 = vadd.f32 %v4302_v34, %v3885_v57  ;;  %v4304_v39 = vpop.f32.mrb[53].mxu1  ;;  %4107 = vmatprep.mubr.bf16.mxu0 %v5752_v58 }
 0x2c9   :  { %v4305_v29 = vpop.f32.mrb[54].mxu1 }
 0x2ca   :  { %v4306_v11 = vadd.f32 %v4305_v29, %v3888_v26  ;;  %v3893_v56 = vpop.f32.mrb[76].mxu0  ;;  %v4307_v52 = vpop.f32.mrb[55].mxu1  ;;  %v4625_v20 = vmax.f32 %v4303_v5, 0.0  ;;  %v5772_v5 = vld [vmem:[#allocation3 + $0x520] ss:$16 sps:$4 sm:$0xff]  }
 0x2cb   :  { %v3895_v2 = vpop.f32.mrb[77].mxu0 }
 0x2cc   :  { %v4626_v30 = vmax.f32 %v4306_v11, 0.0  ;;  %4517 = vmatmul.mubr.bf16.gmra.mrb[160].mxu1 %v5751_v48  ;;  %v3896_v1 = vpop.f32.mrb[78].mxu0 }
 0x2cd   :  { %v3898_v40 = vpop.f32.mrb[79].mxu0  ;;  %4524 = vmatprep.mubr.bf16.mxu1 %v5755_v50  ;;  %v5776_v50 = vld [vmem:[#allocation3 + $0x544] ss:$16 sps:$4 sm:$0xff]  }
 0x2ce   :  { %v8072_v62 = vpack.c.bf16 %v4626_v30, %v4625_v20  ;;  %v5775_v20 = vld [vmem:[#allocation3 + $0x528] ss:$16 sps:$4 sm:$0xff]  }
 0x2cf   :  { %v4310_v61 = vpop.f32.mrb[56].mxu1  ;;  %4108 = vmatmul.mubr.bf16.gmra.mrb[184].mxu0 %v5754_v7 }
 0x2d0   :  { %v4311_v17 = vadd.f32 %v4310_v61, %v3893_v56  ;;  %v4312_v18 = vpop.f32.mrb[57].mxu1  ;;  %4115 = vmatprep.mubr.bf16.mxu0 %v5758_v36 }
 0x2d1   :  { %v4313_v21 = vpop.f32.mrb[58].mxu1  ;;  %v5778_v18 = vld [vmem:[#allocation3 + $0x540] ss:$16 sps:$4 sm:$0xff]  }
 0x2d2   :  { %v4314_v42 = vadd.f32 %v4313_v21, %v3896_v1  ;;  %v3901_v44 = vpop.f32.mrb[80].mxu0  ;;  %v4315_v27 = vpop.f32.mrb[59].mxu1  ;;  %v4627_v12 = vmax.f32 %v4311_v17, 0.0  ;;  %v5779_v1 = vld [vmem:[#allocation3 + $0x54c] ss:$16 sps:$4 sm:$0xff]  }
 0x2d3   :  { %v3903_v60 = vpop.f32.mrb[81].mxu0 }
 0x2d4   :  { %v4628_v31 = vmax.f32 %v4314_v42, 0.0  ;;  %4525 = vmatmul.mubr.bf16.gmra.mrb[164].mxu1 %v5757_v55  ;;  %v3904_v59 = vpop.f32.mrb[82].mxu0  ;;  %v5782_v42 = vld [vmem:[#allocation3 + $0x564] ss:$16 sps:$4 sm:$0xff]  }
 0x2d5   :  { %v3906_v49 = vpop.f32.mrb[83].mxu0  ;;  %4532 = vmatprep.mubr.bf16.mxu1 %v5761_v3 }
 0x2d6   :  { %v8074_v6 = vpack.c.bf16 %v4628_v31, %v4627_v12  ;;  %v5781_v31 = vld [vmem:[#allocation3 + $0x548] ss:$16 sps:$4 sm:$0xff]  }
 0x2d7   :  { %v4318_v51 = vpop.f32.mrb[60].mxu1  ;;  %4116 = vmatmul.mubr.bf16.gmra.mrb[188].mxu0 %v5760_v53 }
 0x2d8   :  { %v4319_v45 = vadd.f32 %v4318_v51, %v3901_v44  ;;  %v4320_v54 = vpop.f32.mrb[61].mxu1  ;;  %4123 = vmatprep.mubr.bf16.mxu0 %v5764_v63  ;;  %v5785_v63 = vld [vmem:[#allocation3 + $0x56c] ss:$16 sps:$4 sm:$0xff]  }
 0x2d9   :  { %v4321_v46 = vpop.f32.mrb[62].mxu1 }
 0x2da   :  { %v4322_v25 = vadd.f32 %v4321_v46, %v3904_v59  ;;  %v3909_v28 = vpop.f32.mrb[84].mxu0  ;;  %v4323_v10 = vpop.f32.mrb[63].mxu1  ;;  %v4629_v13 = vmax.f32 %v4319_v45, 0.0 }
 0x2db   :  { %v3911_v16 = vpop.f32.mrb[85].mxu0 }
 0x2dc   :  { %v4630_v24 = vmax.f32 %v4322_v25, 0.0  ;;  %4533 = vmatmul.mubr.bf16.gmra.mrb[168].mxu1 %v5763_v22  ;;  %v3912_v4 = vpop.f32.mrb[86].mxu0  ;;  %v5784_v22 = vld [vmem:[#allocation3 + $0x560] ss:$16 sps:$4 sm:$0xff]  }
 0x2dd   :  { %v3914_v0 = vpop.f32.mrb[87].mxu0  ;;  %4540 = vmatprep.mubr.bf16.mxu1 %v5767_v19 }
 0x2de   :  { %v8076_v35 = vpack.c.bf16 %v4630_v24, %v4629_v13  ;;  %v5791_v0 = vld [vmem:[#allocation3 + $0x58c] ss:$16 sps:$4 sm:$0xff]  }
 0x2df   :  { %v4326_v57 = vpop.f32.mrb[64].mxu1  ;;  %4124 = vmatmul.mubr.bf16.gmra.mrb[192].mxu0 %v5766_v33 }
 0x2e0   :  { %v4327_v47 = vadd.f32 %v4326_v57, %v3909_v28  ;;  %v4328_v43 = vpop.f32.mrb[65].mxu1  ;;  %4131 = vmatprep.mubr.bf16.mxu0 %v5770_v9  ;;  %v5788_v28 = vld [vmem:[#allocation3 + $0x584] ss:$16 sps:$4 sm:$0xff]  }
 0x2e1   :  { %v4329_v41 = vpop.f32.mrb[66].mxu1 }
 0x2e2   :  { %v4330_v26 = vadd.f32 %v4329_v41, %v3912_v4  ;;  %v3917_v58 = vpop.f32.mrb[88].mxu0  ;;  %v4331_v37 = vpop.f32.mrb[67].mxu1  ;;  %v4631_v39 = vmax.f32 %v4327_v47, 0.0  ;;  %v5787_v4 = vld [vmem:[#allocation3 + $0x568] ss:$16 sps:$4 sm:$0xff]  }
 0x2e3   :  { %v3919_v34 = vpop.f32.mrb[89].mxu0  ;;  %v5790_v41 = vld [vmem:[#allocation3 + $0x580] ss:$16 sps:$4 sm:$0xff]   ;;  %v5794_v37 = vld [vmem:[#allocation3 + $0x5a4] ss:$16 sps:$4 sm:$0xff]  }
 0x2e4   :  { %v4632_v48 = vmax.f32 %v4330_v26, 0.0  ;;  %4541 = vmatmul.mubr.bf16.gmra.mrb[172].mxu1 %v5769_v8  ;;  %v3920_v29 = vpop.f32.mrb[90].mxu0 }
 0x2e5   :  { %v3922_v11 = vpop.f32.mrb[91].mxu0  ;;  %4548 = vmatprep.mubr.bf16.mxu1 %v5773_v15 }
 0x2e6   :  { %v8078_v56 = vpack.c.bf16 %v4632_v48, %v4631_v39 }
 0x2e7   :  { %v4334_v52 = vpop.f32.mrb[68].mxu1  ;;  %4132 = vmatmul.mubr.bf16.gmra.mrb[196].mxu0 %v5772_v5 }
 0x2e8   :  { %v4335_v2 = vadd.f32 %v4334_v52, %v3917_v58  ;;  %v4336_v7 = vpop.f32.mrb[69].mxu1  ;;  %4139 = vmatprep.mubr.bf16.mxu0 %v5776_v50  ;;  %v5793_v50 = vld [vmem:[#allocation3 + $0x588] ss:$16 sps:$4 sm:$0xff]   ;;  %v5797_v52 = vld [vmem:[#allocation3 + $0x5ac] ss:$16 sps:$4 sm:$0xff]  }
 0x2e9   :  { %v4337_v30 = vpop.f32.mrb[70].mxu1 }
 0x2ea   :  { %v4338_v36 = vadd.f32 %v4337_v30, %v3920_v29  ;;  %v3925_v40 = vpop.f32.mrb[92].mxu0  ;;  %v4339_v61 = vpop.f32.mrb[71].mxu1  ;;  %v4633_v55 = vmax.f32 %v4335_v2, 0.0 }
 0x2eb   :  { %v3927_v17 = vpop.f32.mrb[93].mxu0 }
 0x2ec   :  { %v4634_v21 = vmax.f32 %v4338_v36, 0.0  ;;  %4549 = vmatmul.mubr.bf16.gmra.mrb[176].mxu1 %v5775_v20  ;;  %v3928_v3 = vpop.f32.mrb[94].mxu0  ;;  %v5800_v17 = vld [vmem:[#allocation3 + $0x5c4] ss:$16 sps:$4 sm:$0xff]  }
 0x2ed   :  { %v3930_v44 = vpop.f32.mrb[95].mxu0  ;;  %4556 = vmatprep.mubr.bf16.mxu1 %v5779_v1  ;;  %v5796_v1 = vld [vmem:[#allocation3 + $0x5a0] ss:$16 sps:$4 sm:$0xff]  }
 0x2ee   :  { %v8080_v27 = vpack.c.bf16 %v4634_v21, %v4633_v55  ;;  %v5799_v44 = vld [vmem:[#allocation3 + $0x5a8] ss:$16 sps:$4 sm:$0xff]  }
 0x2ef   :  { %v4342_v60 = vpop.f32.mrb[72].mxu1  ;;  %4140 = vmatmul.mubr.bf16.gmra.mrb[200].mxu0 %v5778_v18 }
 0x2f0   :  { %v4343_v53 = vadd.f32 %v4342_v60, %v3925_v40  ;;  %v4344_v12 = vpop.f32.mrb[73].mxu1  ;;  %4147 = vmatprep.mubr.bf16.mxu0 %v5782_v42 }
 0x2f1   :  { %v4345_v59 = vpop.f32.mrb[74].mxu1 }
 0x2f2   :  { %v4346_v49 = vadd.f32 %v4345_v59, %v3928_v3  ;;  %v3933_v51 = vpop.f32.mrb[96].mxu0  ;;  %v4347_v45 = vpop.f32.mrb[75].mxu1  ;;  %v4635_v46 = vmax.f32 %v4343_v53, 0.0  ;;  %v5803_v53 = vld [vmem:[#allocation3 + $0x5cc] ss:$16 sps:$4 sm:$0xff]  }
 0x2f3   :  { %v3935_v54 = vpop.f32.mrb[97].mxu0 }
 0x2f4   :  { %v4636_v19 = vmax.f32 %v4346_v49, 0.0  ;;  %4557 = vmatmul.mubr.bf16.gmra.mrb[180].mxu1 %v5781_v31  ;;  %v3936_v25 = vpop.f32.mrb[98].mxu0  ;;  %v5802_v49 = vld [vmem:[#allocation3 + $0x5c0] ss:$16 sps:$4 sm:$0xff]  }
 0x2f5   :  { %v3938_v10 = vpop.f32.mrb[99].mxu0  ;;  %4564 = vmatprep.mubr.bf16.mxu1 %v5785_v63 }
 0x2f6   :  { %v8082_v16 = vpack.c.bf16 %v4636_v19, %v4635_v46 }
 0x2f7   :  { %v4350_v33 = vpop.f32.mrb[76].mxu1  ;;  %4148 = vmatmul.mubr.bf16.gmra.mrb[204].mxu0 %v5784_v22  ;;  %v5806_v22 = vld [vmem:[#allocation3 + $0x5e4] ss:$16 sps:$4 sm:$0xff]  }
 0x2f8   :  { %v4351_v13 = vadd.f32 %v4350_v33, %v3933_v51  ;;  %v4352_v24 = vpop.f32.mrb[77].mxu1  ;;  %4155 = vmatprep.mubr.bf16.mxu0 %v5788_v28  ;;  %v5805_v33 = vld [vmem:[#allocation3 + $0x5c8] ss:$16 sps:$4 sm:$0xff]  }
 0x2f9   :  { %v4353_v9 = vpop.f32.mrb[78].mxu1  ;;  %v5809_v24 = vld [vmem:[#allocation3 + $0x5ec] ss:$16 sps:$4 sm:$0xff]  }
 0x2fa   :  { %v4354_v57 = vadd.f32 %v4353_v9, %v3936_v25  ;;  %v3941_v47 = vpop.f32.mrb[100].mxu0  ;;  %v4355_v43 = vpop.f32.mrb[79].mxu1  ;;  %v4637_v15 = vmax.f32 %v4351_v13, 0.0 }
 0x2fb   :  { %v3943_v8 = vpop.f32.mrb[101].mxu0 }
 0x2fc   :  { %v4638_v26 = vmax.f32 %v4354_v57, 0.0  ;;  %4565 = vmatmul.mubr.bf16.gmra.mrb[184].mxu1 %v5787_v4  ;;  %v3944_v58 = vpop.f32.mrb[102].mxu0 }
 0x2fd   :  { %v3946_v34 = vpop.f32.mrb[103].mxu0  ;;  %4572 = vmatprep.mubr.bf16.mxu1 %v5791_v0 }
 0x2fe   :  { %v8084_v5 = vpack.c.bf16 %v4638_v26, %v4637_v15  ;;  %v5814_v15 = vld [vmem:[#allocation3 + $0xc] ss:$16 sps:$4 sm:$0xff]  }
 0x2ff   :  { %v4358_v39 = vpop.f32.mrb[80].mxu1  ;;  %4156 = vmatmul.mubr.bf16.gmra.mrb[208].mxu0 %v5790_v41 }
 0x300   :  { %v4359_v48 = vadd.f32 %v4358_v39, %v3941_v47  ;;  %v4360_v29 = vpop.f32.mrb[81].mxu1  ;;  %4163 = vmatprep.mubr.bf16.mxu0 %v5794_v37  ;;  %v5808_v47 = vld [vmem:[#allocation3 + $0x5e0] ss:$16 sps:$4 sm:$0xff]  }
 0x301   :  { %v4361_v11 = vpop.f32.mrb[82].mxu1 }
 0x302   :  { %v4362_v2 = vadd.f32 %v4361_v11, %v3944_v58  ;;  %v3949_v7 = vpop.f32.mrb[104].mxu0  ;;  %v4363_v20 = vpop.f32.mrb[83].mxu1  ;;  %v4639_v36 = vmax.f32 %v4359_v48, 0.0  ;;  %v5811_v48 = vld [vmem:[#allocation3 + $0x5e8] ss:$16 sps:$4 sm:$0xff]  }
 0x303   :  { %v3951_v30 = vpop.f32.mrb[105].mxu0 }
 0x304   :  { %v4640_v40 = vmax.f32 %v4362_v2, 0.0  ;;  %4573 = vmatmul.mubr.bf16.gmra.mrb[188].mxu1 %v5793_v50  ;;  %v3952_v61 = vpop.f32.mrb[106].mxu0 }
 0x305   :  { %v3954_v18 = vpop.f32.mrb[107].mxu0  ;;  %4580 = vmatprep.mubr.bf16.mxu1 %v5797_v52 }
 0x306   :  { %v8086_v55 = vpack.c.bf16 %v4640_v40, %v4639_v36  ;;  %v5815_v36 = vld [vmem:[#allocation3 + $0x2c] ss:$16 sps:$4 sm:$0xff]  }
 0x307   :  { %v4366_v21 = vpop.f32.mrb[84].mxu1  ;;  %4164 = vmatmul.mubr.bf16.gmra.mrb[212].mxu0 %v5796_v1 }
 0x308   :  { %v4367_v3 = vadd.f32 %v4366_v21, %v3949_v7  ;;  %v4368_v42 = vpop.f32.mrb[85].mxu1  ;;  %4171 = vmatprep.mubr.bf16.mxu0 %v5800_v17  ;;  %v5812_v7 = vld [vmem:[#allocation3 + $0x8] ss:$16 sps:$4 sm:$0xff]  }
 0x309   :  { %v4369_v60 = vpop.f32.mrb[86].mxu1 }
 0x30a   :  { %v4370_v12 = vadd.f32 %v4369_v60, %v3952_v61  ;;  %v3957_v31 = vpop.f32.mrb[108].mxu0  ;;  %v4371_v59 = vpop.f32.mrb[87].mxu1  ;;  %v4641_v51 = vmax.f32 %v4367_v3, 0.0 }
 0x30b   :  { %v3959_v63 = vpop.f32.mrb[109].mxu0 }
 0x30c   :  { %v4642_v45 = vmax.f32 %v4370_v12, 0.0  ;;  %4581 = vmatmul.mubr.bf16.gmra.mrb[192].mxu1 %v5799_v44  ;;  %v3960_v54 = vpop.f32.mrb[110].mxu0  ;;  %v5817_v12 = vld [vmem:[#allocation3 + $0x28] ss:$16 sps:$4 sm:$0xff]  }
 0x30d   :  { %v3962_v46 = vpop.f32.mrb[111].mxu0  ;;  %4588 = vmatprep.mubr.bf16.mxu1 %v5803_v53 }
 0x30e   :  { %v8088_v19 = vpack.c.bf16 %v4642_v45, %v4641_v51 }
 0x30f   :  { %v4374_v25 = vpop.f32.mrb[88].mxu1  ;;  %4172 = vmatmul.mubr.bf16.gmra.mrb[216].mxu0 %v5802_v49  ;;  %v5818_v49 = vld [vmem:[#allocation3 + $0x4c] ss:$16 sps:$4 sm:$0xff]  }
 0x310   :  { %v4375_v28 = vadd.f32 %v4374_v25, %v3957_v31  ;;  %v4376_v10 = vpop.f32.mrb[89].mxu1  ;;  %4179 = vmatprep.mubr.bf16.mxu0 %v5806_v22 }
 0x311   :  { %v4377_v13 = vpop.f32.mrb[90].mxu1 }
 0x312   :  { %v4378_v4 = vadd.f32 %v4377_v13, %v3960_v54  ;;  %v3965_v9 = vpop.f32.mrb[112].mxu0  ;;  %v4379_v0 = vpop.f32.mrb[91].mxu1  ;;  %v4643_v43 = vmax.f32 %v4375_v28, 0.0 }
 0x313   :  { %v3967_v57 = vpop.f32.mrb[113].mxu0 }
 0x314   :  { %v4644_v8 = vmax.f32 %v4378_v4, 0.0  ;;  %4589 = vmatmul.mubr.bf16.gmra.mrb[196].mxu1 %v5805_v33  ;;  %v3968_v41 = vpop.f32.mrb[114].mxu0  ;;  %v5821_v57 = vld [vmem:[#allocation3 + $0x6c] ss:$16 sps:$4 sm:$0xff]  }
 0x315   :  { %v3970_v26 = vpop.f32.mrb[115].mxu0  ;;  %4596 = vmatprep.mubr.bf16.mxu1 %v5809_v24  ;;  %v5820_v24 = vld [vmem:[#allocation3 + $0x48] ss:$16 sps:$4 sm:$0xff]  }
 0x316   :  { %v8090_v58 = vpack.c.bf16 %v4644_v8, %v4643_v43 }
 0x317   :  { %v4382_v37 = vpop.f32.mrb[92].mxu1  ;;  %4180 = vmatmul.mubr.bf16.gmra.mrb[220].mxu0 %v5808_v47 }
 0x318   :  { %v4383_v34 = vadd.f32 %v4382_v37, %v3965_v9  ;;  %v4384_v39 = vpop.f32.mrb[93].mxu1  ;;  %4220 = vmatprep.mubr.bf16.mxu0 %v5814_v15 }
 0x319   :  { %v4385_v29 = vpop.f32.mrb[94].mxu1 }
 0x31a   :  { %v4386_v50 = vadd.f32 %v4385_v29, %v3968_v41  ;;  %v3973_v11 = vpop.f32.mrb[116].mxu0  ;;  %v4387_v52 = vpop.f32.mrb[95].mxu1  ;;  %v4645_v20 = vmax.f32 %v4383_v34, 0.0  ;;  %v5823_v29 = vld [vmem:[#allocation3 + $0x68] ss:$16 sps:$4 sm:$0xff]  }
 0x31b   :  { %v3975_v2 = vpop.f32.mrb[117].mxu0 }
 0x31c   :  { %v4646_v30 = vmax.f32 %v4386_v50, 0.0  ;;  %4597 = vmatmul.mubr.bf16.gmra.mrb[200].mxu1 %v5811_v48  ;;  %v3976_v1 = vpop.f32.mrb[118].mxu0  ;;  %v5824_v2 = vld [vmem:[#allocation3 + $0x8c] ss:$16 sps:$4 sm:$0xff]  }
 0x31d   :  { %v3978_v40 = vpop.f32.mrb[119].mxu0 }
 0x31e   :  { %v8092_v61 = vpack.c.bf16 %v4646_v30, %v4645_v20 }
 0x31f   :  { %v4390_v17 = vpop.f32.mrb[96].mxu1  ;;  %4221 = vmatmul.mubr.bf16.vlgmr.msra.gmra.mrb[32].mxu0 %v5812_v7 }
 0x320   :  { %v4391_v18 = vadd.f32 %v4390_v17, %v3973_v11  ;;  %v4392_v21 = vpop.f32.mrb[97].mxu1  ;;  %4228 = vmatprep.mubr.bf16.mxu0 %v5815_v36 }
 0x321   :  { %v4393_v3 = vpop.f32.mrb[98].mxu1 }
 0x322   :  { %v4394_v42 = vadd.f32 %v4393_v3, %v3976_v1  ;;  %v3981_v44 = vpop.f32.mrb[120].mxu0  ;;  %v4395_v60 = vpop.f32.mrb[99].mxu1  ;;  %v4647_v31 = vmax.f32 %v4391_v18, 0.0 }
 0x323   :  { %v3983_v53 = vpop.f32.mrb[121].mxu0 }
 0x324   :  { %v4648_v59 = vmax.f32 %v4394_v42, 0.0  ;;  %v3984_v63 = vpop.f32.mrb[122].mxu0  ;;  %v5826_v42 = vld [vmem:[#allocation3 + $0x88] ss:$16 sps:$4 sm:$0xff]  }
 0x325   :  { %v3986_v51 = vpop.f32.mrb[123].mxu0 }
 0x326   :  { %v8094_v45 = vpack.c.bf16 %v4648_v59, %v4647_v31 }
 0x327   :  { %v4398_v54 = vpop.f32.mrb[100].mxu1  ;;  %4229 = vmatmul.mubr.bf16.gmra.mrb[36].mxu0 %v5817_v12 }
 0x328   :  { %v4399_v22 = vadd.f32 %v4398_v54, %v3981_v44  ;;  %v4400_v46 = vpop.f32.mrb[101].mxu1  ;;  %4236 = vmatprep.mubr.bf16.mxu0 %v5818_v49 }
 0x329   :  { %v4401_v25 = vpop.f32.mrb[102].mxu1 }
 0x32a   :  { %v4402_v28 = vadd.f32 %v4401_v25, %v3984_v63  ;;  %v3989_v10 = vpop.f32.mrb[124].mxu0  ;;  %v4403_v33 = vpop.f32.mrb[103].mxu1  ;;  %v4649_v4 = vmax.f32 %v4399_v22, 0.0 }
 0x32b   :  { %v3991_v13 = vpop.f32.mrb[125].mxu0 }
 0x32c   :  { %v4650_v9 = vmax.f32 %v4402_v28, 0.0  ;;  %v3992_v0 = vpop.f32.mrb[126].mxu0 }
 0x32d   :  { %v3994_v47 = vpop.f32.mrb[127].mxu0 }
 0x32e   :  { %v8096_v43 = vpack.c.bf16 %v4650_v9, %v4649_v4 }
 0x32f   :  { %v4406_v8 = vpop.f32.mrb[104].mxu1  ;;  %4237 = vmatmul.mubr.bf16.gmra.mrb[40].mxu0 %v5820_v24 }
 0x330   :  { %v4407_v41 = vadd.f32 %v4406_v8, %v3989_v10  ;;  %v4408_v15 = vpop.f32.mrb[105].mxu1  ;;  %4244 = vmatprep.mubr.bf16.mxu0 %v5821_v57 }
 0x331   :  { %v4409_v26 = vpop.f32.mrb[106].mxu1 }
 0x332   :  { %v4410_v37 = vadd.f32 %v4409_v26, %v3992_v0  ;;  %v3997_v34 = vpop.f32.mrb[128].mxu0  ;;  %v4411_v39 = vpop.f32.mrb[107].mxu1  ;;  %v4651_v50 = vmax.f32 %v4407_v41, 0.0 }
 0x333   :  { %v3999_v48 = vpop.f32.mrb[129].mxu0 }
 0x334   :  { %v4652_v11 = vmax.f32 %v4410_v37, 0.0  ;;  %v4000_v52 = vpop.f32.mrb[130].mxu0 }
 0x335   :  { %v4002_v7 = vpop.f32.mrb[131].mxu0 }
 0x336   :  { %v8098_v20 = vpack.c.bf16 %v4652_v11, %v4651_v50 }
 0x337   :  { %v4414_v30 = vpop.f32.mrb[108].mxu1  ;;  %4245 = vmatmul.mubr.bf16.gmra.mrb[44].mxu0 %v5823_v29 }
 0x338   :  { %v4415_v1 = vadd.f32 %v4414_v30, %v3997_v34  ;;  %v4416_v36 = vpop.f32.mrb[109].mxu1  ;;  %4252 = vmatprep.mubr.bf16.mxu0 %v5824_v2 }
 0x339   :  { %v4417_v40 = vpop.f32.mrb[110].mxu1 }
 0x33a   :  { %v4418_v17 = vadd.f32 %v4417_v40, %v4000_v52  ;;  %v4005_v18 = vpop.f32.mrb[132].mxu0  ;;  %v4419_v21 = vpop.f32.mrb[111].mxu1  ;;  %v4653_v44 = vmax.f32 %v4415_v1, 0.0 }
 0x33b   :  { %v4007_v3 = vpop.f32.mrb[133].mxu0 }
 0x33c   :  { %v4654_v60 = vmax.f32 %v4418_v17, 0.0  ;;  %v4008_v53 = vpop.f32.mrb[134].mxu0 }
 0x33d   :  { %v4010_v12 = vpop.f32.mrb[135].mxu0 }
 0x33e   :  { %v8100_v31 = vpack.c.bf16 %v4654_v60, %v4653_v44 }
 0x33f   :  { %v4422_v59 = vpop.f32.mrb[112].mxu1  ;;  %4253 = vmatmul.mubr.bf16.gmra.mrb[48].mxu0 %v5826_v42 }
 0x340   :  { %v4423_v63 = vadd.f32 %v4422_v59, %v4005_v18  ;;  %v4424_v49 = vpop.f32.mrb[113].mxu1 }
 0x341   :  { %v4425_v51 = vpop.f32.mrb[114].mxu1 }
 0x342   :  { %v4426_v54 = vadd.f32 %v4425_v51, %v4008_v53  ;;  %v4013_v22 = vpop.f32.mrb[136].mxu0  ;;  %v4427_v46 = vpop.f32.mrb[115].mxu1  ;;  %v4655_v28 = vmax.f32 %v4423_v63, 0.0 }
 0x343   :  { %v4015_v25 = vpop.f32.mrb[137].mxu0 }
 0x344   :  { %v4656_v10 = vmax.f32 %v4426_v54, 0.0  ;;  %v4016_v33 = vpop.f32.mrb[138].mxu0 }
 0x345   :  { %v4018_v13 = vpop.f32.mrb[139].mxu0 }
 0x346   :  { %v8102_v24 = vpack.c.bf16 %v4656_v10, %v4655_v28 }
 0x347   :  { %v4430_v4 = vpop.f32.mrb[116].mxu1 }
 0x348   :  { %v4431_v9 = vadd.f32 %v4430_v4, %v4013_v22  ;;  %v4432_v0 = vpop.f32.mrb[117].mxu1 }
 0x349   :  { %v4433_v57 = vpop.f32.mrb[118].mxu1 }
 0x34a   :  { %v4434_v47 = vadd.f32 %v4433_v57, %v4016_v33  ;;  %v4021_v8 = vpop.f32.mrb[140].mxu0  ;;  %v4435_v41 = vpop.f32.mrb[119].mxu1  ;;  %v4657_v26 = vmax.f32 %v4431_v9, 0.0 }
 0x34b   :  { %v4023_v15 = vpop.f32.mrb[141].mxu0 }
 0x34c   :  { %v4658_v37 = vmax.f32 %v4434_v47, 0.0  ;;  %v4024_v34 = vpop.f32.mrb[142].mxu0 }
 0x34d   :  { %v4026_v39 = vpop.f32.mrb[143].mxu0 }
 0x34e   :  { %v8104_v48 = vpack.c.bf16 %v4658_v37, %v4657_v26 }
 0x34f   :  { %v4438_v29 = vpop.f32.mrb[120].mxu1 }
 0x350   :  { %v4439_v50 = vadd.f32 %v4438_v29, %v4021_v8  ;;  %v4440_v11 = vpop.f32.mrb[121].mxu1 }
 0x351   :  { %v4441_v52 = vpop.f32.mrb[122].mxu1 }
 0x352   :  { %v4442_v2 = vadd.f32 %v4441_v52, %v4024_v34  ;;  %v4029_v7 = vpop.f32.mrb[144].mxu0  ;;  %v4443_v30 = vpop.f32.mrb[123].mxu1  ;;  %v4659_v36 = vmax.f32 %v4439_v50, 0.0 }
 0x353   :  { %v4031_v1 = vpop.f32.mrb[145].mxu0 }
 0x354   :  { %v4660_v40 = vmax.f32 %v4442_v2, 0.0  ;;  %v4032_v17 = vpop.f32.mrb[146].mxu0 }
 0x355   :  { %v4034_v18 = vpop.f32.mrb[147].mxu0 }
 0x356   :  { %v8106_v21 = vpack.c.bf16 %v4660_v40, %v4659_v36 }
 0x357   :  { %v4446_v3 = vpop.f32.mrb[124].mxu1 }
 0x358   :  { %v4447_v42 = vadd.f32 %v4446_v3, %v4029_v7  ;;  %v4448_v44 = vpop.f32.mrb[125].mxu1 }
 0x359   :  { %v4449_v60 = vpop.f32.mrb[126].mxu1 }
 0x35a   :  { %v4450_v53 = vadd.f32 %v4449_v60, %v4032_v17  ;;  %v4037_v12 = vpop.f32.mrb[148].mxu0  ;;  %v4451_v59 = vpop.f32.mrb[127].mxu1  ;;  %v4661_v49 = vmax.f32 %v4447_v42, 0.0 }
 0x35b   :  { %v4039_v63 = vpop.f32.mrb[149].mxu0 }
 0x35c   :  { %v4662_v51 = vmax.f32 %v4450_v53, 0.0  ;;  %v4040_v54 = vpop.f32.mrb[150].mxu0 }
 0x35d   :  { %v4042_v22 = vpop.f32.mrb[151].mxu0 }
 0x35e   :  { %v8108_v46 = vpack.c.bf16 %v4662_v51, %v4661_v49 }
 0x35f   :  { %v4454_v25 = vpop.f32.mrb[128].mxu1 }
 0x360   :  { %v4455_v28 = vadd.f32 %v4454_v25, %v4037_v12  ;;  %v4456_v10 = vpop.f32.mrb[129].mxu1 }
 0x361   :  { %v4457_v33 = vpop.f32.mrb[130].mxu1 }
 0x362   :  { %v4458_v13 = vadd.f32 %v4457_v33, %v4040_v54  ;;  %v4045_v4 = vpop.f32.mrb[152].mxu0  ;;  %v4459_v9 = vpop.f32.mrb[131].mxu1  ;;  %v4663_v57 = vmax.f32 %v4455_v28, 0.0 }
 0x363   :  { %v4047_v0 = vpop.f32.mrb[153].mxu0 }
 0x364   :  { %v4664_v47 = vmax.f32 %v4458_v13, 0.0  ;;  %v4048_v8 = vpop.f32.mrb[154].mxu0 }
 0x365   :  { %v4050_v41 = vpop.f32.mrb[155].mxu0 }
 0x366   :  { %v8110_v15 = vpack.c.bf16 %v4664_v47, %v4663_v57 }
 0x367   :  { %v4462_v26 = vpop.f32.mrb[132].mxu1 }
 0x368   :  { %v4463_v37 = vadd.f32 %v4462_v26, %v4045_v4  ;;  %v4464_v34 = vpop.f32.mrb[133].mxu1 }
 0x369   :  { %v4465_v39 = vpop.f32.mrb[134].mxu1 }
 0x36a   :  { %v4466_v29 = vadd.f32 %v4465_v39, %v4048_v8  ;;  %v4053_v50 = vpop.f32.mrb[156].mxu0  ;;  %v4467_v11 = vpop.f32.mrb[135].mxu1  ;;  %v4665_v2 = vmax.f32 %v4463_v37, 0.0 }
 0x36b   :  { %v4055_v52 = vpop.f32.mrb[157].mxu0 }
 0x36c   :  { %v4666_v7 = vmax.f32 %v4466_v29, 0.0  ;;  %v4056_v30 = vpop.f32.mrb[158].mxu0 }
 0x36d   :  { %v4058_v1 = vpop.f32.mrb[159].mxu0 }
 0x36e   :  { %v8112_v36 = vpack.c.bf16 %v4666_v7, %v4665_v2 }
 0x36f   :  { %v4470_v40 = vpop.f32.mrb[136].mxu1 }
 0x370   :  { %v4471_v17 = vadd.f32 %v4470_v40, %v4053_v50  ;;  %v4472_v18 = vpop.f32.mrb[137].mxu1 }
 0x371   :  { %v4473_v3 = vpop.f32.mrb[138].mxu1 }
 0x372   :  { %v4474_v42 = vadd.f32 %v4473_v3, %v4056_v30  ;;  %v4061_v44 = vpop.f32.mrb[160].mxu0  ;;  %v4475_v60 = vpop.f32.mrb[139].mxu1  ;;  %v4667_v12 = vmax.f32 %v4471_v17, 0.0 }
 0x373   :  { %v4063_v53 = vpop.f32.mrb[161].mxu0 }
 0x374   :  { %v4668_v59 = vmax.f32 %v4474_v42, 0.0  ;;  %v4064_v63 = vpop.f32.mrb[162].mxu0 }
 0x375   :  { %v4066_v49 = vpop.f32.mrb[163].mxu0 }
 0x376   :  { %v8114_v51 = vpack.c.bf16 %v4668_v59, %v4667_v12 }
 0x377   :  { %v4478_v54 = vpop.f32.mrb[140].mxu1 }
 0x378   :  { %v4479_v22 = vadd.f32 %v4478_v54, %v4061_v44  ;;  %v4480_v25 = vpop.f32.mrb[141].mxu1 }
 0x379   :  { %v4481_v28 = vpop.f32.mrb[142].mxu1 }
 0x37a   :  { %v4482_v10 = vadd.f32 %v4481_v28, %v4064_v63  ;;  %v4069_v33 = vpop.f32.mrb[164].mxu0  ;;  %v4483_v13 = vpop.f32.mrb[143].mxu1  ;;  %v4669_v9 = vmax.f32 %v4479_v22, 0.0 }
 0x37b   :  { %v4071_v4 = vpop.f32.mrb[165].mxu0 }
 0x37c   :  { %v4670_v0 = vmax.f32 %v4482_v10, 0.0  ;;  %v4072_v57 = vpop.f32.mrb[166].mxu0 }
 0x37d   :  { %v4074_v47 = vpop.f32.mrb[167].mxu0 }
 0x37e   :  { %v8116_v8 = vpack.c.bf16 %v4670_v0, %v4669_v9 }
 0x37f   :  { %v4486_v41 = vpop.f32.mrb[144].mxu1 }
 0x380   :  { %v4487_v26 = vadd.f32 %v4486_v41, %v4069_v33  ;;  %v4488_v37 = vpop.f32.mrb[145].mxu1 }
 0x381   :  { %v4489_v34 = vpop.f32.mrb[146].mxu1 }
 0x382   :  { %v4490_v39 = vadd.f32 %v4489_v34, %v4072_v57  ;;  %v4077_v29 = vpop.f32.mrb[168].mxu0  ;;  %v4491_v50 = vpop.f32.mrb[147].mxu1  ;;  %v4671_v52 = vmax.f32 %v4487_v26, 0.0 }
 0x383   :  { %v4079_v11 = vpop.f32.mrb[169].mxu0 }
 0x384   :  { %v4672_v2 = vmax.f32 %v4490_v39, 0.0  ;;  %v4080_v7 = vpop.f32.mrb[170].mxu0 }
 0x385   :  { %v4082_v30 = vpop.f32.mrb[171].mxu0 }
 0x386   :  { %v8118_v1 = vpack.c.bf16 %v4672_v2, %v4671_v52 }
 0x387   :  { %v4494_v40 = vpop.f32.mrb[148].mxu1 }
 0x388   :  { %v4495_v17 = vadd.f32 %v4494_v40, %v4077_v29  ;;  %v4496_v18 = vpop.f32.mrb[149].mxu1 }
 0x389   :  { %v4497_v3 = vpop.f32.mrb[150].mxu1 }
 0x38a   :  { %v4498_v42 = vadd.f32 %v4497_v3, %v4080_v7  ;;  %v4085_v44 = vpop.f32.mrb[172].mxu0  ;;  %v4499_v60 = vpop.f32.mrb[151].mxu1  ;;  %v4673_v12 = vmax.f32 %v4495_v17, 0.0 }
 0x38b   :  { %v4087_v53 = vpop.f32.mrb[173].mxu0 }
 0x38c   :  { %v4674_v59 = vmax.f32 %v4498_v42, 0.0  ;;  %v4088_v63 = vpop.f32.mrb[174].mxu0 }
 0x38d   :  { %v4090_v49 = vpop.f32.mrb[175].mxu0 }
 0x38e   :  { %v8120_v54 = vpack.c.bf16 %v4674_v59, %v4673_v12 }
 0x38f   :  { %v4502_v22 = vpop.f32.mrb[152].mxu1 }
 0x390   :  { %v4503_v25 = vadd.f32 %v4502_v22, %v4085_v44  ;;  %v4504_v28 = vpop.f32.mrb[153].mxu1 }
 0x391   :  { %v4505_v10 = vpop.f32.mrb[154].mxu1 }
 0x392   :  { %v4506_v33 = vadd.f32 %v4505_v10, %v4088_v63  ;;  %v4093_v13 = vpop.f32.mrb[176].mxu0  ;;  %v4507_v4 = vpop.f32.mrb[155].mxu1  ;;  %v4675_v0 = vmax.f32 %v4503_v25, 0.0 }
 0x393   :  { %v4095_v9 = vpop.f32.mrb[177].mxu0 }
 0x394   :  { %v4676_v57 = vmax.f32 %v4506_v33, 0.0  ;;  %v4096_v47 = vpop.f32.mrb[178].mxu0  ;;  %v5829_v33 = vld [vmem:[%s8221_s5 + $0x4] ss:$24 sps:$4 sm:$0xff]  }
 0x395   :  { %v4098_v41 = vpop.f32.mrb[179].mxu0  ;;  %4829 = vmatprep.mubr.bf16.mxu1 %v5829_v33 }
 0x396   :  { %v8122_v26 = vpack.c.bf16 %v4676_v57, %v4675_v0 }
 0x397   :  { %v4510_v37 = vpop.f32.mrb[156].mxu1 }
 0x398   :  { %v4511_v34 = vadd.f32 %v4510_v37, %v4093_v13  ;;  %v4512_v39 = vpop.f32.mrb[157].mxu1 }
 0x399   :  { %v4513_v29 = vpop.f32.mrb[158].mxu1 }
 0x39a   :  { %v4514_v50 = vadd.f32 %v4513_v29, %v4096_v47  ;;  %v4101_v11 = vpop.f32.mrb[180].mxu0  ;;  %v4515_v52 = vpop.f32.mrb[159].mxu1  ;;  %v4677_v7 = vmax.f32 %v4511_v34, 0.0 }
 0x39b   :  { %v4103_v2 = vpop.f32.mrb[181].mxu0 }
 0x39c   :  { %v4678_v30 = vmax.f32 %v4514_v50, 0.0  ;;  %v4104_v40 = vpop.f32.mrb[182].mxu0 }
 0x39d   :  { %v4106_v17 = vpop.f32.mrb[183].mxu0 }
 0x39e   :  { %v8124_v18 = vpack.c.bf16 %v4678_v30, %v4677_v7 }
 0x39f   :  { %v4518_v3 = vpop.f32.mrb[160].mxu1 }
 0x3a0   :  { %v4519_v42 = vadd.f32 %v4518_v3, %v4101_v11  ;;  %v4520_v44 = vpop.f32.mrb[161].mxu1 }
 0x3a1   :  { %v4521_v60 = vpop.f32.mrb[162].mxu1 }
 0x3a2   :  { %v4522_v53 = vadd.f32 %v4521_v60, %v4104_v40  ;;  %v4109_v12 = vpop.f32.mrb[184].mxu0  ;;  %v4523_v59 = vpop.f32.mrb[163].mxu1  ;;  %v4679_v49 = vmax.f32 %v4519_v42, 0.0 }
 0x3a3   :  { %v4111_v63 = vpop.f32.mrb[185].mxu0 }
 0x3a4   :  { %v4680_v22 = vmax.f32 %v4522_v53, 0.0  ;;  %v4112_v25 = vpop.f32.mrb[186].mxu0 }
 0x3a5   :  { %v4114_v28 = vpop.f32.mrb[187].mxu0 }
 0x3a6   :  { %v8126_v10 = vpack.c.bf16 %v4680_v22, %v4679_v49 }
 0x3a7   :  { %v4526_v13 = vpop.f32.mrb[164].mxu1 }
 0x3a8   :  { %v4527_v4 = vadd.f32 %v4526_v13, %v4109_v12  ;;  %v4528_v9 = vpop.f32.mrb[165].mxu1 }
 0x3a9   :  { %v4529_v0 = vpop.f32.mrb[166].mxu1 }
 0x3aa   :  { %v4530_v57 = vadd.f32 %v4529_v0, %v4112_v25  ;;  %v4117_v47 = vpop.f32.mrb[188].mxu0  ;;  %v4531_v41 = vpop.f32.mrb[167].mxu1  ;;  %v4681_v34 = vmax.f32 %v4527_v4, 0.0 }
 0x3ab   :  { %v4119_v37 = vpop.f32.mrb[189].mxu0 }
 0x3ac   :  { %v4682_v39 = vmax.f32 %v4530_v57, 0.0  ;;  %v4120_v29 = vpop.f32.mrb[190].mxu0 }
 0x3ad   :  { %v4122_v50 = vpop.f32.mrb[191].mxu0 }
 0x3ae   :  { %v8131_v11 = vpack.c.bf16 %v4682_v39, %v4681_v34 }
 0x3af   :  { %v4534_v52 = vpop.f32.mrb[168].mxu1 }
 0x3b0   :  { %v4535_v2 = vadd.f32 %v4534_v52, %v4117_v47  ;;  %v4536_v7 = vpop.f32.mrb[169].mxu1 }
 0x3b1   :  { %v4537_v30 = vpop.f32.mrb[170].mxu1 }
 0x3b2   :  { %v4538_v40 = vadd.f32 %v4537_v30, %v4120_v29  ;;  %v4125_v17 = vpop.f32.mrb[192].mxu0  ;;  %v4539_v3 = vpop.f32.mrb[171].mxu1  ;;  %v4683_v44 = vmax.f32 %v4535_v2, 0.0 }
 0x3b3   :  { %v4127_v42 = vpop.f32.mrb[193].mxu0 }
 0x3b4   :  { %v4684_v60 = vmax.f32 %v4538_v40, 0.0  ;;  %v4128_v53 = vpop.f32.mrb[194].mxu0 }
 0x3b5   :  { %v4130_v12 = vpop.f32.mrb[195].mxu0 }
 0x3b6   :  { %v8133_v59 = vpack.c.bf16 %v4684_v60, %v4683_v44 }
 0x3b7   :  { %v4542_v63 = vpop.f32.mrb[172].mxu1 }
 0x3b8   :  { %v4543_v49 = vadd.f32 %v4542_v63, %v4125_v17  ;;  %v4544_v22 = vpop.f32.mrb[173].mxu1 }
 0x3b9   :  { %v4545_v25 = vpop.f32.mrb[174].mxu1 }
 0x3ba   :  { %v4546_v28 = vadd.f32 %v4545_v25, %v4128_v53  ;;  %v4133_v33 = vpop.f32.mrb[196].mxu0  ;;  %v4547_v13 = vpop.f32.mrb[175].mxu1  ;;  %v4685_v9 = vmax.f32 %v4543_v49, 0.0 }
 0x3bb   :  { %v4135_v4 = vpop.f32.mrb[197].mxu0 }
 0x3bc   :  { %v4686_v0 = vmax.f32 %v4546_v28, 0.0  ;;  %v4136_v57 = vpop.f32.mrb[198].mxu0 }
 0x3bd   :  { %v4138_v47 = vpop.f32.mrb[199].mxu0 }
 0x3be   :  { %v8135_v41 = vpack.c.bf16 %v4686_v0, %v4685_v9 }
 0x3bf   :  { %v4550_v37 = vpop.f32.mrb[176].mxu1 }
 0x3c0   :  { %v4551_v34 = vadd.f32 %v4550_v37, %v4133_v33  ;;  %v4552_v39 = vpop.f32.mrb[177].mxu1 }
 0x3c1   :  { %v4553_v29 = vpop.f32.mrb[178].mxu1 }
 0x3c2   :  { %v4554_v50 = vadd.f32 %v4553_v29, %v4136_v57  ;;  %v4141_v52 = vpop.f32.mrb[200].mxu0  ;;  %v4555_v2 = vpop.f32.mrb[179].mxu1  ;;  %v4687_v30 = vmax.f32 %v4551_v34, 0.0 }
 0x3c3   :  { %v4143_v7 = vpop.f32.mrb[201].mxu0 }
 0x3c4   :  { %v4688_v40 = vmax.f32 %v4554_v50, 0.0  ;;  %v4144_v17 = vpop.f32.mrb[202].mxu0 }
 0x3c5   :  { %v4146_v3 = vpop.f32.mrb[203].mxu0 }
 0x3c6   :  { %v8137_v42 = vpack.c.bf16 %v4688_v40, %v4687_v30 }
 0x3c7   :  { %v4558_v44 = vpop.f32.mrb[180].mxu1 }
 0x3c8   :  { %v4559_v60 = vadd.f32 %v4558_v44, %v4141_v52  ;;  %v4560_v53 = vpop.f32.mrb[181].mxu1 }
 0x3c9   :  { %v4561_v12 = vpop.f32.mrb[182].mxu1 }
 0x3ca   :  { %v4562_v63 = vadd.f32 %v4561_v12, %v4144_v17  ;;  %v4149_v49 = vpop.f32.mrb[204].mxu0  ;;  %v4563_v22 = vpop.f32.mrb[183].mxu1  ;;  %v4689_v28 = vmax.f32 %v4559_v60, 0.0 }
 0x3cb   :  { %v4151_v25 = vpop.f32.mrb[205].mxu0 }
 0x3cc   :  { %v4690_v33 = vmax.f32 %v4562_v63, 0.0  ;;  %v4152_v13 = vpop.f32.mrb[206].mxu0 }
 0x3cd   :  { %v4154_v4 = vpop.f32.mrb[207].mxu0 }
 0x3ce   :  { %v8139_v9 = vpack.c.bf16 %v4690_v33, %v4689_v28 }
 0x3cf   :  { %v4566_v0 = vpop.f32.mrb[184].mxu1 }
 0x3d0   :  { %v4567_v57 = vadd.f32 %v4566_v0, %v4149_v49  ;;  %v4568_v47 = vpop.f32.mrb[185].mxu1 }
 0x3d1   :  { %v4569_v37 = vpop.f32.mrb[186].mxu1 }
 0x3d2   :  { %v4570_v34 = vadd.f32 %v4569_v37, %v4152_v13  ;;  %v4157_v39 = vpop.f32.mrb[208].mxu0  ;;  %v4571_v29 = vpop.f32.mrb[187].mxu1  ;;  %v4691_v52 = vmax.f32 %v4567_v57, 0.0 }
 0x3d3   :  { %v4159_v50 = vpop.f32.mrb[209].mxu0 }
 0x3d4   :  { %v4692_v2 = vmax.f32 %v4570_v34, 0.0  ;;  %v4160_v7 = vpop.f32.mrb[210].mxu0 }
 0x3d5   :  { %v4162_v30 = vpop.f32.mrb[211].mxu0 }
 0x3d6   :  { %v8141_v40 = vpack.c.bf16 %v4692_v2, %v4691_v52 }
 0x3d7   :  { %v4574_v17 = vpop.f32.mrb[188].mxu1 }
 0x3d8   :  { %v4575_v3 = vadd.f32 %v4574_v17, %v4157_v39  ;;  %v4576_v44 = vpop.f32.mrb[189].mxu1 }
 0x3d9   :  { %v4577_v60 = vpop.f32.mrb[190].mxu1 }
 0x3da   :  { %v4578_v53 = vadd.f32 %v4577_v60, %v4160_v7  ;;  %v4165_v12 = vpop.f32.mrb[212].mxu0  ;;  %v4579_v63 = vpop.f32.mrb[191].mxu1  ;;  %v4693_v22 = vmax.f32 %v4575_v3, 0.0 }
 0x3db   :  { %v4167_v49 = vpop.f32.mrb[213].mxu0 }
 0x3dc   :  { %v4694_v25 = vmax.f32 %v4578_v53, 0.0  ;;  %v4168_v28 = vpop.f32.mrb[214].mxu0 }
 0x3dd   :  { %v4170_v33 = vpop.f32.mrb[215].mxu0 }
 0x3de   :  { %v8143_v13 = vpack.c.bf16 %v4694_v25, %v4693_v22 }
 0x3df   :  { %v4582_v4 = vpop.f32.mrb[192].mxu1 }
 0x3e0   :  { %v4583_v0 = vadd.f32 %v4582_v4, %v4165_v12  ;;  %v4584_v57 = vpop.f32.mrb[193].mxu1 }
 0x3e1   :  { %v4585_v47 = vpop.f32.mrb[194].mxu1 }
 0x3e2   :  { %v4586_v37 = vadd.f32 %v4585_v47, %v4168_v28  ;;  %v4173_v34 = vpop.f32.mrb[216].mxu0  ;;  %v4587_v29 = vpop.f32.mrb[195].mxu1  ;;  %v4695_v50 = vmax.f32 %v4583_v0, 0.0 }
 0x3e3   :  { %v4175_v39 = vpop.f32.mrb[217].mxu0 }
 0x3e4   :  { %v4696_v52 = vmax.f32 %v4586_v37, 0.0  ;;  %v4176_v2 = vpop.f32.mrb[218].mxu0 }
 0x3e5   :  { %v4178_v7 = vpop.f32.mrb[219].mxu0 }
 0x3e6   :  { %v8145_v30 = vpack.c.bf16 %v4696_v52, %v4695_v50 }
 0x3e7   :  { %v4590_v17 = vpop.f32.mrb[196].mxu1 }
 0x3e8   :  { %v4591_v3 = vadd.f32 %v4590_v17, %v4173_v34  ;;  %v4592_v44 = vpop.f32.mrb[197].mxu1 }
 0x3e9   :  { %v4593_v60 = vpop.f32.mrb[198].mxu1 }
 0x3ea   :  { %v4594_v53 = vadd.f32 %v4593_v60, %v4176_v2  ;;  %v4181_v63 = vpop.f32.mrb[220].mxu0  ;;  %v4595_v49 = vpop.f32.mrb[199].mxu1  ;;  %v4697_v22 = vmax.f32 %v4591_v3, 0.0 }
 0x3eb   :  { %v4183_v12 = vpop.f32.mrb[221].mxu0 }
 0x3ec   :  { %v4698_v25 = vmax.f32 %v4594_v53, 0.0  ;;  %v4184_v28 = vpop.f32.mrb[222].mxu0 }
 0x3ed   :  { %v4186_v33 = vpop.f32.mrb[223].mxu0 }
 0x3ee   :  { %v8147_v4 = vpack.c.bf16 %v4698_v25, %v4697_v22 }
 0x3ef   :  { %v4598_v0 = vpop.f32.mrb[200].mxu1 }
 0x3f0   :  { %v4599_v57 = vadd.f32 %v4598_v0, %v4181_v63  ;;  %v4600_v47 = vpop.f32.mrb[201].mxu1 }
 0x3f1   :  { %v4601_v37 = vpop.f32.mrb[202].mxu1 }
 0x3f2   :  { %v4602_v29 = vadd.f32 %v4601_v37, %v4184_v28  ;;  %v4222_v39 = vpop.f32.mrb[32].mxu0  ;;  %v4603_v50 = vpop.f32.mrb[203].mxu1  ;;  %v4699_v52 = vmax.f32 %v4599_v57, 0.0 }
 0x3f3   :  { %v4224_v34 = vpop.f32.mrb[33].mxu0  ;;  %v4605_v17 = vmax.f32 %v4222_v39, 0.0 }
 0x3f4   :  { %v4700_v7 = vmax.f32 %v4602_v29, 0.0  ;;  %v4225_v2 = vpop.f32.mrb[34].mxu0 }
 0x3f5   :  { %v4606_v44 = vmax.f32 %v4225_v2, 0.0  ;;  %v4227_v60 = vpop.f32.mrb[35].mxu0 }
 0x3f6   :  { %v8149_v3 = vpack.c.bf16 %v4700_v7, %v4699_v52 }
 0x3f7   :  { %v4701_v53 = vpack.c.bf16 %v4606_v44, %v4605_v17 }
 0x3f9   :  { %5226 = vmatpush3.bf16.msra.mxu1 %v4701_v53 }
 0x3fa   :  { %v4230_v49 = vpop.f32.mrb[36].mxu0  ;;  %5227 = vmatprep.subr.bf16.mxu1 %v8070_v38 }
 0x3fb   :  { %v4232_v63 = vpop.f32.mrb[37].mxu0  ;;  %v4607_v22 = vmax.f32 %v4230_v49, 0.0 }
 0x3fc   :  { %v4233_v12 = vpop.f32.mrb[38].mxu0 }
 0x3fd   :  { %v4608_v25 = vmax.f32 %v4233_v12, 0.0  ;;  %v4235_v28 = vpop.f32.mrb[39].mxu0 }
 0x3ff   :  { %v4702_v33 = vpack.c.bf16 %v4608_v25, %v4607_v22 }
 0x401   :  { %5228 = vmatpush3.bf16.msra.mxu1 %v4702_v33 }
 0x402   :  { %v4238_v0 = vpop.f32.mrb[40].mxu0  ;;  %5229 = vmatprep.subr.bf16.mxu1 %v8072_v62 }
 0x403   :  { %v4240_v57 = vpop.f32.mrb[41].mxu0  ;;  %v4609_v37 = vmax.f32 %v4238_v0, 0.0 }
 0x404   :  { %v4241_v47 = vpop.f32.mrb[42].mxu0 }
 0x405   :  { %v4610_v29 = vmax.f32 %v4241_v47, 0.0  ;;  %v4243_v39 = vpop.f32.mrb[43].mxu0 }
 0x407   :  { %v4703_v50 = vpack.c.bf16 %v4610_v29, %v4609_v37 }
 0x409   :  { %5230 = vmatpush3.bf16.msra.mxu1 %v4703_v50 }
 0x40a   :  { %v4246_v34 = vpop.f32.mrb[44].mxu0  ;;  %5231 = vmatprep.subr.bf16.mxu1 %v8074_v6  ;;  %v5827_v6 = vld [vmem:[%s8221_s5] ss:$24 sps:$4 sm:$0xff]  }
 0x40b   :  { %v4248_v38 = vpop.f32.mrb[45].mxu0  ;;  %v4611_v7 = vmax.f32 %v4246_v34, 0.0 }
 0x40c   :  { %v4249_v52 = vpop.f32.mrb[46].mxu0 }
 0x40d   :  { %v4612_v2 = vmax.f32 %v4249_v52, 0.0  ;;  %v4251_v17 = vpop.f32.mrb[47].mxu0 }
 0x40f   :  { %v4704_v44 = vpack.c.bf16 %v4612_v2, %v4611_v7 }
 0x411   :  { %5232 = vmatpush3.bf16.msra.mxu1 %v4704_v44 }
 0x412   :  { %v4254_v60 = vpop.f32.mrb[48].mxu0  ;;  %5233 = vmatprep.subr.bf16.mxu1 %v8076_v35  ;;  %v5832_v35 = vld [vmem:[%s8221_s5 + $0xc] ss:$24 sps:$4 sm:$0xff]  }
 0x413   :  { %v4256_v62 = vpop.f32.mrb[49].mxu0  ;;  %v4613_v49 = vmax.f32 %v4254_v60, 0.0 }
 0x414   :  { %v4257_v53 = vpop.f32.mrb[50].mxu0 }
 0x415   :  { %v4614_v63 = vmax.f32 %v4257_v53, 0.0  ;;  %v4259_v12 = vpop.f32.mrb[51].mxu0 }
 0x417   :  { %v4705_v22 = vpack.c.bf16 %v4614_v63, %v4613_v49 }
 0x419   :  { %5234 = vmatpush3.bf16.msra.mxu1 %v4705_v22 }
 0x41a   :  { %5235 = vmatprep.subr.bf16.mxu1 %v8078_v56 }
 0x41d   :  { %5236 = vmatpush3.bf16.msra.mxu1 %v8064_v32  ;;  %v5830_v32 = vld [vmem:[%s8221_s5 + $0x8] ss:$24 sps:$4 sm:$0xff]  }
 0x41e   :  { %5237 = vmatprep.subr.bf16.mxu1 %v8080_v27 }
 0x421   :  { %5238 = vmatpush3.bf16.msra.mxu1 %v8066_v14  ;;  %v5835_v14 = vld [vmem:[%s8221_s5 + $0x14] ss:$24 sps:$4 sm:$0xff]  }
 0x422   :  { %5239 = vmatprep.subr.bf16.mxu1 %v8082_v16 }
 0x425   :  { %5240 = vmatpush3.bf16.msra.mxu1 %v8068_v23  ;;  %v5833_v23 = vld [vmem:[%s8221_s5 + $0x10] ss:$24 sps:$4 sm:$0xff]  }
 0x426   :  { %5247 = vmatprep.subr.bf16.mxu1 %v8100_v31 }
 0x428   :  { %4830 = vmatmul.mubr.bf16.vlgmr.msra.gmra.mrb[204].mxu1 %v5827_v6 }
 0x429   :  { %5248 = vmatpush3.bf16.msra.mxu1 %v8084_v5  ;;  %4870 = vmatprep.mubr.bf16.mxu1 %v5832_v35 }
 0x42a   :  { %5249 = vmatprep.subr.bf16.mxu1 %v8102_v24  ;;  %v4765_v24 = vpop.permute.xlu1 %4764 }
 0x42d   :  { %5250 = vmatpush3.bf16.msra.mxu1 %v8086_v55 }
 0x42e   :  { %5251 = vmatprep.subr.bf16.mxu1 %v8104_v48 }
 0x431   :  { %5252 = vmatpush3.bf16.msra.mxu1 %v8088_v19 }
 0x432   :  { %5253 = vmatprep.subr.bf16.mxu1 %v8106_v21 }
 0x435   :  { %5254 = vmatpush3.bf16.msra.mxu1 %v8090_v58 }
 0x436   :  { %5255 = vmatprep.subr.bf16.mxu1 %v8108_v46 }
 0x439   :  { %5256 = vmatpush3.bf16.msra.mxu1 %v8092_v61  ;;  %v4760_v61 = vpop.permute.xlu0 %4759 }
 0x43a   :  { %5257 = vmatprep.subr.bf16.mxu1 %v8110_v15 }
 0x43d   :  { %5258 = vmatpush3.bf16.msra.mxu1 %v8094_v45 }
 0x43e   :  { %5259 = vmatprep.subr.bf16.mxu1 %v8112_v36 }
 0x441   :  { %5260 = vmatpush3.bf16.msra.mxu1 %v8096_v43 }
 0x442   :  { %5261 = vmatprep.subr.bf16.mxu1 %v8114_v51 }
 0x445   :  { %5262 = vmatpush3.bf16.msra.mxu1 %v8098_v20 }
 0x446   :  { %5269 = vmatprep.subr.bf16.mxu1 %v8135_v41 }
 0x448   :  { %4871 = vmatmul.mubr.bf16.vlgmr.msra.gmra.mrb[208].mxu1 %v5830_v32 }
 0x449   :  { %5270 = vmatpush3.bf16.msra.mxu1 %v8116_v8  ;;  %4911 = vmatprep.mubr.bf16.mxu1 %v5835_v14 }
 0x44a   :  { %5271 = vmatprep.subr.bf16.mxu1 %v8137_v42 }
 0x44d   :  { %5272 = vmatpush3.bf16.msra.mxu1 %v8118_v1 }
 0x44e   :  { %5273 = vmatprep.subr.bf16.mxu1 %v8139_v9 }
 0x451   :  { %5274 = vmatpush3.bf16.msra.mxu1 %v8120_v54 }
 0x452   :  { %5275 = vmatprep.subr.bf16.mxu1 %v8141_v40 }
 0x455   :  { %5276 = vmatpush3.bf16.msra.mxu1 %v8122_v26 }
 0x456   :  { %5277 = vmatprep.subr.bf16.mxu1 %v8143_v13 }
 0x459   :  { %5278 = vmatpush3.bf16.msra.mxu1 %v8124_v18 }
 0x45a   :  { %5279 = vmatprep.subr.bf16.mxu1 %v8145_v30 }
 0x45d   :  { %5280 = vmatpush3.bf16.msra.mxu1 %v8126_v10 }
 0x45e   :  { %5281 = vmatprep.subr.bf16.mxu1 %v8147_v4 }
 0x461   :  { %5282 = vmatpush3.bf16.msra.mxu1 %v8131_v11 }
 0x462   :  { %5283 = vmatprep.subr.bf16.mxu1 %v8149_v3 }
 0x465   :  { %5284 = vmatpush3.bf16.msra.mxu1 %v8133_v59 }
 0x468   :  { %4912 = vmatmul.mubr.bf16.vlgmr.msra.gmra.mrb[212].mxu1 %v5833_v23 }
 0x4fb   :  { %v5241_v56 = vpop.f32.mrb[204].mxu1 }
 0x4fc   :  { %v5242_v27 = vpop.f32.mrb[205].mxu1 }
 0x4fd   :  { %v5243_v16 = vadd.f32 %v5242_v27, %v5241_v56  ;;  %v5244_v5 = vpop.f32.mrb[206].mxu1 }
 0x4fe   :  { %v5245_v55 = vpop.f32.mrb[207].mxu1 }
 0x4ff   :  { %v5246_v19 = vadd.f32 %v5245_v55, %v5244_v5  ;;  %v4832_v43 = vadd.f32 %v5243_v16, %v4760_v61 }
 0x501   :  { %v4835_v21 = vadd.f32 %v5246_v19, %v4765_v24 }
 0x51b   :  { %v5263_v58 = vpop.f32.mrb[208].mxu1 }
 0x51c   :  { %v5264_v45 = vpop.f32.mrb[209].mxu1 }
 0x51d   :  { %v5265_v20 = vadd.f32 %v5264_v45, %v5263_v58  ;;  %v5266_v31 = vpop.f32.mrb[210].mxu1 }
 0x51e   :  { %v5267_v48 = vpop.f32.mrb[211].mxu1 }
 0x51f   :  { %v4873_v46 = vadd.f32 %v5265_v20, %v4832_v43  ;;  %v5268_v15 = vadd.f32 %v5267_v48, %v5266_v31 }
 0x521   :  { %v4876_v36 = vadd.f32 %v5268_v15, %v4835_v21 }
 0x53b   :  { %v5285_v51 = vpop.f32.mrb[212].mxu1 }
 0x53c   :  { %v5286_v8 = vpop.f32.mrb[213].mxu1 }
 0x53d   :  { %v5287_v1 = vadd.f32 %v5286_v8, %v5285_v51  ;;  %v5288_v54 = vpop.f32.mrb[214].mxu1 }
 0x53e   :  { %v5289_v26 = vpop.f32.mrb[215].mxu1 }
 0x53f   :  { %v4914_v18 = vadd.f32 %v5287_v1, %v4873_v46  ;;  %v5290_v10 = vadd.f32 %v5289_v26, %v5288_v54 }
 0x541   :  { %4920 = vst.msk [vmem:[%s8223_s7] sm:$0xff] %vm670_vm1, %v4914_v18  ;;  %v4917_v11 = vadd.f32 %v5290_v10, %v4876_v36 }
 0x543   :  { %4921 = vst.msk [vmem:[%s8223_s7 + $0x8] sm:$0xff] %vm670_vm1, %v4917_v11 }
 0x544   :  { %4926 = vsyncpa [#allocation4], 1 }

</bundles_post_ra>
